<compile_context>
chip_gen: v7x
topology: tpu7x:2x2x1
jax: 0.10.0
libtpu: 0.0.40
codegen_flags: <defaults>
</compile_context>

<pallas_src>
import functools

import jax
import jax.numpy as jnp
from jax.experimental import pallas as pl
from jax.experimental.pallas import tpu as pltpu


# -----------------------------------------------------------------------------
# Kernel: the WHOLE Regressor (all layers) for one block of TB batch elements
# -----------------------------------------------------------------------------
def _regressor_kernel(vis_ref, msk_ref,
                      wq_ref, wk_ref, wv_ref, wo_ref,      # per-head, bias-augmented
                      w1_ref, w2_ref,                      # FFN, bias-augmented
                      vec_ref,                             # packed (L, 7, D) vectors
                      out_ref,
                      *, num_heads: int, n_layers: int, eps: float = 1e-5):
    TB, Lv, D = vis_ref.shape
    _, Lm, _ = msk_ref.shape
    F = w1_ref.shape[2]
    dk = D // num_heads
    scale = 1.0 / (float(dk) ** 0.5)

    # Fold batch block into rows once; keys/values source is layer-invariant.
    x = vis_ref[...].astype(jnp.float32).reshape(TB * Lv, D)   # (TB*Lv, D)
    t = msk_ref[...].astype(jnp.float32).reshape(TB * Lm, D)   # (TB*Lm, D)

    for l in range(n_layers):                                  # static unroll over layers
        vec = vec_ref[l]                                       # (7, D)
        bo, g1, be1, g2, be2 = vec[0], vec[1], vec[2], vec[3], vec[4]
        a1_row, a2_row = vec[5], vec[6]                        # a1/a2 broadcast along D

        # --- multi-head cross attention (weight-side head split, no lane concat)
        attn = jnp.zeros((TB * Lm, D), jnp.float32)
        for h in range(num_heads):                             # static unroll over heads
            wq_h = wq_ref[l, h]                                # (D+1, dk); last row = bias
            wk_h = wk_ref[l, h]
            wv_h = wv_ref[l, h]
            qh = jnp.dot(t, wq_h[:D], preferred_element_type=jnp.float32) + wq_h[D]
            kh = jnp.dot(x, wk_h[:D], preferred_element_type=jnp.float32) + wk_h[D]
            vh = jnp.dot(x, wv_h[:D], preferred_element_type=jnp.float32) + wv_h[D]

            q3 = qh.reshape(TB, Lm, dk)
            k3 = kh.reshape(TB, Lv, dk)
            v3 = vh.reshape(TB, Lv, dk)

            s = jnp.einsum("bqd,bkd->bqk", q3, k3,
                           preferred_element_type=jnp.float32) * scale     # (TB, Lm, Lv)
            s = s - jnp.max(s, axis=-1, keepdims=True)
            p = jnp.exp(s)
            p = p * pl.reciprocal(jnp.sum(p, axis=-1, keepdims=True), approx=True)
            oh = jnp.einsum("bqk,bkd->bqd", p, v3,
                            preferred_element_type=jnp.float32)            # (TB, Lm, dk)
            # accumulate head contribution through its slice of the output proj
            attn = attn + jnp.dot(oh.reshape(TB * Lm, dk), wo_ref[l, h],
                                  preferred_element_type=jnp.float32)
        attn = attn + bo

        # --- sublayer connection 1 (residual scale + LayerNorm) ---------------
        h1 = t + a1_row * attn
        mu = jnp.mean(h1, axis=-1, keepdims=True)
        var = jnp.mean((h1 - mu) * (h1 - mu), axis=-1, keepdims=True)
        h1 = (h1 - mu) * jax.lax.rsqrt(var + eps) * g1 + be1

        # --- position-wise feed forward (TimeMAE tanh-approximation GELU) -----
        w1a = w1_ref[l]                                        # (D+1, F)
        w2a = w2_ref[l]                                        # (F+1, D)
        f = jnp.dot(h1, w1a[:D], preferred_element_type=jnp.float32) + w1a[D]
        f = 0.5 * f * (1.0 + jnp.tanh(0.7978845608028654 * (f + 0.044715 * f * f * f)))
        f = jnp.dot(f, w2a[:F], preferred_element_type=jnp.float32) + w2a[F]

        # --- sublayer connection 2 --------------------------------------------
        h2 = h1 + a2_row * f
        mu2 = jnp.mean(h2, axis=-1, keepdims=True)
        var2 = jnp.mean((h2 - mu2) * (h2 - mu2), axis=-1, keepdims=True)
        t = (h2 - mu2) * jax.lax.rsqrt(var2 + eps) * g2 + be2

    out_ref[...] = t.reshape(TB, Lm, D).astype(out_ref.dtype)


# -----------------------------------------------------------------------------
# Wrapper: parameter packing (trace time, free) + single pallas_call
# -----------------------------------------------------------------------------
def _stack_params(layer_params, num_heads):
    D = layer_params[0]["wq"].shape[0]
    dk = D // num_heads

    def aug(w_key, b_key):  # (L, D_in + 1, D_out): bias folded in as last row
        return jnp.stack([jnp.concatenate([p[w_key], p[b_key]], axis=0)
                          for p in layer_params])

    def per_head(w_aug):    # (L, D_in+1, H*dk) -> (L, H, D_in+1, dk)
        L, Din1, _ = w_aug.shape
        return w_aug.reshape(L, Din1, num_heads, dk).transpose(0, 2, 1, 3)

    wq = per_head(aug("wq", "bq"))
    wk = per_head(aug("wk", "bk"))
    wv = per_head(aug("wv", "bv"))
    wo = jnp.stack([p["wo"].reshape(num_heads, dk, D) for p in layer_params])  # (L, H, dk, D)
    w1 = aug("w1", "b1")                                                        # (L, D+1, F)
    w2 = aug("w2", "b2")                                                        # (L, F+1, D)
    ones = jnp.ones((1, D), jnp.float32)
    vec = jnp.stack([jnp.concatenate(
        [p["bo"], p["g1"], p["be1"], p["g2"], p["be2"], p["a1"] * ones, p["a2"] * ones],
        axis=0) for p in layer_params])                                         # (L, 7, D)
    return (wq, wk, wv, wo, w1, w2, vec)


def _weight_bytes(n_layers, D, F, num_heads, dk):
    return 4 * n_layers * (3 * num_heads * (D + 1) * dk + num_heads * dk * D
                           + (D + 1) * F + (F + 1) * D + 7 * D)


def _pick_batch_block(B, Lv, Lm, D, F, n_layers, num_heads, dk,
                      vmem_budget=40 * 1024 * 1024, max_tb=32):
    """Largest batch block that fits a conservative (v7x) VMEM budget while
    keeping >= 2 grid steps when possible (so both v7x TensorCores get work)."""
    w_bytes = _weight_bytes(n_layers, D, F, num_heads, dk)

    def fits(tb):
        io = 4 * tb * (Lv * D + 2 * Lm * D)                     # in/out blocks
        tmp = 4 * tb * (3 * Lv * D + Lm * (4 * D + max(F, Lv) + Lv))  # rough temporaries
        return w_bytes + 2 * io + tmp < vmem_budget             # x2 for double-buffering

    divisors = [t for t in range(1, min(B, max_tb) + 1) if B % t == 0 and fits(t)]
    if not divisors:
        return 1
    multi = [t for t in divisors if B // t >= 2]
    return max(multi) if multi else max(divisors)


def regressor_forward(rep_visible, rep_mask_token, layer_params, *, num_heads):
    B, Lv, D = rep_visible.shape
    _, Lm, _ = rep_mask_token.shape
    n_layers = len(layer_params)
    F = layer_params[0]["w1"].shape[1]
    assert D % num_heads == 0
    dk = D // num_heads

    weights = _stack_params(layer_params, num_heads)
    TB = _pick_batch_block(B, Lv, Lm, D, F, n_layers, num_heads, dk)
    grid = (B // TB,)

    w_bytes = _weight_bytes(n_layers, D, F, num_heads, dk)
    vmem_limit = min(48 * 1024 * 1024, max(16 * 1024 * 1024, 8 * w_bytes))

    kernel = functools.partial(_regressor_kernel, num_heads=num_heads,
                               n_layers=n_layers, eps=1e-5)

    def full_spec(arr):  # whole array resident, constant block index across the grid
        nd = arr.ndim
        return pl.BlockSpec(arr.shape, lambda b, _nd=nd: (0,) * _nd)

    in_specs = [
        pl.BlockSpec((TB, Lv, D), lambda b: (b, 0, 0)),   # rep_visible block
        pl.BlockSpec((TB, Lm, D), lambda b: (b, 0, 0)),   # rep_mask_token block
    ] + [full_spec(w) for w in weights]

    return pl.pallas_call(
        kernel,
        out_shape=jax.ShapeDtypeStruct((B, Lm, D), rep_mask_token.dtype),
        grid_spec=pltpu.PrefetchScalarGridSpec(
            num_scalar_prefetch=0,
            grid=grid,
            in_specs=in_specs,
            out_specs=pl.BlockSpec((TB, Lm, D), lambda b: (b, 0, 0)),
        ),
        compiler_params=pltpu.CompilerParams(
            dimension_semantics=("parallel",),
            vmem_limit_bytes=vmem_limit,
        ),
    )(rep_visible, rep_mask_token, *weights)


# -----------------------------------------------------------------------------
# Pure-JAX reference (same math) for a correctness check
# -----------------------------------------------------------------------------
def _ref_block(x, t, p, num_heads, eps=1e-5):
    B, Lm, D = t.shape
    dk = D // num_heads
    q = t @ p["wq"] + p["bq"][0]
    k = x @ p["wk"] + p["bk"][0]
    v = x @ p["wv"] + p["bv"][0]
    q = q.reshape(B, Lm, num_heads, dk).transpose(0, 2, 1, 3)
    k = k.reshape(B, -1, num_heads, dk).transpose(0, 2, 1, 3)
    v = v.reshape(B, -1, num_heads, dk).transpose(0, 2, 1, 3)
    s = jnp.einsum("bhqd,bhkd->bhqk", q, k) / jnp.sqrt(jnp.float32(dk))
    a = jax.nn.softmax(s, axis=-1)
    o = jnp.einsum("bhqk,bhkd->bhqd", a, v).transpose(0, 2, 1, 3).reshape(B, Lm, D)
    attn = o @ p["wo"] + p["bo"][0]

    def ln(h, g, b):
        mu = h.mean(-1, keepdims=True)
        var = ((h - mu) ** 2).mean(-1, keepdims=True)
        return (h - mu) * jax.lax.rsqrt(var + eps) * g[0] + b[0]

    h1 = ln(t + p["a1"][0, 0] * attn, p["g1"], p["be1"])
    f = h1 @ p["w1"] + p["b1"][0]
    f = 0.5 * f * (1.0 + jnp.tanh(0.7978845608028654 * (f + 0.044715 * f ** 3)))
    f = f @ p["w2"] + p["b2"][0]
    return ln(h1 + p["a2"][0, 0] * f, p["g2"], p["be2"])


def _ref_forward(x, t, layer_params, num_heads):
    for p in layer_params:
        t = _ref_block(x, t, p, num_heads)
    return t


# -----------------------------------------------------------------------------
# Deterministic parameter construction (shapes follow the PyTorch __init__)
# -----------------------------------------------------------------------------
def make_layer_params(key, d_model, d_ffn):
    ks = jax.random.split(key, 6)
    xavier = lambda k, shape: (jax.random.normal(k, shape, jnp.float32)
                               * jnp.sqrt(2.0 / (shape[0] + shape[1])))
    return {
        "wq": xavier(ks[0], (d_model, d_model)), "bq": jnp.zeros((1, d_model), jnp.float32),
        "wk": xavier(ks[1], (d_model, d_model)), "bk": jnp.zeros((1, d_model), jnp.float32),
        "wv": xavier(ks[2], (d_model, d_model)), "bv": jnp.zeros((1, d_model), jnp.float32),
        "wo": xavier(ks[3], (d_model, d_model)), "bo": jnp.zeros((1, d_model), jnp.float32),
        "a1": jnp.full((1, 1), 0.5, jnp.float32),              # enable_res_parameter scale
        "g1": jnp.ones((1, d_model), jnp.float32), "be1": jnp.zeros((1, d_model), jnp.float32),
        "w1": xavier(ks[4], (d_model, d_ffn)),  "b1": jnp.zeros((1, d_ffn), jnp.float32),
        "w2": xavier(ks[5], (d_ffn, d_model)),  "b2": jnp.zeros((1, d_model), jnp.float32),
        "a2": jnp.full((1, 1), 0.5, jnp.float32),
        "g2": jnp.ones((1, d_model), jnp.float32), "be2": jnp.zeros((1, d_model), jnp.float32),
    }


if __name__ == "__main__":
    # Small shapes consistent with Regressor.forward:
    #   rep_visible: (B, Lv, d_model)   rep_mask_token: (B, Lm, d_model)
    B, Lv, Lm = 2, 16, 8
    d_model, attn_heads, d_ffn, n_layers = 32, 4, 64, 2

    key = jax.random.PRNGKey(0)
    k_vis, k_msk, k_par = jax.random.split(key, 3)
    rep_visible = jax.random.normal(k_vis, (B, Lv, d_model), jnp.float32)
    rep_mask_token = jax.random.normal(k_msk, (B, Lm, d_model), jnp.float32)

    layer_keys = jax.random.split(k_par, n_layers)
    layer_params = [make_layer_params(layer_keys[i], d_model, d_ffn) for i in range(n_layers)]

    out = regressor_forward(rep_visible, rep_mask_token, layer_params,
                            num_heads=attn_heads)
    out = jax.block_until_ready(out)

    ref = _ref_forward(rep_visible, rep_mask_token, layer_params, attn_heads)
    assert out.shape == (B, Lm, d_model)
    # tolerance covers pl.reciprocal(approx=True) in the softmax denominator
    assert jnp.allclose(out, ref, atol=2e-3, rtol=2e-3), float(jnp.max(jnp.abs(out - ref)))

    print("KERNEL_OK")
</pallas_src>

<mosaic_0001>
module attributes {stable_mosaic.version = 11 : i64} {
  func.func @_regressor_kernel(%arg0: i32, %arg1: memref<1x16x32xf32, #tpu.memory_space<vmem>>, %arg2: memref<1x8x32xf32, #tpu.memory_space<vmem>>, %arg3: memref<2x4x33x8xf32, #tpu.memory_space<vmem>>, %arg4: memref<2x4x33x8xf32, #tpu.memory_space<vmem>>, %arg5: memref<2x4x33x8xf32, #tpu.memory_space<vmem>>, %arg6: memref<2x4x8x32xf32, #tpu.memory_space<vmem>>, %arg7: memref<2x33x64xf32, #tpu.memory_space<vmem>>, %arg8: memref<2x65x32xf32, #tpu.memory_space<vmem>>, %arg9: memref<2x7x32xf32, #tpu.memory_space<vmem>>, %arg10: memref<1x8x32xf32, #tpu.memory_space<vmem>>) attributes {dimension_semantics = [#tpu.dimension_semantics<parallel>], iteration_bounds = array<i64: 2>, scalar_prefetch = 0 : i64, scratch_operands = 0 : i64, tpu.core_type = #tpu.core_type<tc>, window_params = [{transform_indices = @transform_0, window_bounds = array<i64: 1, 16, 32>}, {transform_indices = @transform_1, window_bounds = array<i64: 1, 8, 32>}, {pipeline_mode = #tpu.pipeline_mode<synchronous>, transform_indices = @transform_2, window_bounds = array<i64: 2, 4, 33, 8>}, {pipeline_mode = #tpu.pipeline_mode<synchronous>, transform_indices = @transform_3, window_bounds = array<i64: 2, 4, 33, 8>}, {pipeline_mode = #tpu.pipeline_mode<synchronous>, transform_indices = @transform_4, window_bounds = array<i64: 2, 4, 33, 8>}, {pipeline_mode = #tpu.pipeline_mode<synchronous>, transform_indices = @transform_5, window_bounds = array<i64: 2, 4, 8, 32>}, {pipeline_mode = #tpu.pipeline_mode<synchronous>, transform_indices = @transform_6, window_bounds = array<i64: 2, 33, 64>}, {pipeline_mode = #tpu.pipeline_mode<synchronous>, transform_indices = @transform_7, window_bounds = array<i64: 2, 65, 32>}, {pipeline_mode = #tpu.pipeline_mode<synchronous>, transform_indices = @transform_8, window_bounds = array<i64: 2, 7, 32>}, {transform_indices = @transform_9, window_bounds = array<i64: 1, 8, 32>}]} {
    %c0 = arith.constant 0 : index
    %c0_0 = arith.constant 0 : index
    %c0_1 = arith.constant 0 : index
    %0 = vector.load %arg1[%c0, %c0_0, %c0_1] : memref<1x16x32xf32, #tpu.memory_space<vmem>>, vector<1x16x32xf32>
    %1 = vector.shape_cast %0 : vector<1x16x32xf32> to vector<16x32xf32>
    %c0_2 = arith.constant 0 : index
    %c0_3 = arith.constant 0 : index
    %c0_4 = arith.constant 0 : index
    %2 = vector.load %arg2[%c0_2, %c0_3, %c0_4] : memref<1x8x32xf32, #tpu.memory_space<vmem>>, vector<1x8x32xf32>
    %3 = vector.shape_cast %2 : vector<1x8x32xf32> to vector<8x32xf32>
    %c0_5 = arith.constant 0 : index
    %c0_6 = arith.constant 0 : index
    %c0_7 = arith.constant 0 : index
    %4 = vector.load %arg9[%c0_5, %c0_6, %c0_7] : memref<2x7x32xf32, #tpu.memory_space<vmem>>, vector<1x7x32xf32>
    %5 = vector.shape_cast %4 : vector<1x7x32xf32> to vector<7x32xf32>
    %6 = vector.extract_strided_slice %5 {offsets = [0, 0], sizes = [1, 32], strides = [1, 1]} : vector<7x32xf32> to vector<1x32xf32>
    %7 = vector.shape_cast %6 : vector<1x32xf32> to vector<32xf32>
    %8 = vector.extract_strided_slice %5 {offsets = [1, 0], sizes = [1, 32], strides = [1, 1]} : vector<7x32xf32> to vector<1x32xf32>
    %9 = vector.shape_cast %8 : vector<1x32xf32> to vector<32xf32>
    %10 = vector.extract_strided_slice %5 {offsets = [2, 0], sizes = [1, 32], strides = [1, 1]} : vector<7x32xf32> to vector<1x32xf32>
    %11 = vector.shape_cast %10 : vector<1x32xf32> to vector<32xf32>
    %12 = vector.extract_strided_slice %5 {offsets = [3, 0], sizes = [1, 32], strides = [1, 1]} : vector<7x32xf32> to vector<1x32xf32>
    %13 = vector.shape_cast %12 : vector<1x32xf32> to vector<32xf32>
    %14 = vector.extract_strided_slice %5 {offsets = [4, 0], sizes = [1, 32], strides = [1, 1]} : vector<7x32xf32> to vector<1x32xf32>
    %15 = vector.shape_cast %14 : vector<1x32xf32> to vector<32xf32>
    %16 = vector.extract_strided_slice %5 {offsets = [5, 0], sizes = [1, 32], strides = [1, 1]} : vector<7x32xf32> to vector<1x32xf32>
    %17 = vector.shape_cast %16 : vector<1x32xf32> to vector<32xf32>
    %18 = vector.extract_strided_slice %5 {offsets = [6, 0], sizes = [1, 32], strides = [1, 1]} : vector<7x32xf32> to vector<1x32xf32>
    %19 = vector.shape_cast %18 : vector<1x32xf32> to vector<32xf32>
    %cst = arith.constant 0.000000e+00 : f32
    %20 = vector.broadcast %cst : f32 to vector<8x32xf32>
    %c0_8 = arith.constant 0 : index
    %c0_9 = arith.constant 0 : index
    %c0_10 = arith.constant 0 : index
    %c0_11 = arith.constant 0 : index
    %21 = vector.load %arg3[%c0_8, %c0_9, %c0_10, %c0_11] : memref<2x4x33x8xf32, #tpu.memory_space<vmem>>, vector<1x1x33x8xf32>
    %22 = vector.shape_cast %21 : vector<1x1x33x8xf32> to vector<33x8xf32>
    %c0_12 = arith.constant 0 : index
    %c0_13 = arith.constant 0 : index
    %c0_14 = arith.constant 0 : index
    %c0_15 = arith.constant 0 : index
    %23 = vector.load %arg4[%c0_12, %c0_13, %c0_14, %c0_15] : memref<2x4x33x8xf32, #tpu.memory_space<vmem>>, vector<1x1x33x8xf32>
    %24 = vector.shape_cast %23 : vector<1x1x33x8xf32> to vector<33x8xf32>
    %c0_16 = arith.constant 0 : index
    %c0_17 = arith.constant 0 : index
    %c0_18 = arith.constant 0 : index
    %c0_19 = arith.constant 0 : index
    %25 = vector.load %arg5[%c0_16, %c0_17, %c0_18, %c0_19] : memref<2x4x33x8xf32, #tpu.memory_space<vmem>>, vector<1x1x33x8xf32>
    %26 = vector.shape_cast %25 : vector<1x1x33x8xf32> to vector<33x8xf32>
    %27 = vector.extract_strided_slice %22 {offsets = [0, 0], sizes = [32, 8], strides = [1, 1]} : vector<33x8xf32> to vector<32x8xf32>
    %cst_20 = arith.constant dense<0.000000e+00> : vector<8x8xf32>
    %28 = tpu.matmul %3, %27, %cst_20 {dimension_numbers = #tpu.dot_dimension_numbers<[1], [0], [0], [1], [0, 0, 1, 1], [], []>} : vector<8x32xf32>, vector<32x8xf32>, vector<8x8xf32> -> vector<8x8xf32>
    %29 = vector.extract_strided_slice %22 {offsets = [32, 0], sizes = [1, 8], strides = [1, 1]} : vector<33x8xf32> to vector<1x8xf32>
    %30 = vector.shape_cast %29 : vector<1x8xf32> to vector<8xf32>
    %31 = vector.shape_cast %30 : vector<8xf32> to vector<1x8xf32>
    %32 = vector.broadcast %31 : vector<1x8xf32> to vector<8x8xf32>
    %33 = arith.addf %28, %32 : vector<8x8xf32>
    %34 = vector.extract_strided_slice %24 {offsets = [0, 0], sizes = [32, 8], strides = [1, 1]} : vector<33x8xf32> to vector<32x8xf32>
    %cst_21 = arith.constant dense<0.000000e+00> : vector<16x8xf32>
    %35 = tpu.matmul %1, %34, %cst_21 {dimension_numbers = #tpu.dot_dimension_numbers<[1], [0], [0], [1], [0, 0, 1, 1], [], []>} : vector<16x32xf32>, vector<32x8xf32>, vector<16x8xf32> -> vector<16x8xf32>
    %36 = vector.extract_strided_slice %24 {offsets = [32, 0], sizes = [1, 8], strides = [1, 1]} : vector<33x8xf32> to vector<1x8xf32>
    %37 = vector.shape_cast %36 : vector<1x8xf32> to vector<8xf32>
    %38 = vector.shape_cast %37 : vector<8xf32> to vector<1x8xf32>
    %39 = vector.broadcast %38 : vector<1x8xf32> to vector<16x8xf32>
    %40 = arith.addf %35, %39 : vector<16x8xf32>
    %41 = vector.extract_strided_slice %26 {offsets = [0, 0], sizes = [32, 8], strides = [1, 1]} : vector<33x8xf32> to vector<32x8xf32>
    %cst_22 = arith.constant dense<0.000000e+00> : vector<16x8xf32>
    %42 = tpu.matmul %1, %41, %cst_22 {dimension_numbers = #tpu.dot_dimension_numbers<[1], [0], [0], [1], [0, 0, 1, 1], [], []>} : vector<16x32xf32>, vector<32x8xf32>, vector<16x8xf32> -> vector<16x8xf32>
    %43 = vector.extract_strided_slice %26 {offsets = [32, 0], sizes = [1, 8], strides = [1, 1]} : vector<33x8xf32> to vector<1x8xf32>
    %44 = vector.shape_cast %43 : vector<1x8xf32> to vector<8xf32>
    %45 = vector.shape_cast %44 : vector<8xf32> to vector<1x8xf32>
    %46 = vector.broadcast %45 : vector<1x8xf32> to vector<16x8xf32>
    %47 = arith.addf %42, %46 : vector<16x8xf32>
    %48 = vector.shape_cast %33 : vector<8x8xf32> to vector<1x8x8xf32>
    %49 = vector.shape_cast %40 : vector<16x8xf32> to vector<1x16x8xf32>
    %50 = vector.shape_cast %47 : vector<16x8xf32> to vector<1x16x8xf32>
    "tpu.trace_start"() <{level = 10 : i32, message = "bqd,bkd->bqk"}> : () -> ()
    %cst_23 = arith.constant dense<0.000000e+00> : vector<1x8x16xf32>
    %51 = tpu.matmul %48, %49, %cst_23 {dimension_numbers = #tpu.dot_dimension_numbers<[2], [2], [1], [1], [0, 0, 0, 1, 1, 1], [0], [0]>} : vector<1x8x8xf32>, vector<1x16x8xf32>, vector<1x8x16xf32> -> vector<1x8x16xf32>
    "tpu.trace_stop"() : () -> ()
    %cst_24 = arith.constant 0.353553385 : f32
    %52 = vector.broadcast %cst_24 : f32 to vector<1x8x16xf32>
    %53 = arith.mulf %51, %52 : vector<1x8x16xf32>
    %cst_25 = arith.constant dense<0xFF800000> : vector<1x8xf32>
    %54 = vector.multi_reduction <maximumf>, %53, %cst_25 [2] : vector<1x8x16xf32> to vector<1x8xf32>
    %55 = vector.shape_cast %54 : vector<1x8xf32> to vector<1x8x1xf32>
    %56 = vector.broadcast %55 : vector<1x8x1xf32> to vector<1x8x16xf32>
    %57 = arith.subf %53, %56 : vector<1x8x16xf32>
    %58 = math.exp %57 : vector<1x8x16xf32>
    %cst_26 = arith.constant dense<0.000000e+00> : vector<1x8xf32>
    %59 = vector.multi_reduction <add>, %58, %cst_26 [2] : vector<1x8x16xf32> to vector<1x8xf32>
    %60 = vector.shape_cast %59 : vector<1x8xf32> to vector<1x8x1xf32>
    %61 = tpu.reciprocal %60 {approx = true} : vector<1x8x1xf32> -> vector<1x8x1xf32>
    %62 = vector.broadcast %61 : vector<1x8x1xf32> to vector<1x8x16xf32>
    %63 = arith.mulf %58, %62 : vector<1x8x16xf32>
    "tpu.trace_start"() <{level = 10 : i32, message = "bqk,bkd->bqd"}> : () -> ()
    %cst_27 = arith.constant dense<0.000000e+00> : vector<1x8x8xf32>
    %64 = tpu.matmul %63, %50, %cst_27 {dimension_numbers = #tpu.dot_dimension_numbers<[2], [1], [1], [2], [0, 0, 0, 1, 1, 2], [0], [0]>} : vector<1x8x16xf32>, vector<1x16x8xf32>, vector<1x8x8xf32> -> vector<1x8x8xf32>
    "tpu.trace_stop"() : () -> ()
    %65 = vector.shape_cast %64 : vector<1x8x8xf32> to vector<8x8xf32>
    %c0_28 = arith.constant 0 : index
    %c0_29 = arith.constant 0 : index
    %c0_30 = arith.constant 0 : index
    %c0_31 = arith.constant 0 : index
    %66 = vector.load %arg6[%c0_28, %c0_29, %c0_30, %c0_31] : memref<2x4x8x32xf32, #tpu.memory_space<vmem>>, vector<1x1x8x32xf32>
    %67 = vector.shape_cast %66 : vector<1x1x8x32xf32> to vector<8x32xf32>
    %cst_32 = arith.constant dense<0.000000e+00> : vector<8x32xf32>
    %68 = tpu.matmul %65, %67, %cst_32 {dimension_numbers = #tpu.dot_dimension_numbers<[1], [0], [0], [1], [0, 0, 1, 1], [], []>} : vector<8x8xf32>, vector<8x32xf32>, vector<8x32xf32> -> vector<8x32xf32>
    %69 = arith.addf %20, %68 : vector<8x32xf32>
    %c0_33 = arith.constant 0 : index
    %c1 = arith.constant 1 : index
    %c0_34 = arith.constant 0 : index
    %c0_35 = arith.constant 0 : index
    %70 = vector.load %arg3[%c0_33, %c1, %c0_34, %c0_35] : memref<2x4x33x8xf32, #tpu.memory_space<vmem>>, vector<1x1x33x8xf32>
    %71 = vector.shape_cast %70 : vector<1x1x33x8xf32> to vector<33x8xf32>
    %c0_36 = arith.constant 0 : index
    %c1_37 = arith.constant 1 : index
    %c0_38 = arith.constant 0 : index
    %c0_39 = arith.constant 0 : index
    %72 = vector.load %arg4[%c0_36, %c1_37, %c0_38, %c0_39] : memref<2x4x33x8xf32, #tpu.memory_space<vmem>>, vector<1x1x33x8xf32>
    %73 = vector.shape_cast %72 : vector<1x1x33x8xf32> to vector<33x8xf32>
    %c0_40 = arith.constant 0 : index
    %c1_41 = arith.constant 1 : index
    %c0_42 = arith.constant 0 : index
    %c0_43 = arith.constant 0 : index
    %74 = vector.load %arg5[%c0_40, %c1_41, %c0_42, %c0_43] : memref<2x4x33x8xf32, #tpu.memory_space<vmem>>, vector<1x1x33x8xf32>
    %75 = vector.shape_cast %74 : vector<1x1x33x8xf32> to vector<33x8xf32>
    %76 = vector.extract_strided_slice %71 {offsets = [0, 0], sizes = [32, 8], strides = [1, 1]} : vector<33x8xf32> to vector<32x8xf32>
    %cst_44 = arith.constant dense<0.000000e+00> : vector<8x8xf32>
    %77 = tpu.matmul %3, %76, %cst_44 {dimension_numbers = #tpu.dot_dimension_numbers<[1], [0], [0], [1], [0, 0, 1, 1], [], []>} : vector<8x32xf32>, vector<32x8xf32>, vector<8x8xf32> -> vector<8x8xf32>
    %78 = vector.extract_strided_slice %71 {offsets = [32, 0], sizes = [1, 8], strides = [1, 1]} : vector<33x8xf32> to vector<1x8xf32>
    %79 = vector.shape_cast %78 : vector<1x8xf32> to vector<8xf32>
    %80 = vector.shape_cast %79 : vector<8xf32> to vector<1x8xf32>
    %81 = vector.broadcast %80 : vector<1x8xf32> to vector<8x8xf32>
    %82 = arith.addf %77, %81 : vector<8x8xf32>
    %83 = vector.extract_strided_slice %73 {offsets = [0, 0], sizes = [32, 8], strides = [1, 1]} : vector<33x8xf32> to vector<32x8xf32>
    %cst_45 = arith.constant dense<0.000000e+00> : vector<16x8xf32>
    %84 = tpu.matmul %1, %83, %cst_45 {dimension_numbers = #tpu.dot_dimension_numbers<[1], [0], [0], [1], [0, 0, 1, 1], [], []>} : vector<16x32xf32>, vector<32x8xf32>, vector<16x8xf32> -> vector<16x8xf32>
    %85 = vector.extract_strided_slice %73 {offsets = [32, 0], sizes = [1, 8], strides = [1, 1]} : vector<33x8xf32> to vector<1x8xf32>
    %86 = vector.shape_cast %85 : vector<1x8xf32> to vector<8xf32>
    %87 = vector.shape_cast %86 : vector<8xf32> to vector<1x8xf32>
    %88 = vector.broadcast %87 : vector<1x8xf32> to vector<16x8xf32>
    %89 = arith.addf %84, %88 : vector<16x8xf32>
    %90 = vector.extract_strided_slice %75 {offsets = [0, 0], sizes = [32, 8], strides = [1, 1]} : vector<33x8xf32> to vector<32x8xf32>
    %cst_46 = arith.constant dense<0.000000e+00> : vector<16x8xf32>
    %91 = tpu.matmul %1, %90, %cst_46 {dimension_numbers = #tpu.dot_dimension_numbers<[1], [0], [0], [1], [0, 0, 1, 1], [], []>} : vector<16x32xf32>, vector<32x8xf32>, vector<16x8xf32> -> vector<16x8xf32>
    %92 = vector.extract_strided_slice %75 {offsets = [32, 0], sizes = [1, 8], strides = [1, 1]} : vector<33x8xf32> to vector<1x8xf32>
    %93 = vector.shape_cast %92 : vector<1x8xf32> to vector<8xf32>
    %94 = vector.shape_cast %93 : vector<8xf32> to vector<1x8xf32>
    %95 = vector.broadcast %94 : vector<1x8xf32> to vector<16x8xf32>
    %96 = arith.addf %91, %95 : vector<16x8xf32>
    %97 = vector.shape_cast %82 : vector<8x8xf32> to vector<1x8x8xf32>
    %98 = vector.shape_cast %89 : vector<16x8xf32> to vector<1x16x8xf32>
    %99 = vector.shape_cast %96 : vector<16x8xf32> to vector<1x16x8xf32>
    "tpu.trace_start"() <{level = 10 : i32, message = "bqd,bkd->bqk"}> : () -> ()
    %cst_47 = arith.constant dense<0.000000e+00> : vector<1x8x16xf32>
    %100 = tpu.matmul %97, %98, %cst_47 {dimension_numbers = #tpu.dot_dimension_numbers<[2], [2], [1], [1], [0, 0, 0, 1, 1, 1], [0], [0]>} : vector<1x8x8xf32>, vector<1x16x8xf32>, vector<1x8x16xf32> -> vector<1x8x16xf32>
    "tpu.trace_stop"() : () -> ()
    %cst_48 = arith.constant 0.353553385 : f32
    %101 = vector.broadcast %cst_48 : f32 to vector<1x8x16xf32>
    %102 = arith.mulf %100, %101 : vector<1x8x16xf32>
    %cst_49 = arith.constant dense<0xFF800000> : vector<1x8xf32>
    %103 = vector.multi_reduction <maximumf>, %102, %cst_49 [2] : vector<1x8x16xf32> to vector<1x8xf32>
    %104 = vector.shape_cast %103 : vector<1x8xf32> to vector<1x8x1xf32>
    %105 = vector.broadcast %104 : vector<1x8x1xf32> to vector<1x8x16xf32>
    %106 = arith.subf %102, %105 : vector<1x8x16xf32>
    %107 = math.exp %106 : vector<1x8x16xf32>
    %cst_50 = arith.constant dense<0.000000e+00> : vector<1x8xf32>
    %108 = vector.multi_reduction <add>, %107, %cst_50 [2] : vector<1x8x16xf32> to vector<1x8xf32>
    %109 = vector.shape_cast %108 : vector<1x8xf32> to vector<1x8x1xf32>
    %110 = tpu.reciprocal %109 {approx = true} : vector<1x8x1xf32> -> vector<1x8x1xf32>
    %111 = vector.broadcast %110 : vector<1x8x1xf32> to vector<1x8x16xf32>
    %112 = arith.mulf %107, %111 : vector<1x8x16xf32>
    "tpu.trace_start"() <{level = 10 : i32, message = "bqk,bkd->bqd"}> : () -> ()
    %cst_51 = arith.constant dense<0.000000e+00> : vector<1x8x8xf32>
    %113 = tpu.matmul %112, %99, %cst_51 {dimension_numbers = #tpu.dot_dimension_numbers<[2], [1], [1], [2], [0, 0, 0, 1, 1, 2], [0], [0]>} : vector<1x8x16xf32>, vector<1x16x8xf32>, vector<1x8x8xf32> -> vector<1x8x8xf32>
    "tpu.trace_stop"() : () -> ()
    %114 = vector.shape_cast %113 : vector<1x8x8xf32> to vector<8x8xf32>
    %c0_52 = arith.constant 0 : index
    %c1_53 = arith.constant 1 : index
    %c0_54 = arith.constant 0 : index
    %c0_55 = arith.constant 0 : index
    %115 = vector.load %arg6[%c0_52, %c1_53, %c0_54, %c0_55] : memref<2x4x8x32xf32, #tpu.memory_space<vmem>>, vector<1x1x8x32xf32>
    %116 = vector.shape_cast %115 : vector<1x1x8x32xf32> to vector<8x32xf32>
    %cst_56 = arith.constant dense<0.000000e+00> : vector<8x32xf32>
    %117 = tpu.matmul %114, %116, %cst_56 {dimension_numbers = #tpu.dot_dimension_numbers<[1], [0], [0], [1], [0, 0, 1, 1], [], []>} : vector<8x8xf32>, vector<8x32xf32>, vector<8x32xf32> -> vector<8x32xf32>
    %118 = arith.addf %69, %117 : vector<8x32xf32>
    %c0_57 = arith.constant 0 : index
    %c2 = arith.constant 2 : index
    %c0_58 = arith.constant 0 : index
    %c0_59 = arith.constant 0 : index
    %119 = vector.load %arg3[%c0_57, %c2, %c0_58, %c0_59] : memref<2x4x33x8xf32, #tpu.memory_space<vmem>>, vector<1x1x33x8xf32>
    %120 = vector.shape_cast %119 : vector<1x1x33x8xf32> to vector<33x8xf32>
    %c0_60 = arith.constant 0 : index
    %c2_61 = arith.constant 2 : index
    %c0_62 = arith.constant 0 : index
    %c0_63 = arith.constant 0 : index
    %121 = vector.load %arg4[%c0_60, %c2_61, %c0_62, %c0_63] : memref<2x4x33x8xf32, #tpu.memory_space<vmem>>, vector<1x1x33x8xf32>
    %122 = vector.shape_cast %121 : vector<1x1x33x8xf32> to vector<33x8xf32>
    %c0_64 = arith.constant 0 : index
    %c2_65 = arith.constant 2 : index
    %c0_66 = arith.constant 0 : index
    %c0_67 = arith.constant 0 : index
    %123 = vector.load %arg5[%c0_64, %c2_65, %c0_66, %c0_67] : memref<2x4x33x8xf32, #tpu.memory_space<vmem>>, vector<1x1x33x8xf32>
    %124 = vector.shape_cast %123 : vector<1x1x33x8xf32> to vector<33x8xf32>
    %125 = vector.extract_strided_slice %120 {offsets = [0, 0], sizes = [32, 8], strides = [1, 1]} : vector<33x8xf32> to vector<32x8xf32>
    %cst_68 = arith.constant dense<0.000000e+00> : vector<8x8xf32>
    %126 = tpu.matmul %3, %125, %cst_68 {dimension_numbers = #tpu.dot_dimension_numbers<[1], [0], [0], [1], [0, 0, 1, 1], [], []>} : vector<8x32xf32>, vector<32x8xf32>, vector<8x8xf32> -> vector<8x8xf32>
    %127 = vector.extract_strided_slice %120 {offsets = [32, 0], sizes = [1, 8], strides = [1, 1]} : vector<33x8xf32> to vector<1x8xf32>
    %128 = vector.shape_cast %127 : vector<1x8xf32> to vector<8xf32>
    %129 = vector.shape_cast %128 : vector<8xf32> to vector<1x8xf32>
    %130 = vector.broadcast %129 : vector<1x8xf32> to vector<8x8xf32>
    %131 = arith.addf %126, %130 : vector<8x8xf32>
    %132 = vector.extract_strided_slice %122 {offsets = [0, 0], sizes = [32, 8], strides = [1, 1]} : vector<33x8xf32> to vector<32x8xf32>
    %cst_69 = arith.constant dense<0.000000e+00> : vector<16x8xf32>
    %133 = tpu.matmul %1, %132, %cst_69 {dimension_numbers = #tpu.dot_dimension_numbers<[1], [0], [0], [1], [0, 0, 1, 1], [], []>} : vector<16x32xf32>, vector<32x8xf32>, vector<16x8xf32> -> vector<16x8xf32>
    %134 = vector.extract_strided_slice %122 {offsets = [32, 0], sizes = [1, 8], strides = [1, 1]} : vector<33x8xf32> to vector<1x8xf32>
    %135 = vector.shape_cast %134 : vector<1x8xf32> to vector<8xf32>
    %136 = vector.shape_cast %135 : vector<8xf32> to vector<1x8xf32>
    %137 = vector.broadcast %136 : vector<1x8xf32> to vector<16x8xf32>
    %138 = arith.addf %133, %137 : vector<16x8xf32>
    %139 = vector.extract_strided_slice %124 {offsets = [0, 0], sizes = [32, 8], strides = [1, 1]} : vector<33x8xf32> to vector<32x8xf32>
    %cst_70 = arith.constant dense<0.000000e+00> : vector<16x8xf32>
    %140 = tpu.matmul %1, %139, %cst_70 {dimension_numbers = #tpu.dot_dimension_numbers<[1], [0], [0], [1], [0, 0, 1, 1], [], []>} : vector<16x32xf32>, vector<32x8xf32>, vector<16x8xf32> -> vector<16x8xf32>
    %141 = vector.extract_strided_slice %124 {offsets = [32, 0], sizes = [1, 8], strides = [1, 1]} : vector<33x8xf32> to vector<1x8xf32>
    %142 = vector.shape_cast %141 : vector<1x8xf32> to vector<8xf32>
    %143 = vector.shape_cast %142 : vector<8xf32> to vector<1x8xf32>
    %144 = vector.broadcast %143 : vector<1x8xf32> to vector<16x8xf32>
    %145 = arith.addf %140, %144 : vector<16x8xf32>
    %146 = vector.shape_cast %131 : vector<8x8xf32> to vector<1x8x8xf32>
    %147 = vector.shape_cast %138 : vector<16x8xf32> to vector<1x16x8xf32>
    %148 = vector.shape_cast %145 : vector<16x8xf32> to vector<1x16x8xf32>
    "tpu.trace_start"() <{level = 10 : i32, message = "bqd,bkd->bqk"}> : () -> ()
    %cst_71 = arith.constant dense<0.000000e+00> : vector<1x8x16xf32>
    %149 = tpu.matmul %146, %147, %cst_71 {dimension_numbers = #tpu.dot_dimension_numbers<[2], [2], [1], [1], [0, 0, 0, 1, 1, 1], [0], [0]>} : vector<1x8x8xf32>, vector<1x16x8xf32>, vector<1x8x16xf32> -> vector<1x8x16xf32>
    "tpu.trace_stop"() : () -> ()
    %cst_72 = arith.constant 0.353553385 : f32
    %150 = vector.broadcast %cst_72 : f32 to vector<1x8x16xf32>
    %151 = arith.mulf %149, %150 : vector<1x8x16xf32>
    %cst_73 = arith.constant dense<0xFF800000> : vector<1x8xf32>
    %152 = vector.multi_reduction <maximumf>, %151, %cst_73 [2] : vector<1x8x16xf32> to vector<1x8xf32>
    %153 = vector.shape_cast %152 : vector<1x8xf32> to vector<1x8x1xf32>
    %154 = vector.broadcast %153 : vector<1x8x1xf32> to vector<1x8x16xf32>
    %155 = arith.subf %151, %154 : vector<1x8x16xf32>
    %156 = math.exp %155 : vector<1x8x16xf32>
    %cst_74 = arith.constant dense<0.000000e+00> : vector<1x8xf32>
    %157 = vector.multi_reduction <add>, %156, %cst_74 [2] : vector<1x8x16xf32> to vector<1x8xf32>
    %158 = vector.shape_cast %157 : vector<1x8xf32> to vector<1x8x1xf32>
    %159 = tpu.reciprocal %158 {approx = true} : vector<1x8x1xf32> -> vector<1x8x1xf32>
    %160 = vector.broadcast %159 : vector<1x8x1xf32> to vector<1x8x16xf32>
    %161 = arith.mulf %156, %160 : vector<1x8x16xf32>
    "tpu.trace_start"() <{level = 10 : i32, message = "bqk,bkd->bqd"}> : () -> ()
    %cst_75 = arith.constant dense<0.000000e+00> : vector<1x8x8xf32>
    %162 = tpu.matmul %161, %148, %cst_75 {dimension_numbers = #tpu.dot_dimension_numbers<[2], [1], [1], [2], [0, 0, 0, 1, 1, 2], [0], [0]>} : vector<1x8x16xf32>, vector<1x16x8xf32>, vector<1x8x8xf32> -> vector<1x8x8xf32>
    "tpu.trace_stop"() : () -> ()
    %163 = vector.shape_cast %162 : vector<1x8x8xf32> to vector<8x8xf32>
    %c0_76 = arith.constant 0 : index
    %c2_77 = arith.constant 2 : index
    %c0_78 = arith.constant 0 : index
    %c0_79 = arith.constant 0 : index
    %164 = vector.load %arg6[%c0_76, %c2_77, %c0_78, %c0_79] : memref<2x4x8x32xf32, #tpu.memory_space<vmem>>, vector<1x1x8x32xf32>
    %165 = vector.shape_cast %164 : vector<1x1x8x32xf32> to vector<8x32xf32>
    %cst_80 = arith.constant dense<0.000000e+00> : vector<8x32xf32>
    %166 = tpu.matmul %163, %165, %cst_80 {dimension_numbers = #tpu.dot_dimension_numbers<[1], [0], [0], [1], [0, 0, 1, 1], [], []>} : vector<8x8xf32>, vector<8x32xf32>, vector<8x32xf32> -> vector<8x32xf32>
    %167 = arith.addf %118, %166 : vector<8x32xf32>
    %c0_81 = arith.constant 0 : index
    %c3 = arith.constant 3 : index
    %c0_82 = arith.constant 0 : index
    %c0_83 = arith.constant 0 : index
    %168 = vector.load %arg3[%c0_81, %c3, %c0_82, %c0_83] : memref<2x4x33x8xf32, #tpu.memory_space<vmem>>, vector<1x1x33x8xf32>
    %169 = vector.shape_cast %168 : vector<1x1x33x8xf32> to vector<33x8xf32>
    %c0_84 = arith.constant 0 : index
    %c3_85 = arith.constant 3 : index
    %c0_86 = arith.constant 0 : index
    %c0_87 = arith.constant 0 : index
    %170 = vector.load %arg4[%c0_84, %c3_85, %c0_86, %c0_87] : memref<2x4x33x8xf32, #tpu.memory_space<vmem>>, vector<1x1x33x8xf32>
    %171 = vector.shape_cast %170 : vector<1x1x33x8xf32> to vector<33x8xf32>
    %c0_88 = arith.constant 0 : index
    %c3_89 = arith.constant 3 : index
    %c0_90 = arith.constant 0 : index
    %c0_91 = arith.constant 0 : index
    %172 = vector.load %arg5[%c0_88, %c3_89, %c0_90, %c0_91] : memref<2x4x33x8xf32, #tpu.memory_space<vmem>>, vector<1x1x33x8xf32>
    %173 = vector.shape_cast %172 : vector<1x1x33x8xf32> to vector<33x8xf32>
    %174 = vector.extract_strided_slice %169 {offsets = [0, 0], sizes = [32, 8], strides = [1, 1]} : vector<33x8xf32> to vector<32x8xf32>
    %cst_92 = arith.constant dense<0.000000e+00> : vector<8x8xf32>
    %175 = tpu.matmul %3, %174, %cst_92 {dimension_numbers = #tpu.dot_dimension_numbers<[1], [0], [0], [1], [0, 0, 1, 1], [], []>} : vector<8x32xf32>, vector<32x8xf32>, vector<8x8xf32> -> vector<8x8xf32>
    %176 = vector.extract_strided_slice %169 {offsets = [32, 0], sizes = [1, 8], strides = [1, 1]} : vector<33x8xf32> to vector<1x8xf32>
    %177 = vector.shape_cast %176 : vector<1x8xf32> to vector<8xf32>
    %178 = vector.shape_cast %177 : vector<8xf32> to vector<1x8xf32>
    %179 = vector.broadcast %178 : vector<1x8xf32> to vector<8x8xf32>
    %180 = arith.addf %175, %179 : vector<8x8xf32>
    %181 = vector.extract_strided_slice %171 {offsets = [0, 0], sizes = [32, 8], strides = [1, 1]} : vector<33x8xf32> to vector<32x8xf32>
    %cst_93 = arith.constant dense<0.000000e+00> : vector<16x8xf32>
    %182 = tpu.matmul %1, %181, %cst_93 {dimension_numbers = #tpu.dot_dimension_numbers<[1], [0], [0], [1], [0, 0, 1, 1], [], []>} : vector<16x32xf32>, vector<32x8xf32>, vector<16x8xf32> -> vector<16x8xf32>
    %183 = vector.extract_strided_slice %171 {offsets = [32, 0], sizes = [1, 8], strides = [1, 1]} : vector<33x8xf32> to vector<1x8xf32>
    %184 = vector.shape_cast %183 : vector<1x8xf32> to vector<8xf32>
    %185 = vector.shape_cast %184 : vector<8xf32> to vector<1x8xf32>
    %186 = vector.broadcast %185 : vector<1x8xf32> to vector<16x8xf32>
    %187 = arith.addf %182, %186 : vector<16x8xf32>
    %188 = vector.extract_strided_slice %173 {offsets = [0, 0], sizes = [32, 8], strides = [1, 1]} : vector<33x8xf32> to vector<32x8xf32>
    %cst_94 = arith.constant dense<0.000000e+00> : vector<16x8xf32>
    %189 = tpu.matmul %1, %188, %cst_94 {dimension_numbers = #tpu.dot_dimension_numbers<[1], [0], [0], [1], [0, 0, 1, 1], [], []>} : vector<16x32xf32>, vector<32x8xf32>, vector<16x8xf32> -> vector<16x8xf32>
    %190 = vector.extract_strided_slice %173 {offsets = [32, 0], sizes = [1, 8], strides = [1, 1]} : vector<33x8xf32> to vector<1x8xf32>
    %191 = vector.shape_cast %190 : vector<1x8xf32> to vector<8xf32>
    %192 = vector.shape_cast %191 : vector<8xf32> to vector<1x8xf32>
    %193 = vector.broadcast %192 : vector<1x8xf32> to vector<16x8xf32>
    %194 = arith.addf %189, %193 : vector<16x8xf32>
    %195 = vector.shape_cast %180 : vector<8x8xf32> to vector<1x8x8xf32>
    %196 = vector.shape_cast %187 : vector<16x8xf32> to vector<1x16x8xf32>
    %197 = vector.shape_cast %194 : vector<16x8xf32> to vector<1x16x8xf32>
    "tpu.trace_start"() <{level = 10 : i32, message = "bqd,bkd->bqk"}> : () -> ()
    %cst_95 = arith.constant dense<0.000000e+00> : vector<1x8x16xf32>
    %198 = tpu.matmul %195, %196, %cst_95 {dimension_numbers = #tpu.dot_dimension_numbers<[2], [2], [1], [1], [0, 0, 0, 1, 1, 1], [0], [0]>} : vector<1x8x8xf32>, vector<1x16x8xf32>, vector<1x8x16xf32> -> vector<1x8x16xf32>
    "tpu.trace_stop"() : () -> ()
    %cst_96 = arith.constant 0.353553385 : f32
    %199 = vector.broadcast %cst_96 : f32 to vector<1x8x16xf32>
    %200 = arith.mulf %198, %199 : vector<1x8x16xf32>
    %cst_97 = arith.constant dense<0xFF800000> : vector<1x8xf32>
    %201 = vector.multi_reduction <maximumf>, %200, %cst_97 [2] : vector<1x8x16xf32> to vector<1x8xf32>
    %202 = vector.shape_cast %201 : vector<1x8xf32> to vector<1x8x1xf32>
    %203 = vector.broadcast %202 : vector<1x8x1xf32> to vector<1x8x16xf32>
    %204 = arith.subf %200, %203 : vector<1x8x16xf32>
    %205 = math.exp %204 : vector<1x8x16xf32>
    %cst_98 = arith.constant dense<0.000000e+00> : vector<1x8xf32>
    %206 = vector.multi_reduction <add>, %205, %cst_98 [2] : vector<1x8x16xf32> to vector<1x8xf32>
    %207 = vector.shape_cast %206 : vector<1x8xf32> to vector<1x8x1xf32>
    %208 = tpu.reciprocal %207 {approx = true} : vector<1x8x1xf32> -> vector<1x8x1xf32>
    %209 = vector.broadcast %208 : vector<1x8x1xf32> to vector<1x8x16xf32>
    %210 = arith.mulf %205, %209 : vector<1x8x16xf32>
    "tpu.trace_start"() <{level = 10 : i32, message = "bqk,bkd->bqd"}> : () -> ()
    %cst_99 = arith.constant dense<0.000000e+00> : vector<1x8x8xf32>
    %211 = tpu.matmul %210, %197, %cst_99 {dimension_numbers = #tpu.dot_dimension_numbers<[2], [1], [1], [2], [0, 0, 0, 1, 1, 2], [0], [0]>} : vector<1x8x16xf32>, vector<1x16x8xf32>, vector<1x8x8xf32> -> vector<1x8x8xf32>
    "tpu.trace_stop"() : () -> ()
    %212 = vector.shape_cast %211 : vector<1x8x8xf32> to vector<8x8xf32>
    %c0_100 = arith.constant 0 : index
    %c3_101 = arith.constant 3 : index
    %c0_102 = arith.constant 0 : index
    %c0_103 = arith.constant 0 : index
    %213 = vector.load %arg6[%c0_100, %c3_101, %c0_102, %c0_103] : memref<2x4x8x32xf32, #tpu.memory_space<vmem>>, vector<1x1x8x32xf32>
    %214 = vector.shape_cast %213 : vector<1x1x8x32xf32> to vector<8x32xf32>
    %cst_104 = arith.constant dense<0.000000e+00> : vector<8x32xf32>
    %215 = tpu.matmul %212, %214, %cst_104 {dimension_numbers = #tpu.dot_dimension_numbers<[1], [0], [0], [1], [0, 0, 1, 1], [], []>} : vector<8x8xf32>, vector<8x32xf32>, vector<8x32xf32> -> vector<8x32xf32>
    %216 = arith.addf %167, %215 : vector<8x32xf32>
    %217 = vector.shape_cast %7 : vector<32xf32> to vector<1x32xf32>
    %218 = vector.broadcast %217 : vector<1x32xf32> to vector<8x32xf32>
    %219 = arith.addf %216, %218 : vector<8x32xf32>
    %220 = vector.shape_cast %17 : vector<32xf32> to vector<1x32xf32>
    %221 = vector.broadcast %220 : vector<1x32xf32> to vector<8x32xf32>
    %222 = arith.mulf %221, %219 : vector<8x32xf32>
    %223 = arith.addf %3, %222 : vector<8x32xf32>
    %cst_105 = arith.constant dense<0.000000e+00> : vector<8xf32>
    %224 = vector.multi_reduction <add>, %223, %cst_105 [1] : vector<8x32xf32> to vector<8xf32>
    %225 = vector.shape_cast %224 : vector<8xf32> to vector<8x1xf32>
    %cst_106 = arith.constant 3.200000e+01 : f32
    %226 = vector.broadcast %cst_106 : f32 to vector<8x1xf32>
    %227 = arith.divf %225, %226 : vector<8x1xf32>
    %228 = vector.broadcast %227 : vector<8x1xf32> to vector<8x32xf32>
    %229 = arith.subf %223, %228 : vector<8x32xf32>
    %230 = vector.broadcast %227 : vector<8x1xf32> to vector<8x32xf32>
    %231 = arith.subf %223, %230 : vector<8x32xf32>
    %232 = arith.mulf %229, %231 : vector<8x32xf32>
    %cst_107 = arith.constant dense<0.000000e+00> : vector<8xf32>
    %233 = vector.multi_reduction <add>, %232, %cst_107 [1] : vector<8x32xf32> to vector<8xf32>
    %234 = vector.shape_cast %233 : vector<8xf32> to vector<8x1xf32>
    %cst_108 = arith.constant 3.200000e+01 : f32
    %235 = vector.broadcast %cst_108 : f32 to vector<8x1xf32>
    %236 = arith.divf %234, %235 : vector<8x1xf32>
    %237 = vector.broadcast %227 : vector<8x1xf32> to vector<8x32xf32>
    %238 = arith.subf %223, %237 : vector<8x32xf32>
    %cst_109 = arith.constant 9.99999974E-6 : f32
    %239 = vector.broadcast %cst_109 : f32 to vector<8x1xf32>
    %240 = arith.addf %236, %239 : vector<8x1xf32>
    %241 = math.rsqrt %240 : vector<8x1xf32>
    %242 = vector.broadcast %241 : vector<8x1xf32> to vector<8x32xf32>
    %243 = arith.mulf %238, %242 : vector<8x32xf32>
    %244 = vector.shape_cast %9 : vector<32xf32> to vector<1x32xf32>
    %245 = vector.broadcast %244 : vector<1x32xf32> to vector<8x32xf32>
    %246 = arith.mulf %243, %245 : vector<8x32xf32>
    %247 = vector.shape_cast %11 : vector<32xf32> to vector<1x32xf32>
    %248 = vector.broadcast %247 : vector<1x32xf32> to vector<8x32xf32>
    %249 = arith.addf %246, %248 : vector<8x32xf32>
    %c0_110 = arith.constant 0 : index
    %c0_111 = arith.constant 0 : index
    %c0_112 = arith.constant 0 : index
    %250 = vector.load %arg7[%c0_110, %c0_111, %c0_112] : memref<2x33x64xf32, #tpu.memory_space<vmem>>, vector<1x33x64xf32>
    %251 = vector.shape_cast %250 : vector<1x33x64xf32> to vector<33x64xf32>
    %c0_113 = arith.constant 0 : index
    %c0_114 = arith.constant 0 : index
    %c0_115 = arith.constant 0 : index
    %252 = vector.load %arg8[%c0_113, %c0_114, %c0_115] : memref<2x65x32xf32, #tpu.memory_space<vmem>>, vector<1x65x32xf32>
    %253 = vector.shape_cast %252 : vector<1x65x32xf32> to vector<65x32xf32>
    %254 = vector.extract_strided_slice %251 {offsets = [0, 0], sizes = [32, 64], strides = [1, 1]} : vector<33x64xf32> to vector<32x64xf32>
    %cst_116 = arith.constant dense<0.000000e+00> : vector<8x64xf32>
    %255 = tpu.matmul %249, %254, %cst_116 {dimension_numbers = #tpu.dot_dimension_numbers<[1], [0], [0], [1], [0, 0, 1, 1], [], []>} : vector<8x32xf32>, vector<32x64xf32>, vector<8x64xf32> -> vector<8x64xf32>
    %256 = vector.extract_strided_slice %251 {offsets = [32, 0], sizes = [1, 64], strides = [1, 1]} : vector<33x64xf32> to vector<1x64xf32>
    %257 = vector.shape_cast %256 : vector<1x64xf32> to vector<64xf32>
    %258 = vector.shape_cast %257 : vector<64xf32> to vector<1x64xf32>
    %259 = vector.broadcast %258 : vector<1x64xf32> to vector<8x64xf32>
    %260 = arith.addf %255, %259 : vector<8x64xf32>
    %cst_117 = arith.constant 5.000000e-01 : f32
    %261 = vector.broadcast %cst_117 : f32 to vector<8x64xf32>
    %262 = arith.mulf %261, %260 : vector<8x64xf32>
    %cst_118 = arith.constant 4.471500e-02 : f32
    %263 = vector.broadcast %cst_118 : f32 to vector<8x64xf32>
    %264 = arith.mulf %263, %260 : vector<8x64xf32>
    %265 = arith.mulf %264, %260 : vector<8x64xf32>
    %266 = arith.mulf %265, %260 : vector<8x64xf32>
    %267 = arith.addf %260, %266 : vector<8x64xf32>
    %cst_119 = arith.constant 0.797884583 : f32
    %268 = vector.broadcast %cst_119 : f32 to vector<8x64xf32>
    %269 = arith.mulf %268, %267 : vector<8x64xf32>
    %270 = math.tanh %269 : vector<8x64xf32>
    %cst_120 = arith.constant 1.000000e+00 : f32
    %271 = vector.broadcast %cst_120 : f32 to vector<8x64xf32>
    %272 = arith.addf %271, %270 : vector<8x64xf32>
    %273 = arith.mulf %262, %272 : vector<8x64xf32>
    %274 = vector.extract_strided_slice %253 {offsets = [0, 0], sizes = [64, 32], strides = [1, 1]} : vector<65x32xf32> to vector<64x32xf32>
    %cst_121 = arith.constant dense<0.000000e+00> : vector<8x32xf32>
    %275 = tpu.matmul %273, %274, %cst_121 {dimension_numbers = #tpu.dot_dimension_numbers<[1], [0], [0], [1], [0, 0, 1, 1], [], []>} : vector<8x64xf32>, vector<64x32xf32>, vector<8x32xf32> -> vector<8x32xf32>
    %276 = vector.extract_strided_slice %253 {offsets = [64, 0], sizes = [1, 32], strides = [1, 1]} : vector<65x32xf32> to vector<1x32xf32>
    %277 = vector.shape_cast %276 : vector<1x32xf32> to vector<32xf32>
    %278 = vector.shape_cast %277 : vector<32xf32> to vector<1x32xf32>
    %279 = vector.broadcast %278 : vector<1x32xf32> to vector<8x32xf32>
    %280 = arith.addf %275, %279 : vector<8x32xf32>
    %281 = vector.shape_cast %19 : vector<32xf32> to vector<1x32xf32>
    %282 = vector.broadcast %281 : vector<1x32xf32> to vector<8x32xf32>
    %283 = arith.mulf %282, %280 : vector<8x32xf32>
    %284 = arith.addf %249, %283 : vector<8x32xf32>
    %cst_122 = arith.constant dense<0.000000e+00> : vector<8xf32>
    %285 = vector.multi_reduction <add>, %284, %cst_122 [1] : vector<8x32xf32> to vector<8xf32>
    %286 = vector.shape_cast %285 : vector<8xf32> to vector<8x1xf32>
    %cst_123 = arith.constant 3.200000e+01 : f32
    %287 = vector.broadcast %cst_123 : f32 to vector<8x1xf32>
    %288 = arith.divf %286, %287 : vector<8x1xf32>
    %289 = vector.broadcast %288 : vector<8x1xf32> to vector<8x32xf32>
    %290 = arith.subf %284, %289 : vector<8x32xf32>
    %291 = vector.broadcast %288 : vector<8x1xf32> to vector<8x32xf32>
    %292 = arith.subf %284, %291 : vector<8x32xf32>
    %293 = arith.mulf %290, %292 : vector<8x32xf32>
    %cst_124 = arith.constant dense<0.000000e+00> : vector<8xf32>
    %294 = vector.multi_reduction <add>, %293, %cst_124 [1] : vector<8x32xf32> to vector<8xf32>
    %295 = vector.shape_cast %294 : vector<8xf32> to vector<8x1xf32>
    %cst_125 = arith.constant 3.200000e+01 : f32
    %296 = vector.broadcast %cst_125 : f32 to vector<8x1xf32>
    %297 = arith.divf %295, %296 : vector<8x1xf32>
    %298 = vector.broadcast %288 : vector<8x1xf32> to vector<8x32xf32>
    %299 = arith.subf %284, %298 : vector<8x32xf32>
    %cst_126 = arith.constant 9.99999974E-6 : f32
    %300 = vector.broadcast %cst_126 : f32 to vector<8x1xf32>
    %301 = arith.addf %297, %300 : vector<8x1xf32>
    %302 = math.rsqrt %301 : vector<8x1xf32>
    %303 = vector.broadcast %302 : vector<8x1xf32> to vector<8x32xf32>
    %304 = arith.mulf %299, %303 : vector<8x32xf32>
    %305 = vector.shape_cast %13 : vector<32xf32> to vector<1x32xf32>
    %306 = vector.broadcast %305 : vector<1x32xf32> to vector<8x32xf32>
    %307 = arith.mulf %304, %306 : vector<8x32xf32>
    %308 = vector.shape_cast %15 : vector<32xf32> to vector<1x32xf32>
    %309 = vector.broadcast %308 : vector<1x32xf32> to vector<8x32xf32>
    %310 = arith.addf %307, %309 : vector<8x32xf32>
    %c1_127 = arith.constant 1 : index
    %c0_128 = arith.constant 0 : index
    %c0_129 = arith.constant 0 : index
    %311 = vector.load %arg9[%c1_127, %c0_128, %c0_129] : memref<2x7x32xf32, #tpu.memory_space<vmem>>, vector<1x7x32xf32>
    %312 = vector.shape_cast %311 : vector<1x7x32xf32> to vector<7x32xf32>
    %313 = vector.extract_strided_slice %312 {offsets = [0, 0], sizes = [1, 32], strides = [1, 1]} : vector<7x32xf32> to vector<1x32xf32>
    %314 = vector.shape_cast %313 : vector<1x32xf32> to vector<32xf32>
    %315 = vector.extract_strided_slice %312 {offsets = [1, 0], sizes = [1, 32], strides = [1, 1]} : vector<7x32xf32> to vector<1x32xf32>
    %316 = vector.shape_cast %315 : vector<1x32xf32> to vector<32xf32>
    %317 = vector.extract_strided_slice %312 {offsets = [2, 0], sizes = [1, 32], strides = [1, 1]} : vector<7x32xf32> to vector<1x32xf32>
    %318 = vector.shape_cast %317 : vector<1x32xf32> to vector<32xf32>
    %319 = vector.extract_strided_slice %312 {offsets = [3, 0], sizes = [1, 32], strides = [1, 1]} : vector<7x32xf32> to vector<1x32xf32>
    %320 = vector.shape_cast %319 : vector<1x32xf32> to vector<32xf32>
    %321 = vector.extract_strided_slice %312 {offsets = [4, 0], sizes = [1, 32], strides = [1, 1]} : vector<7x32xf32> to vector<1x32xf32>
    %322 = vector.shape_cast %321 : vector<1x32xf32> to vector<32xf32>
    %323 = vector.extract_strided_slice %312 {offsets = [5, 0], sizes = [1, 32], strides = [1, 1]} : vector<7x32xf32> to vector<1x32xf32>
    %324 = vector.shape_cast %323 : vector<1x32xf32> to vector<32xf32>
    %325 = vector.extract_strided_slice %312 {offsets = [6, 0], sizes = [1, 32], strides = [1, 1]} : vector<7x32xf32> to vector<1x32xf32>
    %326 = vector.shape_cast %325 : vector<1x32xf32> to vector<32xf32>
    %cst_130 = arith.constant 0.000000e+00 : f32
    %327 = vector.broadcast %cst_130 : f32 to vector<8x32xf32>
    %c1_131 = arith.constant 1 : index
    %c0_132 = arith.constant 0 : index
    %c0_133 = arith.constant 0 : index
    %c0_134 = arith.constant 0 : index
    %328 = vector.load %arg3[%c1_131, %c0_132, %c0_133, %c0_134] : memref<2x4x33x8xf32, #tpu.memory_space<vmem>>, vector<1x1x33x8xf32>
    %329 = vector.shape_cast %328 : vector<1x1x33x8xf32> to vector<33x8xf32>
    %c1_135 = arith.constant 1 : index
    %c0_136 = arith.constant 0 : index
    %c0_137 = arith.constant 0 : index
    %c0_138 = arith.constant 0 : index
    %330 = vector.load %arg4[%c1_135, %c0_136, %c0_137, %c0_138] : memref<2x4x33x8xf32, #tpu.memory_space<vmem>>, vector<1x1x33x8xf32>
    %331 = vector.shape_cast %330 : vector<1x1x33x8xf32> to vector<33x8xf32>
    %c1_139 = arith.constant 1 : index
    %c0_140 = arith.constant 0 : index
    %c0_141 = arith.constant 0 : index
    %c0_142 = arith.constant 0 : index
    %332 = vector.load %arg5[%c1_139, %c0_140, %c0_141, %c0_142] : memref<2x4x33x8xf32, #tpu.memory_space<vmem>>, vector<1x1x33x8xf32>
    %333 = vector.shape_cast %332 : vector<1x1x33x8xf32> to vector<33x8xf32>
    %334 = vector.extract_strided_slice %329 {offsets = [0, 0], sizes = [32, 8], strides = [1, 1]} : vector<33x8xf32> to vector<32x8xf32>
    %cst_143 = arith.constant dense<0.000000e+00> : vector<8x8xf32>
    %335 = tpu.matmul %310, %334, %cst_143 {dimension_numbers = #tpu.dot_dimension_numbers<[1], [0], [0], [1], [0, 0, 1, 1], [], []>} : vector<8x32xf32>, vector<32x8xf32>, vector<8x8xf32> -> vector<8x8xf32>
    %336 = vector.extract_strided_slice %329 {offsets = [32, 0], sizes = [1, 8], strides = [1, 1]} : vector<33x8xf32> to vector<1x8xf32>
    %337 = vector.shape_cast %336 : vector<1x8xf32> to vector<8xf32>
    %338 = vector.shape_cast %337 : vector<8xf32> to vector<1x8xf32>
    %339 = vector.broadcast %338 : vector<1x8xf32> to vector<8x8xf32>
    %340 = arith.addf %335, %339 : vector<8x8xf32>
    %341 = vector.extract_strided_slice %331 {offsets = [0, 0], sizes = [32, 8], strides = [1, 1]} : vector<33x8xf32> to vector<32x8xf32>
    %cst_144 = arith.constant dense<0.000000e+00> : vector<16x8xf32>
    %342 = tpu.matmul %1, %341, %cst_144 {dimension_numbers = #tpu.dot_dimension_numbers<[1], [0], [0], [1], [0, 0, 1, 1], [], []>} : vector<16x32xf32>, vector<32x8xf32>, vector<16x8xf32> -> vector<16x8xf32>
    %343 = vector.extract_strided_slice %331 {offsets = [32, 0], sizes = [1, 8], strides = [1, 1]} : vector<33x8xf32> to vector<1x8xf32>
    %344 = vector.shape_cast %343 : vector<1x8xf32> to vector<8xf32>
    %345 = vector.shape_cast %344 : vector<8xf32> to vector<1x8xf32>
    %346 = vector.broadcast %345 : vector<1x8xf32> to vector<16x8xf32>
    %347 = arith.addf %342, %346 : vector<16x8xf32>
    %348 = vector.extract_strided_slice %333 {offsets = [0, 0], sizes = [32, 8], strides = [1, 1]} : vector<33x8xf32> to vector<32x8xf32>
    %cst_145 = arith.constant dense<0.000000e+00> : vector<16x8xf32>
    %349 = tpu.matmul %1, %348, %cst_145 {dimension_numbers = #tpu.dot_dimension_numbers<[1], [0], [0], [1], [0, 0, 1, 1], [], []>} : vector<16x32xf32>, vector<32x8xf32>, vector<16x8xf32> -> vector<16x8xf32>
    %350 = vector.extract_strided_slice %333 {offsets = [32, 0], sizes = [1, 8], strides = [1, 1]} : vector<33x8xf32> to vector<1x8xf32>
    %351 = vector.shape_cast %350 : vector<1x8xf32> to vector<8xf32>
    %352 = vector.shape_cast %351 : vector<8xf32> to vector<1x8xf32>
    %353 = vector.broadcast %352 : vector<1x8xf32> to vector<16x8xf32>
    %354 = arith.addf %349, %353 : vector<16x8xf32>
    %355 = vector.shape_cast %340 : vector<8x8xf32> to vector<1x8x8xf32>
    %356 = vector.shape_cast %347 : vector<16x8xf32> to vector<1x16x8xf32>
    %357 = vector.shape_cast %354 : vector<16x8xf32> to vector<1x16x8xf32>
    "tpu.trace_start"() <{level = 10 : i32, message = "bqd,bkd->bqk"}> : () -> ()
    %cst_146 = arith.constant dense<0.000000e+00> : vector<1x8x16xf32>
    %358 = tpu.matmul %355, %356, %cst_146 {dimension_numbers = #tpu.dot_dimension_numbers<[2], [2], [1], [1], [0, 0, 0, 1, 1, 1], [0], [0]>} : vector<1x8x8xf32>, vector<1x16x8xf32>, vector<1x8x16xf32> -> vector<1x8x16xf32>
    "tpu.trace_stop"() : () -> ()
    %cst_147 = arith.constant 0.353553385 : f32
    %359 = vector.broadcast %cst_147 : f32 to vector<1x8x16xf32>
    %360 = arith.mulf %358, %359 : vector<1x8x16xf32>
    %cst_148 = arith.constant dense<0xFF800000> : vector<1x8xf32>
    %361 = vector.multi_reduction <maximumf>, %360, %cst_148 [2] : vector<1x8x16xf32> to vector<1x8xf32>
    %362 = vector.shape_cast %361 : vector<1x8xf32> to vector<1x8x1xf32>
    %363 = vector.broadcast %362 : vector<1x8x1xf32> to vector<1x8x16xf32>
    %364 = arith.subf %360, %363 : vector<1x8x16xf32>
    %365 = math.exp %364 : vector<1x8x16xf32>
    %cst_149 = arith.constant dense<0.000000e+00> : vector<1x8xf32>
    %366 = vector.multi_reduction <add>, %365, %cst_149 [2] : vector<1x8x16xf32> to vector<1x8xf32>
    %367 = vector.shape_cast %366 : vector<1x8xf32> to vector<1x8x1xf32>
    %368 = tpu.reciprocal %367 {approx = true} : vector<1x8x1xf32> -> vector<1x8x1xf32>
    %369 = vector.broadcast %368 : vector<1x8x1xf32> to vector<1x8x16xf32>
    %370 = arith.mulf %365, %369 : vector<1x8x16xf32>
    "tpu.trace_start"() <{level = 10 : i32, message = "bqk,bkd->bqd"}> : () -> ()
    %cst_150 = arith.constant dense<0.000000e+00> : vector<1x8x8xf32>
    %371 = tpu.matmul %370, %357, %cst_150 {dimension_numbers = #tpu.dot_dimension_numbers<[2], [1], [1], [2], [0, 0, 0, 1, 1, 2], [0], [0]>} : vector<1x8x16xf32>, vector<1x16x8xf32>, vector<1x8x8xf32> -> vector<1x8x8xf32>
    "tpu.trace_stop"() : () -> ()
    %372 = vector.shape_cast %371 : vector<1x8x8xf32> to vector<8x8xf32>
    %c1_151 = arith.constant 1 : index
    %c0_152 = arith.constant 0 : index
    %c0_153 = arith.constant 0 : index
    %c0_154 = arith.constant 0 : index
    %373 = vector.load %arg6[%c1_151, %c0_152, %c0_153, %c0_154] : memref<2x4x8x32xf32, #tpu.memory_space<vmem>>, vector<1x1x8x32xf32>
    %374 = vector.shape_cast %373 : vector<1x1x8x32xf32> to vector<8x32xf32>
    %cst_155 = arith.constant dense<0.000000e+00> : vector<8x32xf32>
    %375 = tpu.matmul %372, %374, %cst_155 {dimension_numbers = #tpu.dot_dimension_numbers<[1], [0], [0], [1], [0, 0, 1, 1], [], []>} : vector<8x8xf32>, vector<8x32xf32>, vector<8x32xf32> -> vector<8x32xf32>
    %376 = arith.addf %327, %375 : vector<8x32xf32>
    %c1_156 = arith.constant 1 : index
    %c1_157 = arith.constant 1 : index
    %c0_158 = arith.constant 0 : index
    %c0_159 = arith.constant 0 : index
    %377 = vector.load %arg3[%c1_156, %c1_157, %c0_158, %c0_159] : memref<2x4x33x8xf32, #tpu.memory_space<vmem>>, vector<1x1x33x8xf32>
    %378 = vector.shape_cast %377 : vector<1x1x33x8xf32> to vector<33x8xf32>
    %c1_160 = arith.constant 1 : index
    %c1_161 = arith.constant 1 : index
    %c0_162 = arith.constant 0 : index
    %c0_163 = arith.constant 0 : index
    %379 = vector.load %arg4[%c1_160, %c1_161, %c0_162, %c0_163] : memref<2x4x33x8xf32, #tpu.memory_space<vmem>>, vector<1x1x33x8xf32>
    %380 = vector.shape_cast %379 : vector<1x1x33x8xf32> to vector<33x8xf32>
    %c1_164 = arith.constant 1 : index
    %c1_165 = arith.constant 1 : index
    %c0_166 = arith.constant 0 : index
    %c0_167 = arith.constant 0 : index
    %381 = vector.load %arg5[%c1_164, %c1_165, %c0_166, %c0_167] : memref<2x4x33x8xf32, #tpu.memory_space<vmem>>, vector<1x1x33x8xf32>
    %382 = vector.shape_cast %381 : vector<1x1x33x8xf32> to vector<33x8xf32>
    %383 = vector.extract_strided_slice %378 {offsets = [0, 0], sizes = [32, 8], strides = [1, 1]} : vector<33x8xf32> to vector<32x8xf32>
    %cst_168 = arith.constant dense<0.000000e+00> : vector<8x8xf32>
    %384 = tpu.matmul %310, %383, %cst_168 {dimension_numbers = #tpu.dot_dimension_numbers<[1], [0], [0], [1], [0, 0, 1, 1], [], []>} : vector<8x32xf32>, vector<32x8xf32>, vector<8x8xf32> -> vector<8x8xf32>
    %385 = vector.extract_strided_slice %378 {offsets = [32, 0], sizes = [1, 8], strides = [1, 1]} : vector<33x8xf32> to vector<1x8xf32>
    %386 = vector.shape_cast %385 : vector<1x8xf32> to vector<8xf32>
    %387 = vector.shape_cast %386 : vector<8xf32> to vector<1x8xf32>
    %388 = vector.broadcast %387 : vector<1x8xf32> to vector<8x8xf32>
    %389 = arith.addf %384, %388 : vector<8x8xf32>
    %390 = vector.extract_strided_slice %380 {offsets = [0, 0], sizes = [32, 8], strides = [1, 1]} : vector<33x8xf32> to vector<32x8xf32>
    %cst_169 = arith.constant dense<0.000000e+00> : vector<16x8xf32>
    %391 = tpu.matmul %1, %390, %cst_169 {dimension_numbers = #tpu.dot_dimension_numbers<[1], [0], [0], [1], [0, 0, 1, 1], [], []>} : vector<16x32xf32>, vector<32x8xf32>, vector<16x8xf32> -> vector<16x8xf32>
    %392 = vector.extract_strided_slice %380 {offsets = [32, 0], sizes = [1, 8], strides = [1, 1]} : vector<33x8xf32> to vector<1x8xf32>
    %393 = vector.shape_cast %392 : vector<1x8xf32> to vector<8xf32>
    %394 = vector.shape_cast %393 : vector<8xf32> to vector<1x8xf32>
    %395 = vector.broadcast %394 : vector<1x8xf32> to vector<16x8xf32>
    %396 = arith.addf %391, %395 : vector<16x8xf32>
    %397 = vector.extract_strided_slice %382 {offsets = [0, 0], sizes = [32, 8], strides = [1, 1]} : vector<33x8xf32> to vector<32x8xf32>
    %cst_170 = arith.constant dense<0.000000e+00> : vector<16x8xf32>
    %398 = tpu.matmul %1, %397, %cst_170 {dimension_numbers = #tpu.dot_dimension_numbers<[1], [0], [0], [1], [0, 0, 1, 1], [], []>} : vector<16x32xf32>, vector<32x8xf32>, vector<16x8xf32> -> vector<16x8xf32>
    %399 = vector.extract_strided_slice %382 {offsets = [32, 0], sizes = [1, 8], strides = [1, 1]} : vector<33x8xf32> to vector<1x8xf32>
    %400 = vector.shape_cast %399 : vector<1x8xf32> to vector<8xf32>
    %401 = vector.shape_cast %400 : vector<8xf32> to vector<1x8xf32>
    %402 = vector.broadcast %401 : vector<1x8xf32> to vector<16x8xf32>
    %403 = arith.addf %398, %402 : vector<16x8xf32>
    %404 = vector.shape_cast %389 : vector<8x8xf32> to vector<1x8x8xf32>
    %405 = vector.shape_cast %396 : vector<16x8xf32> to vector<1x16x8xf32>
    %406 = vector.shape_cast %403 : vector<16x8xf32> to vector<1x16x8xf32>
    "tpu.trace_start"() <{level = 10 : i32, message = "bqd,bkd->bqk"}> : () -> ()
    %cst_171 = arith.constant dense<0.000000e+00> : vector<1x8x16xf32>
    %407 = tpu.matmul %404, %405, %cst_171 {dimension_numbers = #tpu.dot_dimension_numbers<[2], [2], [1], [1], [0, 0, 0, 1, 1, 1], [0], [0]>} : vector<1x8x8xf32>, vector<1x16x8xf32>, vector<1x8x16xf32> -> vector<1x8x16xf32>
    "tpu.trace_stop"() : () -> ()
    %cst_172 = arith.constant 0.353553385 : f32
    %408 = vector.broadcast %cst_172 : f32 to vector<1x8x16xf32>
    %409 = arith.mulf %407, %408 : vector<1x8x16xf32>
    %cst_173 = arith.constant dense<0xFF800000> : vector<1x8xf32>
    %410 = vector.multi_reduction <maximumf>, %409, %cst_173 [2] : vector<1x8x16xf32> to vector<1x8xf32>
    %411 = vector.shape_cast %410 : vector<1x8xf32> to vector<1x8x1xf32>
    %412 = vector.broadcast %411 : vector<1x8x1xf32> to vector<1x8x16xf32>
    %413 = arith.subf %409, %412 : vector<1x8x16xf32>
    %414 = math.exp %413 : vector<1x8x16xf32>
    %cst_174 = arith.constant dense<0.000000e+00> : vector<1x8xf32>
    %415 = vector.multi_reduction <add>, %414, %cst_174 [2] : vector<1x8x16xf32> to vector<1x8xf32>
    %416 = vector.shape_cast %415 : vector<1x8xf32> to vector<1x8x1xf32>
    %417 = tpu.reciprocal %416 {approx = true} : vector<1x8x1xf32> -> vector<1x8x1xf32>
    %418 = vector.broadcast %417 : vector<1x8x1xf32> to vector<1x8x16xf32>
    %419 = arith.mulf %414, %418 : vector<1x8x16xf32>
    "tpu.trace_start"() <{level = 10 : i32, message = "bqk,bkd->bqd"}> : () -> ()
    %cst_175 = arith.constant dense<0.000000e+00> : vector<1x8x8xf32>
    %420 = tpu.matmul %419, %406, %cst_175 {dimension_numbers = #tpu.dot_dimension_numbers<[2], [1], [1], [2], [0, 0, 0, 1, 1, 2], [0], [0]>} : vector<1x8x16xf32>, vector<1x16x8xf32>, vector<1x8x8xf32> -> vector<1x8x8xf32>
    "tpu.trace_stop"() : () -> ()
    %421 = vector.shape_cast %420 : vector<1x8x8xf32> to vector<8x8xf32>
    %c1_176 = arith.constant 1 : index
    %c1_177 = arith.constant 1 : index
    %c0_178 = arith.constant 0 : index
    %c0_179 = arith.constant 0 : index
    %422 = vector.load %arg6[%c1_176, %c1_177, %c0_178, %c0_179] : memref<2x4x8x32xf32, #tpu.memory_space<vmem>>, vector<1x1x8x32xf32>
    %423 = vector.shape_cast %422 : vector<1x1x8x32xf32> to vector<8x32xf32>
    %cst_180 = arith.constant dense<0.000000e+00> : vector<8x32xf32>
    %424 = tpu.matmul %421, %423, %cst_180 {dimension_numbers = #tpu.dot_dimension_numbers<[1], [0], [0], [1], [0, 0, 1, 1], [], []>} : vector<8x8xf32>, vector<8x32xf32>, vector<8x32xf32> -> vector<8x32xf32>
    %425 = arith.addf %376, %424 : vector<8x32xf32>
    %c1_181 = arith.constant 1 : index
    %c2_182 = arith.constant 2 : index
    %c0_183 = arith.constant 0 : index
    %c0_184 = arith.constant 0 : index
    %426 = vector.load %arg3[%c1_181, %c2_182, %c0_183, %c0_184] : memref<2x4x33x8xf32, #tpu.memory_space<vmem>>, vector<1x1x33x8xf32>
    %427 = vector.shape_cast %426 : vector<1x1x33x8xf32> to vector<33x8xf32>
    %c1_185 = arith.constant 1 : index
    %c2_186 = arith.constant 2 : index
    %c0_187 = arith.constant 0 : index
    %c0_188 = arith.constant 0 : index
    %428 = vector.load %arg4[%c1_185, %c2_186, %c0_187, %c0_188] : memref<2x4x33x8xf32, #tpu.memory_space<vmem>>, vector<1x1x33x8xf32>
    %429 = vector.shape_cast %428 : vector<1x1x33x8xf32> to vector<33x8xf32>
    %c1_189 = arith.constant 1 : index
    %c2_190 = arith.constant 2 : index
    %c0_191 = arith.constant 0 : index
    %c0_192 = arith.constant 0 : index
    %430 = vector.load %arg5[%c1_189, %c2_190, %c0_191, %c0_192] : memref<2x4x33x8xf32, #tpu.memory_space<vmem>>, vector<1x1x33x8xf32>
    %431 = vector.shape_cast %430 : vector<1x1x33x8xf32> to vector<33x8xf32>
    %432 = vector.extract_strided_slice %427 {offsets = [0, 0], sizes = [32, 8], strides = [1, 1]} : vector<33x8xf32> to vector<32x8xf32>
    %cst_193 = arith.constant dense<0.000000e+00> : vector<8x8xf32>
    %433 = tpu.matmul %310, %432, %cst_193 {dimension_numbers = #tpu.dot_dimension_numbers<[1], [0], [0], [1], [0, 0, 1, 1], [], []>} : vector<8x32xf32>, vector<32x8xf32>, vector<8x8xf32> -> vector<8x8xf32>
    %434 = vector.extract_strided_slice %427 {offsets = [32, 0], sizes = [1, 8], strides = [1, 1]} : vector<33x8xf32> to vector<1x8xf32>
    %435 = vector.shape_cast %434 : vector<1x8xf32> to vector<8xf32>
    %436 = vector.shape_cast %435 : vector<8xf32> to vector<1x8xf32>
    %437 = vector.broadcast %436 : vector<1x8xf32> to vector<8x8xf32>
    %438 = arith.addf %433, %437 : vector<8x8xf32>
    %439 = vector.extract_strided_slice %429 {offsets = [0, 0], sizes = [32, 8], strides = [1, 1]} : vector<33x8xf32> to vector<32x8xf32>
    %cst_194 = arith.constant dense<0.000000e+00> : vector<16x8xf32>
    %440 = tpu.matmul %1, %439, %cst_194 {dimension_numbers = #tpu.dot_dimension_numbers<[1], [0], [0], [1], [0, 0, 1, 1], [], []>} : vector<16x32xf32>, vector<32x8xf32>, vector<16x8xf32> -> vector<16x8xf32>
    %441 = vector.extract_strided_slice %429 {offsets = [32, 0], sizes = [1, 8], strides = [1, 1]} : vector<33x8xf32> to vector<1x8xf32>
    %442 = vector.shape_cast %441 : vector<1x8xf32> to vector<8xf32>
    %443 = vector.shape_cast %442 : vector<8xf32> to vector<1x8xf32>
    %444 = vector.broadcast %443 : vector<1x8xf32> to vector<16x8xf32>
    %445 = arith.addf %440, %444 : vector<16x8xf32>
    %446 = vector.extract_strided_slice %431 {offsets = [0, 0], sizes = [32, 8], strides = [1, 1]} : vector<33x8xf32> to vector<32x8xf32>
    %cst_195 = arith.constant dense<0.000000e+00> : vector<16x8xf32>
    %447 = tpu.matmul %1, %446, %cst_195 {dimension_numbers = #tpu.dot_dimension_numbers<[1], [0], [0], [1], [0, 0, 1, 1], [], []>} : vector<16x32xf32>, vector<32x8xf32>, vector<16x8xf32> -> vector<16x8xf32>
    %448 = vector.extract_strided_slice %431 {offsets = [32, 0], sizes = [1, 8], strides = [1, 1]} : vector<33x8xf32> to vector<1x8xf32>
    %449 = vector.shape_cast %448 : vector<1x8xf32> to vector<8xf32>
    %450 = vector.shape_cast %449 : vector<8xf32> to vector<1x8xf32>
    %451 = vector.broadcast %450 : vector<1x8xf32> to vector<16x8xf32>
    %452 = arith.addf %447, %451 : vector<16x8xf32>
    %453 = vector.shape_cast %438 : vector<8x8xf32> to vector<1x8x8xf32>
    %454 = vector.shape_cast %445 : vector<16x8xf32> to vector<1x16x8xf32>
    %455 = vector.shape_cast %452 : vector<16x8xf32> to vector<1x16x8xf32>
    "tpu.trace_start"() <{level = 10 : i32, message = "bqd,bkd->bqk"}> : () -> ()
    %cst_196 = arith.constant dense<0.000000e+00> : vector<1x8x16xf32>
    %456 = tpu.matmul %453, %454, %cst_196 {dimension_numbers = #tpu.dot_dimension_numbers<[2], [2], [1], [1], [0, 0, 0, 1, 1, 1], [0], [0]>} : vector<1x8x8xf32>, vector<1x16x8xf32>, vector<1x8x16xf32> -> vector<1x8x16xf32>
    "tpu.trace_stop"() : () -> ()
    %cst_197 = arith.constant 0.353553385 : f32
    %457 = vector.broadcast %cst_197 : f32 to vector<1x8x16xf32>
    %458 = arith.mulf %456, %457 : vector<1x8x16xf32>
    %cst_198 = arith.constant dense<0xFF800000> : vector<1x8xf32>
    %459 = vector.multi_reduction <maximumf>, %458, %cst_198 [2] : vector<1x8x16xf32> to vector<1x8xf32>
    %460 = vector.shape_cast %459 : vector<1x8xf32> to vector<1x8x1xf32>
    %461 = vector.broadcast %460 : vector<1x8x1xf32> to vector<1x8x16xf32>
    %462 = arith.subf %458, %461 : vector<1x8x16xf32>
    %463 = math.exp %462 : vector<1x8x16xf32>
    %cst_199 = arith.constant dense<0.000000e+00> : vector<1x8xf32>
    %464 = vector.multi_reduction <add>, %463, %cst_199 [2] : vector<1x8x16xf32> to vector<1x8xf32>
    %465 = vector.shape_cast %464 : vector<1x8xf32> to vector<1x8x1xf32>
    %466 = tpu.reciprocal %465 {approx = true} : vector<1x8x1xf32> -> vector<1x8x1xf32>
    %467 = vector.broadcast %466 : vector<1x8x1xf32> to vector<1x8x16xf32>
    %468 = arith.mulf %463, %467 : vector<1x8x16xf32>
    "tpu.trace_start"() <{level = 10 : i32, message = "bqk,bkd->bqd"}> : () -> ()
    %cst_200 = arith.constant dense<0.000000e+00> : vector<1x8x8xf32>
    %469 = tpu.matmul %468, %455, %cst_200 {dimension_numbers = #tpu.dot_dimension_numbers<[2], [1], [1], [2], [0, 0, 0, 1, 1, 2], [0], [0]>} : vector<1x8x16xf32>, vector<1x16x8xf32>, vector<1x8x8xf32> -> vector<1x8x8xf32>
    "tpu.trace_stop"() : () -> ()
    %470 = vector.shape_cast %469 : vector<1x8x8xf32> to vector<8x8xf32>
    %c1_201 = arith.constant 1 : index
    %c2_202 = arith.constant 2 : index
    %c0_203 = arith.constant 0 : index
    %c0_204 = arith.constant 0 : index
    %471 = vector.load %arg6[%c1_201, %c2_202, %c0_203, %c0_204] : memref<2x4x8x32xf32, #tpu.memory_space<vmem>>, vector<1x1x8x32xf32>
    %472 = vector.shape_cast %471 : vector<1x1x8x32xf32> to vector<8x32xf32>
    %cst_205 = arith.constant dense<0.000000e+00> : vector<8x32xf32>
    %473 = tpu.matmul %470, %472, %cst_205 {dimension_numbers = #tpu.dot_dimension_numbers<[1], [0], [0], [1], [0, 0, 1, 1], [], []>} : vector<8x8xf32>, vector<8x32xf32>, vector<8x32xf32> -> vector<8x32xf32>
    %474 = arith.addf %425, %473 : vector<8x32xf32>
    %c1_206 = arith.constant 1 : index
    %c3_207 = arith.constant 3 : index
    %c0_208 = arith.constant 0 : index
    %c0_209 = arith.constant 0 : index
    %475 = vector.load %arg3[%c1_206, %c3_207, %c0_208, %c0_209] : memref<2x4x33x8xf32, #tpu.memory_space<vmem>>, vector<1x1x33x8xf32>
    %476 = vector.shape_cast %475 : vector<1x1x33x8xf32> to vector<33x8xf32>
    %c1_210 = arith.constant 1 : index
    %c3_211 = arith.constant 3 : index
    %c0_212 = arith.constant 0 : index
    %c0_213 = arith.constant 0 : index
    %477 = vector.load %arg4[%c1_210, %c3_211, %c0_212, %c0_213] : memref<2x4x33x8xf32, #tpu.memory_space<vmem>>, vector<1x1x33x8xf32>
    %478 = vector.shape_cast %477 : vector<1x1x33x8xf32> to vector<33x8xf32>
    %c1_214 = arith.constant 1 : index
    %c3_215 = arith.constant 3 : index
    %c0_216 = arith.constant 0 : index
    %c0_217 = arith.constant 0 : index
    %479 = vector.load %arg5[%c1_214, %c3_215, %c0_216, %c0_217] : memref<2x4x33x8xf32, #tpu.memory_space<vmem>>, vector<1x1x33x8xf32>
    %480 = vector.shape_cast %479 : vector<1x1x33x8xf32> to vector<33x8xf32>
    %481 = vector.extract_strided_slice %476 {offsets = [0, 0], sizes = [32, 8], strides = [1, 1]} : vector<33x8xf32> to vector<32x8xf32>
    %cst_218 = arith.constant dense<0.000000e+00> : vector<8x8xf32>
    %482 = tpu.matmul %310, %481, %cst_218 {dimension_numbers = #tpu.dot_dimension_numbers<[1], [0], [0], [1], [0, 0, 1, 1], [], []>} : vector<8x32xf32>, vector<32x8xf32>, vector<8x8xf32> -> vector<8x8xf32>
    %483 = vector.extract_strided_slice %476 {offsets = [32, 0], sizes = [1, 8], strides = [1, 1]} : vector<33x8xf32> to vector<1x8xf32>
    %484 = vector.shape_cast %483 : vector<1x8xf32> to vector<8xf32>
    %485 = vector.shape_cast %484 : vector<8xf32> to vector<1x8xf32>
    %486 = vector.broadcast %485 : vector<1x8xf32> to vector<8x8xf32>
    %487 = arith.addf %482, %486 : vector<8x8xf32>
    %488 = vector.extract_strided_slice %478 {offsets = [0, 0], sizes = [32, 8], strides = [1, 1]} : vector<33x8xf32> to vector<32x8xf32>
    %cst_219 = arith.constant dense<0.000000e+00> : vector<16x8xf32>
    %489 = tpu.matmul %1, %488, %cst_219 {dimension_numbers = #tpu.dot_dimension_numbers<[1], [0], [0], [1], [0, 0, 1, 1], [], []>} : vector<16x32xf32>, vector<32x8xf32>, vector<16x8xf32> -> vector<16x8xf32>
    %490 = vector.extract_strided_slice %478 {offsets = [32, 0], sizes = [1, 8], strides = [1, 1]} : vector<33x8xf32> to vector<1x8xf32>
    %491 = vector.shape_cast %490 : vector<1x8xf32> to vector<8xf32>
    %492 = vector.shape_cast %491 : vector<8xf32> to vector<1x8xf32>
    %493 = vector.broadcast %492 : vector<1x8xf32> to vector<16x8xf32>
    %494 = arith.addf %489, %493 : vector<16x8xf32>
    %495 = vector.extract_strided_slice %480 {offsets = [0, 0], sizes = [32, 8], strides = [1, 1]} : vector<33x8xf32> to vector<32x8xf32>
    %cst_220 = arith.constant dense<0.000000e+00> : vector<16x8xf32>
    %496 = tpu.matmul %1, %495, %cst_220 {dimension_numbers = #tpu.dot_dimension_numbers<[1], [0], [0], [1], [0, 0, 1, 1], [], []>} : vector<16x32xf32>, vector<32x8xf32>, vector<16x8xf32> -> vector<16x8xf32>
    %497 = vector.extract_strided_slice %480 {offsets = [32, 0], sizes = [1, 8], strides = [1, 1]} : vector<33x8xf32> to vector<1x8xf32>
    %498 = vector.shape_cast %497 : vector<1x8xf32> to vector<8xf32>
    %499 = vector.shape_cast %498 : vector<8xf32> to vector<1x8xf32>
    %500 = vector.broadcast %499 : vector<1x8xf32> to vector<16x8xf32>
    %501 = arith.addf %496, %500 : vector<16x8xf32>
    %502 = vector.shape_cast %487 : vector<8x8xf32> to vector<1x8x8xf32>
    %503 = vector.shape_cast %494 : vector<16x8xf32> to vector<1x16x8xf32>
    %504 = vector.shape_cast %501 : vector<16x8xf32> to vector<1x16x8xf32>
    "tpu.trace_start"() <{level = 10 : i32, message = "bqd,bkd->bqk"}> : () -> ()
    %cst_221 = arith.constant dense<0.000000e+00> : vector<1x8x16xf32>
    %505 = tpu.matmul %502, %503, %cst_221 {dimension_numbers = #tpu.dot_dimension_numbers<[2], [2], [1], [1], [0, 0, 0, 1, 1, 1], [0], [0]>} : vector<1x8x8xf32>, vector<1x16x8xf32>, vector<1x8x16xf32> -> vector<1x8x16xf32>
    "tpu.trace_stop"() : () -> ()
    %cst_222 = arith.constant 0.353553385 : f32
    %506 = vector.broadcast %cst_222 : f32 to vector<1x8x16xf32>
    %507 = arith.mulf %505, %506 : vector<1x8x16xf32>
    %cst_223 = arith.constant dense<0xFF800000> : vector<1x8xf32>
    %508 = vector.multi_reduction <maximumf>, %507, %cst_223 [2] : vector<1x8x16xf32> to vector<1x8xf32>
    %509 = vector.shape_cast %508 : vector<1x8xf32> to vector<1x8x1xf32>
    %510 = vector.broadcast %509 : vector<1x8x1xf32> to vector<1x8x16xf32>
    %511 = arith.subf %507, %510 : vector<1x8x16xf32>
    %512 = math.exp %511 : vector<1x8x16xf32>
    %cst_224 = arith.constant dense<0.000000e+00> : vector<1x8xf32>
    %513 = vector.multi_reduction <add>, %512, %cst_224 [2] : vector<1x8x16xf32> to vector<1x8xf32>
    %514 = vector.shape_cast %513 : vector<1x8xf32> to vector<1x8x1xf32>
    %515 = tpu.reciprocal %514 {approx = true} : vector<1x8x1xf32> -> vector<1x8x1xf32>
    %516 = vector.broadcast %515 : vector<1x8x1xf32> to vector<1x8x16xf32>
    %517 = arith.mulf %512, %516 : vector<1x8x16xf32>
    "tpu.trace_start"() <{level = 10 : i32, message = "bqk,bkd->bqd"}> : () -> ()
    %cst_225 = arith.constant dense<0.000000e+00> : vector<1x8x8xf32>
    %518 = tpu.matmul %517, %504, %cst_225 {dimension_numbers = #tpu.dot_dimension_numbers<[2], [1], [1], [2], [0, 0, 0, 1, 1, 2], [0], [0]>} : vector<1x8x16xf32>, vector<1x16x8xf32>, vector<1x8x8xf32> -> vector<1x8x8xf32>
    "tpu.trace_stop"() : () -> ()
    %519 = vector.shape_cast %518 : vector<1x8x8xf32> to vector<8x8xf32>
    %c1_226 = arith.constant 1 : index
    %c3_227 = arith.constant 3 : index
    %c0_228 = arith.constant 0 : index
    %c0_229 = arith.constant 0 : index
    %520 = vector.load %arg6[%c1_226, %c3_227, %c0_228, %c0_229] : memref<2x4x8x32xf32, #tpu.memory_space<vmem>>, vector<1x1x8x32xf32>
    %521 = vector.shape_cast %520 : vector<1x1x8x32xf32> to vector<8x32xf32>
    %cst_230 = arith.constant dense<0.000000e+00> : vector<8x32xf32>
    %522 = tpu.matmul %519, %521, %cst_230 {dimension_numbers = #tpu.dot_dimension_numbers<[1], [0], [0], [1], [0, 0, 1, 1], [], []>} : vector<8x8xf32>, vector<8x32xf32>, vector<8x32xf32> -> vector<8x32xf32>
    %523 = arith.addf %474, %522 : vector<8x32xf32>
    %524 = vector.shape_cast %314 : vector<32xf32> to vector<1x32xf32>
    %525 = vector.broadcast %524 : vector<1x32xf32> to vector<8x32xf32>
    %526 = arith.addf %523, %525 : vector<8x32xf32>
    %527 = vector.shape_cast %324 : vector<32xf32> to vector<1x32xf32>
    %528 = vector.broadcast %527 : vector<1x32xf32> to vector<8x32xf32>
    %529 = arith.mulf %528, %526 : vector<8x32xf32>
    %530 = arith.addf %310, %529 : vector<8x32xf32>
    %cst_231 = arith.constant dense<0.000000e+00> : vector<8xf32>
    %531 = vector.multi_reduction <add>, %530, %cst_231 [1] : vector<8x32xf32> to vector<8xf32>
    %532 = vector.shape_cast %531 : vector<8xf32> to vector<8x1xf32>
    %cst_232 = arith.constant 3.200000e+01 : f32
    %533 = vector.broadcast %cst_232 : f32 to vector<8x1xf32>
    %534 = arith.divf %532, %533 : vector<8x1xf32>
    %535 = vector.broadcast %534 : vector<8x1xf32> to vector<8x32xf32>
    %536 = arith.subf %530, %535 : vector<8x32xf32>
    %537 = vector.broadcast %534 : vector<8x1xf32> to vector<8x32xf32>
    %538 = arith.subf %530, %537 : vector<8x32xf32>
    %539 = arith.mulf %536, %538 : vector<8x32xf32>
    %cst_233 = arith.constant dense<0.000000e+00> : vector<8xf32>
    %540 = vector.multi_reduction <add>, %539, %cst_233 [1] : vector<8x32xf32> to vector<8xf32>
    %541 = vector.shape_cast %540 : vector<8xf32> to vector<8x1xf32>
    %cst_234 = arith.constant 3.200000e+01 : f32
    %542 = vector.broadcast %cst_234 : f32 to vector<8x1xf32>
    %543 = arith.divf %541, %542 : vector<8x1xf32>
    %544 = vector.broadcast %534 : vector<8x1xf32> to vector<8x32xf32>
    %545 = arith.subf %530, %544 : vector<8x32xf32>
    %cst_235 = arith.constant 9.99999974E-6 : f32
    %546 = vector.broadcast %cst_235 : f32 to vector<8x1xf32>
    %547 = arith.addf %543, %546 : vector<8x1xf32>
    %548 = math.rsqrt %547 : vector<8x1xf32>
    %549 = vector.broadcast %548 : vector<8x1xf32> to vector<8x32xf32>
    %550 = arith.mulf %545, %549 : vector<8x32xf32>
    %551 = vector.shape_cast %316 : vector<32xf32> to vector<1x32xf32>
    %552 = vector.broadcast %551 : vector<1x32xf32> to vector<8x32xf32>
    %553 = arith.mulf %550, %552 : vector<8x32xf32>
    %554 = vector.shape_cast %318 : vector<32xf32> to vector<1x32xf32>
    %555 = vector.broadcast %554 : vector<1x32xf32> to vector<8x32xf32>
    %556 = arith.addf %553, %555 : vector<8x32xf32>
    %c1_236 = arith.constant 1 : index
    %c0_237 = arith.constant 0 : index
    %c0_238 = arith.constant 0 : index
    %557 = vector.load %arg7[%c1_236, %c0_237, %c0_238] : memref<2x33x64xf32, #tpu.memory_space<vmem>>, vector<1x33x64xf32>
    %558 = vector.shape_cast %557 : vector<1x33x64xf32> to vector<33x64xf32>
    %c1_239 = arith.constant 1 : index
    %c0_240 = arith.constant 0 : index
    %c0_241 = arith.constant 0 : index
    %559 = vector.load %arg8[%c1_239, %c0_240, %c0_241] : memref<2x65x32xf32, #tpu.memory_space<vmem>>, vector<1x65x32xf32>
    %560 = vector.shape_cast %559 : vector<1x65x32xf32> to vector<65x32xf32>
    %561 = vector.extract_strided_slice %558 {offsets = [0, 0], sizes = [32, 64], strides = [1, 1]} : vector<33x64xf32> to vector<32x64xf32>
    %cst_242 = arith.constant dense<0.000000e+00> : vector<8x64xf32>
    %562 = tpu.matmul %556, %561, %cst_242 {dimension_numbers = #tpu.dot_dimension_numbers<[1], [0], [0], [1], [0, 0, 1, 1], [], []>} : vector<8x32xf32>, vector<32x64xf32>, vector<8x64xf32> -> vector<8x64xf32>
    %563 = vector.extract_strided_slice %558 {offsets = [32, 0], sizes = [1, 64], strides = [1, 1]} : vector<33x64xf32> to vector<1x64xf32>
    %564 = vector.shape_cast %563 : vector<1x64xf32> to vector<64xf32>
    %565 = vector.shape_cast %564 : vector<64xf32> to vector<1x64xf32>
    %566 = vector.broadcast %565 : vector<1x64xf32> to vector<8x64xf32>
    %567 = arith.addf %562, %566 : vector<8x64xf32>
    %cst_243 = arith.constant 5.000000e-01 : f32
    %568 = vector.broadcast %cst_243 : f32 to vector<8x64xf32>
    %569 = arith.mulf %568, %567 : vector<8x64xf32>
    %cst_244 = arith.constant 4.471500e-02 : f32
    %570 = vector.broadcast %cst_244 : f32 to vector<8x64xf32>
    %571 = arith.mulf %570, %567 : vector<8x64xf32>
    %572 = arith.mulf %571, %567 : vector<8x64xf32>
    %573 = arith.mulf %572, %567 : vector<8x64xf32>
    %574 = arith.addf %567, %573 : vector<8x64xf32>
    %cst_245 = arith.constant 0.797884583 : f32
    %575 = vector.broadcast %cst_245 : f32 to vector<8x64xf32>
    %576 = arith.mulf %575, %574 : vector<8x64xf32>
    %577 = math.tanh %576 : vector<8x64xf32>
    %cst_246 = arith.constant 1.000000e+00 : f32
    %578 = vector.broadcast %cst_246 : f32 to vector<8x64xf32>
    %579 = arith.addf %578, %577 : vector<8x64xf32>
    %580 = arith.mulf %569, %579 : vector<8x64xf32>
    %581 = vector.extract_strided_slice %560 {offsets = [0, 0], sizes = [64, 32], strides = [1, 1]} : vector<65x32xf32> to vector<64x32xf32>
    %cst_247 = arith.constant dense<0.000000e+00> : vector<8x32xf32>
    %582 = tpu.matmul %580, %581, %cst_247 {dimension_numbers = #tpu.dot_dimension_numbers<[1], [0], [0], [1], [0, 0, 1, 1], [], []>} : vector<8x64xf32>, vector<64x32xf32>, vector<8x32xf32> -> vector<8x32xf32>
    %583 = vector.extract_strided_slice %560 {offsets = [64, 0], sizes = [1, 32], strides = [1, 1]} : vector<65x32xf32> to vector<1x32xf32>
    %584 = vector.shape_cast %583 : vector<1x32xf32> to vector<32xf32>
    %585 = vector.shape_cast %584 : vector<32xf32> to vector<1x32xf32>
    %586 = vector.broadcast %585 : vector<1x32xf32> to vector<8x32xf32>
    %587 = arith.addf %582, %586 : vector<8x32xf32>
    %588 = vector.shape_cast %326 : vector<32xf32> to vector<1x32xf32>
    %589 = vector.broadcast %588 : vector<1x32xf32> to vector<8x32xf32>
    %590 = arith.mulf %589, %587 : vector<8x32xf32>
    %591 = arith.addf %556, %590 : vector<8x32xf32>
    %cst_248 = arith.constant dense<0.000000e+00> : vector<8xf32>
    %592 = vector.multi_reduction <add>, %591, %cst_248 [1] : vector<8x32xf32> to vector<8xf32>
    %593 = vector.shape_cast %592 : vector<8xf32> to vector<8x1xf32>
    %cst_249 = arith.constant 3.200000e+01 : f32
    %594 = vector.broadcast %cst_249 : f32 to vector<8x1xf32>
    %595 = arith.divf %593, %594 : vector<8x1xf32>
    %596 = vector.broadcast %595 : vector<8x1xf32> to vector<8x32xf32>
    %597 = arith.subf %591, %596 : vector<8x32xf32>
    %598 = vector.broadcast %595 : vector<8x1xf32> to vector<8x32xf32>
    %599 = arith.subf %591, %598 : vector<8x32xf32>
    %600 = arith.mulf %597, %599 : vector<8x32xf32>
    %cst_250 = arith.constant dense<0.000000e+00> : vector<8xf32>
    %601 = vector.multi_reduction <add>, %600, %cst_250 [1] : vector<8x32xf32> to vector<8xf32>
    %602 = vector.shape_cast %601 : vector<8xf32> to vector<8x1xf32>
    %cst_251 = arith.constant 3.200000e+01 : f32
    %603 = vector.broadcast %cst_251 : f32 to vector<8x1xf32>
    %604 = arith.divf %602, %603 : vector<8x1xf32>
    %605 = vector.broadcast %595 : vector<8x1xf32> to vector<8x32xf32>
    %606 = arith.subf %591, %605 : vector<8x32xf32>
    %cst_252 = arith.constant 9.99999974E-6 : f32
    %607 = vector.broadcast %cst_252 : f32 to vector<8x1xf32>
    %608 = arith.addf %604, %607 : vector<8x1xf32>
    %609 = math.rsqrt %608 : vector<8x1xf32>
    %610 = vector.broadcast %609 : vector<8x1xf32> to vector<8x32xf32>
    %611 = arith.mulf %606, %610 : vector<8x32xf32>
    %612 = vector.shape_cast %320 : vector<32xf32> to vector<1x32xf32>
    %613 = vector.broadcast %612 : vector<1x32xf32> to vector<8x32xf32>
    %614 = arith.mulf %611, %613 : vector<8x32xf32>
    %615 = vector.shape_cast %322 : vector<32xf32> to vector<1x32xf32>
    %616 = vector.broadcast %615 : vector<1x32xf32> to vector<8x32xf32>
    %617 = arith.addf %614, %616 : vector<8x32xf32>
    %618 = vector.shape_cast %617 : vector<8x32xf32> to vector<1x8x32xf32>
    %c0_253 = arith.constant 0 : index
    %c0_254 = arith.constant 0 : index
    %c0_255 = arith.constant 0 : index
    %619 = vector.load %arg10[%c0_253, %c0_254, %c0_255] : memref<1x8x32xf32, #tpu.memory_space<vmem>>, vector<1x8x32xf32>
    tpu.vector_store %arg10[%c0_253, %c0_254, %c0_255], %618 {strides = array<i32>} : memref<1x8x32xf32, #tpu.memory_space<vmem>>, vector<1x8x32xf32>,
    return
  }
  func.func @transform_0(%arg0: i32) -> (i32, i32, i32) {
    %c0_i32 = arith.constant 0 : i32
    %c0_i32_0 = arith.constant 0 : i32
    %c0_i32_1 = arith.constant 0 : i32
    return %arg0, %c0_i32, %c0_i32_0 : i32, i32, i32
  }
  func.func @transform_1(%arg0: i32) -> (i32, i32, i32) {
    %c0_i32 = arith.constant 0 : i32
    %c0_i32_0 = arith.constant 0 : i32
    %c0_i32_1 = arith.constant 0 : i32
    return %arg0, %c0_i32, %c0_i32_0 : i32, i32, i32
  }
  func.func @transform_2(%arg0: i32) -> (i32, i32, i32, i32) {
    %c0_i32 = arith.constant 0 : i32
    %c0_i32_0 = arith.constant 0 : i32
    %c0_i32_1 = arith.constant 0 : i32
    %c0_i32_2 = arith.constant 0 : i32
    %c0_i32_3 = arith.constant 0 : i32
    return %c0_i32, %c0_i32_0, %c0_i32_1, %c0_i32_2 : i32, i32, i32, i32
  }
  func.func @transform_3(%arg0: i32) -> (i32, i32, i32, i32) {
    %c0_i32 = arith.constant 0 : i32
    %c0_i32_0 = arith.constant 0 : i32
    %c0_i32_1 = arith.constant 0 : i32
    %c0_i32_2 = arith.constant 0 : i32
    %c0_i32_3 = arith.constant 0 : i32
    return %c0_i32, %c0_i32_0, %c0_i32_1, %c0_i32_2 : i32, i32, i32, i32
  }
  func.func @transform_4(%arg0: i32) -> (i32, i32, i32, i32) {
    %c0_i32 = arith.constant 0 : i32
    %c0_i32_0 = arith.constant 0 : i32
    %c0_i32_1 = arith.constant 0 : i32
    %c0_i32_2 = arith.constant 0 : i32
    %c0_i32_3 = arith.constant 0 : i32
    return %c0_i32, %c0_i32_0, %c0_i32_1, %c0_i32_2 : i32, i32, i32, i32
  }
  func.func @transform_5(%arg0: i32) -> (i32, i32, i32, i32) {
    %c0_i32 = arith.constant 0 : i32
    %c0_i32_0 = arith.constant 0 : i32
    %c0_i32_1 = arith.constant 0 : i32
    %c0_i32_2 = arith.constant 0 : i32
    %c0_i32_3 = arith.constant 0 : i32
    return %c0_i32, %c0_i32_0, %c0_i32_1, %c0_i32_2 : i32, i32, i32, i32
  }
  func.func @transform_6(%arg0: i32) -> (i32, i32, i32) {
    %c0_i32 = arith.constant 0 : i32
    %c0_i32_0 = arith.constant 0 : i32
    %c0_i32_1 = arith.constant 0 : i32
    %c0_i32_2 = arith.constant 0 : i32
    return %c0_i32, %c0_i32_0, %c0_i32_1 : i32, i32, i32
  }
  func.func @transform_7(%arg0: i32) -> (i32, i32, i32) {
    %c0_i32 = arith.constant 0 : i32
    %c0_i32_0 = arith.constant 0 : i32
    %c0_i32_1 = arith.constant 0 : i32
    %c0_i32_2 = arith.constant 0 : i32
    return %c0_i32, %c0_i32_0, %c0_i32_1 : i32, i32, i32
  }
  func.func @transform_8(%arg0: i32) -> (i32, i32, i32) {
    %c0_i32 = arith.constant 0 : i32
    %c0_i32_0 = arith.constant 0 : i32
    %c0_i32_1 = arith.constant 0 : i32
    %c0_i32_2 = arith.constant 0 : i32
    return %c0_i32, %c0_i32_0, %c0_i32_1 : i32, i32, i32
  }
  func.func @transform_9(%arg0: i32) -> (i32, i32, i32) {
    %c0_i32 = arith.constant 0 : i32
    %c0_i32_0 = arith.constant 0 : i32
    %c0_i32_1 = arith.constant 0 : i32
    return %arg0, %c0_i32, %c0_i32_0 : i32, i32, i32
  }
}

</mosaic_0001>

<bundles_post_ra>
// kernel: tpu_custom_call.1
= control target key start
LH: loop header
LB: loop body
LE: loop exit
PB: predicated region body
PF: predicated region fallthrough
CT: control target
= control target key end

     0   :  { %14 = vsyncpa [#allocation3], 0  ;;  %s7224_s0 = inlined_call_operand.vmem [shape: f32[2,16,32], index: 0, kind: input, shape index: {}]   ;;  %s7225_s1 = inlined_call_operand.vmem [shape: f32[2,8,32], index: 1, kind: input, shape index: {}]   ;;  %s7226_s2 = inlined_call_operand.vmem [shape: f32[2,4,33,8], index: 2, kind: input, shape index: {}]   ;;  %s7227_s3 = inlined_call_operand.vmem [shape: f32[2,4,33,8], index: 3, kind: input, shape index: {}]   ;;  %s7228_s4 = inlined_call_operand.vmem [shape: f32[2,4,33,8], index: 4, kind: input, shape index: {}]   ;;  %s7229_s5 = inlined_call_operand.vmem [shape: f32[2,4,8,32], index: 5, kind: input, shape index: {}]   ;;  %s7230_s6 = inlined_call_operand.vmem [shape: f32[2,33,64], index: 6, kind: input, shape index: {}]   ;;  %s7231_s7 = inlined_call_operand.vmem [shape: f32[2,65,32], index: 7, kind: input, shape index: {}]   ;;  %s7232_s8 = inlined_call_operand.vmem [shape: f32[2,7,32], index: 8, kind: input, shape index: {}]   ;;  %s7233_s9 = inlined_call_operand.hbm [shape: f32[2,8,32], index: 9, kind: output, shape index: {}]  }
   0x1   :  { %16 = vsyncpa [#allocation3 + $0x1], 0  ;;  %s6281_s30 = smov 0   ;;  %s6283_s10 = smov 0  }
   0x2   :  { %s6285_s11 = smov 0   ;;  %s6287_s12 = smov 0  }
   0x3 LB: > { %s6302_s13 = sadd.s32 4294967295, %s6225_s12   ;;  %s4851_s14 = sadd.s32 4294967294, %s6225_s12   ;;  %s6225_s12 = sphi %s6287_s12, %s7241_s12   ;;  %s6221_s11 = sphi %s6285_s11, %s7240_s11   ;;  %s6217_s10 = sphi %s6283_s10, %s7239_s10   ;;  %s6213_s30 = sphi %s6281_s30, %s7238_s30  }
   0x4   : > { %s6306_s15 = sadd.s32 1, %s6225_s12   ;;  %s228_s16 = sadd.s32 1, %s6221_s11 }
   0x5   : > { %s225_s17 = ssub.s32 %s6225_s12, %s6306_s15  ;;  %p238_p0 = scmp.ne.s32.totalorder %s6221_s11, %s6217_s10 }
   0x6   : > { %p226_p1 = scmp.eq.s32.totalorder %s225_s17, 0  ;;  %p239_p2 = scmp.eq.s32.totalorder %s6302_s13, 1 }
   0x7   : > { %p244_p3 = scmp.ne.s32.totalorder %s6217_s10, %s6213_s30  ;;  %p245_p4 = scmp.eq.s32.totalorder %s4851_s14, 1 }
   0x8   : > { %s6317_s18 = scalar_select %p226_p1, %s6221_s11, %s228_s16  }
   0x9   : > { %p6319_p5 = por %p239_p2, %p238_p0  ;;  %p6323_p6 = por %p245_p4, %p244_p3 }
   0xa   : > { %p4854_p7 = scmp.ge.s32.totalorder %s6225_s12, 1  ;;  %p299_p8 = scmp.lt.s32.totalorder %s6225_s12, 3 }
   0xc   : > { %p300_p9 = pnand %p4854_p7, %p299_p8 }
   0xd   : > { %v357_v0 = vld [vmem:[%s7227_s3] sm:$0xff] (!%p300_p9)  ;;  %v358_v1 = vld [vmem:[%s7227_s3 + $0x8] sm:$0xff] (!%p300_p9)  ;;  %v359_v2 = vld [vmem:[%s7227_s3 + $0x10] sm:$0xff] (!%p300_p9)  ;;  %p339_p10 = scmp.lt.s32.totalorder (!%p300_p9), %s6302_s13, 1  ;;  %v6227_v5 = vmov (!%p300_p9), 0.0|0.0   ;;  %vm6228_vm0 = vmmov (!%p300_p9), 0  }
   0xe   : > { %303 = sbr.rel (%p300_p9) target bundleno = 9961 (0x26e9), region = 56  ;;  %v5813_v3 = vpack.c.bf16 (!%p300_p9), %v358_v1, %v357_v0  ;;  %v360_v4 = vld [vmem:[%s7227_s3 + $0x18] sm:$0xff] (!%p300_p9)  ;;  %5807 = vmatprep.subr.bf16.mxu0 (!%p300_p9), %v6227_v5  ;;  %v352_v6 = vld [vmem:[%s7226_s2] sm:$0xff] (!%p300_p9)  ;;  %v353_v7 = vld [vmem:[%s7226_s2 + $0x8] sm:$0xff] (!%p300_p9)  ;;  %v6229_v12 = vmov (!%p300_p9), 0.0   ;;  %vm371_vm1 = vcmask (!%p300_p9), 261120  }
   0xf   : > { %v5817_v8 = vpack.c.bf16 (!%p300_p9), %v360_v4, %v359_v2  ;;  %v5808_v9 = vpack.c.bf16 (!%p300_p9), %v353_v7, %v352_v6  ;;  %v354_v10 = vld [vmem:[%s7226_s2 + $0x10] sm:$0xff] (!%p300_p9)  ;;  %v355_v11 = vld [vmem:[%s7226_s2 + $0x18] sm:$0xff] (!%p300_p9)  ;;  %5339 = vmatprep.mubr.msk.f32.mxu0 (!%p300_p9), %vm6228_vm0, %v6229_v12  ;;  %v4861_v17 = vld [vmem:[%s7227_s3 + $0x20] ss:$0 sm:$0xff] (!%p300_p9)  ;;  %vm609_vm2 = vcmask (!%p300_p9), 64512   ;;  %vm690_vm4 = vcmask (!%p300_p9), 130048  }
  0x10   : > { %5814 = vmatprep.subr.bf16.mxu1 (!%p300_p9), %v5813_v3  ;;  %v5811_v13 = vpack.c.bf16 (!%p300_p9), %v355_v11, %v354_v10  ;;  %vm6391_vm3 = vmpackc.low (!%p300_p9), %vm609_vm2, %vm609_vm2  ;;  %v4859_v26 = vld [vmem:[%s7226_s2 + $0x20] ss:$0 sm:$0xff] (!%p300_p9)  ;;  %v363_v29 = vld [vmem:[%s7228_s4 + $0x8] sm:$0xff] (!%p300_p9)  ;;  %vm2457_vm5 = vcmask (!%p300_p9), 523264   ;;  %s5099_s28 = sshll.u32 (!%p300_p9), %s6302_s13, 7 }
  0x11   : > { %5816 = vmatpush3.bf16.msra.mxu1 (!%p300_p9), %v5813_v3  ;;  %5809 = vmatpush3.bf16.msra.mxu0 (!%p300_p9), %v5808_v9  ;;  %v362_v28 = vld [vmem:[%s7228_s4] sm:$0xff] (!%p300_p9)  ;;  %v364_v30 = vld [vmem:[%s7228_s4 + $0x10] sm:$0xff] (!%p300_p9)  ;;  %v365_v32 = vld [vmem:[%s7228_s4 + $0x18] sm:$0xff] (!%p300_p9) }
  0x12   : > { %5818 = vmatprep.subr.bf16.mxu1 (!%p300_p9), %v5817_v8  ;;  %5810 = vmatprep.subr.bf16.mxu0 (!%p300_p9), %v6227_v5  ;;  %v5821_v31 = vpack.c.bf16 (!%p300_p9), %v363_v29, %v362_v28  ;;  %v5825_v33 = vpack.c.bf16 (!%p300_p9), %v365_v32, %v364_v30  ;;  %v4864_v44 = vld [vmem:[%s7228_s4 + $0x20] ss:$0 sm:$0xff] (!%p300_p9)  ;;  %v4876_v49 = vld [vmem:[%s7227_s3 + $0x28] sm:$0xff] (!%p300_p9)  ;;  %v4877_v50 = vld [vmem:[%s7227_s3 + $0x30] sm:$0xff] (!%p300_p9) }
  0x13   : > { %v5842_v51 = vpack.c.bf16 (!%p300_p9), %v4877_v50, %v4876_v49  ;;  %v4871_v52 = vld [vmem:[%s7226_s2 + $0x28] sm:$0xff] (!%p300_p9)  ;;  %v4872_v53 = vld [vmem:[%s7226_s2 + $0x30] sm:$0xff] (!%p300_p9)  ;;  %v4873_v55 = vld [vmem:[%s7226_s2 + $0x38] sm:$0xff] (!%p300_p9) }
  0x14   : > { %v5837_v54 = vpack.c.bf16 (!%p300_p9), %v4872_v53, %v4871_v52  ;;  %v4874_v56 = vld [vmem:[%s7226_s2 + $0x40] sm:$0xff] (!%p300_p9)  ;;  %v4881_v57 = vld [vmem:[%s7228_s4 + $0x28] sm:$0xff] (!%p300_p9)  ;;  %v4882_v58 = vld [vmem:[%s7228_s4 + $0x30] sm:$0xff] (!%p300_p9) }
  0x15   : > { %s340_s21 = scalar_select %p339_p10, %s6302_s13, 1  ;;  %5820 = vmatpush3.bf16.msra.mxu1 %v5817_v8  ;;  %5812 = vmatpush3.bf16.msra.mxu0 %v5811_v13  ;;  %v5840_v59 = vpack.c.bf16 %v4874_v56, %v4873_v55  ;;  %v5850_v60 = vpack.c.bf16 %v4882_v58, %v4881_v57  ;;  %v4883_v61 = vld [vmem:[%s7228_s4 + $0x38] sm:$0xff]  ;;  %v4884_v62 = vld [vmem:[%s7228_s4 + $0x40] sm:$0xff]  ;;  %v4891_v10 = vld [vmem:[%s7228_s4 + $0x48] ss:$0 sm:$0xff] }
  0x16   : > { %5829 = vmatprep.subr.bf16.mxu1 %v6227_v5  ;;  %5822 = vmatprep.subr.bf16.mxu0 %v5821_v31  ;;  %v5854_v63 = vpack.c.bf16 %v4884_v62, %v4883_v61  ;;  %v4878_v1 = vld [vmem:[%s7227_s3 + $0x38] sm:$0xff]  ;;  %v4879_v2 = vld [vmem:[%s7227_s3 + $0x40] sm:$0xff]  ;;  %v4886_v29 = vld [vmem:[%s7226_s2 + $0x48] ss:$0 sm:$0xff]  ;;  %s6230_s13 = smov [#allocation2]  }
  0x17   : > { %s5102_s26 = sshll.u32 %s340_s21, 4  ;;  %s4858_s27 = sshll.u32 %s340_s21, 3  ;;  %v5846_v6 = vpack.c.bf16 %v4879_v2, %v4878_v1  ;;  %v775_v7 = vld [vmem:[%s7229_s5] sm:$0xff]  ;;  %v4918_v52 = vld [vmem:[%s7227_s3 + $0x70] ss:$0 sm:$0xff]  ;;  %v4904_v62 = vld [vmem:[%s7226_s2 + $0x68] sm:$0xff] }
  0x18   : > { %s6361_s14 = scalar_lea.vmem %s7224_s0, %s5102_s26  ;;  %s347_s22 = scalar_lea.vmem %s7225_s1, %s4858_s27  ;;  %v4901_v58 = vld [vmem:[%s7226_s2 + $0x50] sm:$0xff]  ;;  %v4903_v61 = vld [vmem:[%s7226_s2 + $0x60] sm:$0xff] }
  0x19   : > { %v6368_v14 = vld [vmem:[%s6361_s14] sm:$0xff]  ;;  %v6373_v15 = vld [vmem:[%s6361_s14 + $0x8] sm:$0xff]  ;;  %v5869_v1 = vpack.c.bf16 %v4904_v62, %v4903_v61  ;;  %s336_s26 = sand.u32 1, %s6217_s10   ;;  %s7181_s21 = scalar_lea.hbm %s7233_s9, %s5099_s28 }
  0x1a   : > { %5350 = vmatprep.mubr.msk.f32.mxu1 %vm371_vm1, %v6368_v14  ;;  %v6375_v16 = vld [vmem:[%s347_s22] sm:$0xff]  ;;  %s4855_s27 = sshll.u32 %s336_s26, 3  ;;  %s4767_s23 = scalar_lea.sflag [#allocation3], %s336_s26 }
  0x1b   : > { %5351 = vmatmul.mubr.msk.f32.vlgmr.msra.gmra.mrb[0].mxu1 %vm371_vm1, %v6373_v15  ;;  %5340 = vmatmul.mubr.msk.f32.vlgmr.msra.gmra.mrb[0].mxu0 %vm371_vm1, %v6375_v16  ;;  %v5062_v24 = vld [vmem:[%s7228_s4 + $0x120] sm:$0xff]  ;;  %s338_s29 = scalar_lea.vmem [#allocation2], %s4855_s27 }
  0x1c   : > { %5368 = vmatprep.mubr.msk.f32.mxu1 %vm6228_vm0, %v6229_v12  ;;  %5361 = vmatprep.mubr.msk.f32.mxu0 %vm371_vm1, %v6368_v14  ;;  %s4780_s16 = sshll.u32 %s338_s29, 4  ;;  %s7183_s16 = int_to_ptr.vmem [resolvable:$true] %s4780_s16 }
  0x1d   : > { %5824 = vmatpush3.bf16.msra.mxu0 %v5821_v31  ;;  %s6163_s24 = scalar_lea.vmem %s7183_s16, 128 }
  0x1e   : > { %5826 = vmatprep.subr.bf16.mxu0 %v5825_v33  ;;  %p6164_p11 = scmp.ne.s32.totalorder %s7183_s16, %s6163_s24 }
  0x20   : > { %p6165_p12 = pnand %p6164_p11, %p6319_p5 }
  0x21   : > { %5828 = vmatpush3.bf16.msra.mxu0 %v5825_v33 }
  0x22   : > { %5833 = vmatprep.subr.bf16.mxu0 %v6227_v5  ;;  %p6166_p13 = pneg %p6165_p12 }
  0x24   : > { %5362 = vmatmul.mubr.msk.f32.vlgmr.msra.gmra.mrb[2].mxu0 %vm371_vm1, %v6373_v15 }
  0x25   : > { %5375 = vmatprep.mubr.msk.f32.mxu0 %vm6228_vm0, %v6229_v12 }
  0xee   : > { %v5352_v18 = vpop.f32.mrb[0].mxu1  ;;  %v441_v19 = vpop.f32.mrb[0].mxu0 }
  0xef   : > { %v527_v20 = vadd.f32 %v5352_v18, %v4861_v17  ;;  %v521_v21 = vpop.f32.mrb[1].mxu1  ;;  %v5341_v22 = vpop.f32.mrb[1].mxu0  ;;  %v442_v27 = vadd.f32 %v4859_v26, %v441_v19 }
  0xf0   : > { %v522_v23 = vadd.f32 %v4861_v17, %v521_v21  ;;  %v4888_v22 = vld [vmem:[%s7227_s3 + $0x48] ss:$0 sm:$0xff] }
  0xf2   : > { %v5830_v25 = vpack.c.bf16 %v527_v20, %v522_v23 }
  0xf4   : > { %5832 = vmatpush3.bf16.xpose.msk.msra.mxu1 %vm6391_vm3, %v5830_v25 }
  0xf5   : > { %5836 = vmatprep.subr.bf16.mxu1 %v6227_v5 }
  0xf7   : > { %v5363_v43 = vpop.f32.mrb[2].mxu0 }
  0xf8   : > { %v600_v45 = vpop.f32.mrb[3].mxu0  ;;  %v606_v46 = vadd.f32 %v5363_v43, %v4864_v44  ;;  %v4907_v43 = vld [vmem:[%s7227_s3 + $0x58] sm:$0xff] }
  0xf9   : > { %v601_v47 = vadd.f32 %v4864_v44, %v600_v45  ;;  %v4908_v44 = vld [vmem:[%s7227_s3 + $0x60] sm:$0xff] }
  0xfb   : > { %5369 = vmatmul.mubr.msk.f32.vlgmr.msra.gmra.mrb[2].mxu1 %vm609_vm2, %v442_v27  ;;  %v5834_v48 = vpack.c.bf16 %v606_v46, %v601_v47  ;;  %v4909_v46 = vld [vmem:[%s7227_s3 + $0x68] sm:$0xff] }
  0xfc   : > { %5386 = vmatprep.mubr.msk.f32.mxu1 %vm6228_vm0, %v6229_v12  ;;  %5838 = vmatpush3.bf16.msra.mxu1 %v5837_v54  ;;  %v5875_v47 = vpack.c.bf16 %v4909_v46, %v4908_v44  ;;  %v4931_v44 = vld [vmem:[%s7226_s2 + $0x80] sm:$0xff]  ;;  %v4932_v46 = vld [vmem:[%s7226_s2 + $0x88] sm:$0xff] }
  0xfd   : > { %5835 = vmatpush3.bf16.msra.mxu0 %v5834_v48  ;;  %5839 = vmatprep.subr.bf16.mxu1 %v6227_v5 }
  0xfe   : > { %5843 = vmatprep.subr.bf16.mxu0 %v5842_v51 }
 0x100   : > { %5841 = vmatpush3.bf16.msra.mxu1 %v5840_v59  ;;  %v4902_v59 = vld [vmem:[%s7226_s2 + $0x58] sm:$0xff] }
 0x101   : > { %5851 = vmatprep.subr.bf16.mxu1 %v5850_v60 }
 0x103   : > { %5387 = vmatmul.mubr.msk.f32.vlgmr.msra.gmra.mrb[4].mxu1 %vm371_vm1, %v6375_v16 }
 0x104   : > { %5853 = vmatpush3.bf16.msra.mxu1 %v5850_v60  ;;  %5408 = vmatprep.mubr.msk.f32.mxu1 %vm371_vm1, %v6368_v14  ;;  %v5866_v60 = vpack.c.bf16 %v4902_v59, %v4901_v58  ;;  %v4947_v59 = vld [vmem:[%s7227_s3 + $0x98] ss:$0 sm:$0xff] }
 0x105   : > { %5855 = vmatprep.subr.bf16.mxu1 %v5854_v63 }
 0x108   : > { %5857 = vmatpush3.bf16.msra.mxu1 %v5854_v63 }
 0x109   : > { %5430 = vmatprep.subr.mxu1 %v6229_v12 }
 0x10b   : > { %5409 = vmatmul.mubr.msk.f32.vlgmr.msra.gmra.mrb[6].mxu1 %vm371_vm1, %v6373_v15 }
 0x10c   : > { %5432 = vmatprep.mubr.msk.f32.mxu1 %vm6228_vm0, %v6229_v12  ;;  %5431 = vmatpush3.msra.mxu1 %v775_v7 }
 0x1ce   : > { %v685_v34 = vpop.f32.mrb[2].mxu1 }
 0x1cf   : > { %v689_v35 = vmul.f32 0.35355338, %v685_v34  ;;  %v5370_v36 = vpop.f32.mrb[3].mxu1 }
 0x1d1   : > { %v691_v37 = vsel %vm690_vm4, %v689_v35, -inf }
 0x1d2   : > { %692 = vmax.xlane.f32.xlu0 %v691_v37 }
 0x1d6   : > { %v864_v8 = vpop.f32.mrb[4].mxu1 }
 0x1d7   : > { %v5388_v9 = vpop.f32.mrb[5].mxu1  ;;  %v865_v30 = vadd.f32 %v4886_v29, %v864_v8 }
 0x1de   : > { %v5410_v11 = vpop.f32.mrb[6].mxu1 }
 0x1df   : > { %v1023_v13 = vadd.f32 %v5410_v11, %v4891_v10  ;;  %v1017_v17 = vpop.f32.mrb[7].mxu1  ;;  %v4912_v11 = vld [vmem:[%s7228_s4 + $0x58] sm:$0xff] }
 0x1e0   : > { %v1018_v18 = vadd.f32 %v4891_v10, %v1017_v17  ;;  %v4911_v10 = vld [vmem:[%s7228_s4 + $0x50] sm:$0xff] }
 0x1e1   : > { %v5879_v17 = vpack.c.bf16 %v4912_v11, %v4911_v10 }
 0x1e2   : > { %v5863_v19 = vpack.c.bf16 %v1023_v13, %v1018_v18  ;;  %v4913_v13 = vld [vmem:[%s7228_s4 + $0x60] sm:$0xff]  ;;  %v4914_v18 = vld [vmem:[%s7228_s4 + $0x68] sm:$0xff] }
 0x25f   : > { %v693_v38 = vpop.xlane.xlu0 %692 }
 0x260   : > { %v694_v39 = vsub.f32 %v689_v35, %v693_v38 }
 0x262   : > { %v695_v40 = vmul.f32 1.442695, %v694_v39 }
 0x264   : > { %6117 = vpow2.f32 %v695_v40 }
 0x26e   : > { %v6118_v41 = vpop.eup %6117 }
 0x26f   : > { %v697_v42 = vsel %vm690_vm4, %v6118_v41, 0.0 }
 0x270   : > { %698 = vadd.xlane.f32.xlu0 %v697_v42  ;;  %v4906_v42 = vld [vmem:[%s7227_s3 + $0x50] sm:$0xff] }
 0x271   : > { %v5871_v45 = vpack.c.bf16 %v4907_v43, %v4906_v42  ;;  %v4930_v43 = vld [vmem:[%s7226_s2 + $0x78] sm:$0xff] }
 0x273   : > { %5872 = vmatprep.subr.bf16.mxu1 %v5871_v45 }
 0x2fd   : > { %v699_v0 = vpop.xlane.xlu0 %698 }
 0x2fe   : > { %6119 = vrcp.f32 %v699_v0 }
 0x308   : > { %v6120_v3 = vpop.eup %6119 }
 0x309   : > { %v701_v4 = vmul.f32 %v6120_v3, %v6118_v41 }
 0x30b   : > { %5376 = vmatmul.mubr.msk.f32.vlgmr.msra.gmra.mrb[4].mxu0 %vm690_vm4, %v701_v4 }
 0x30c   : > { %5845 = vmatpush3.bf16.msra.mxu0 %v5842_v51  ;;  %5397 = vmatprep.mubr.msk.f32.mxu0 %vm371_vm1, %v6368_v14  ;;  %v4898_v51 = vld [vmem:[%s7229_s5 + $0x8] sm:$0xff] }
 0x30d   : > { %5847 = vmatprep.subr.bf16.mxu0 %v5846_v6 }
 0x310   : > { %5849 = vmatpush3.bf16.msra.mxu0 %v5846_v6  ;;  %v4916_v6 = vld [vmem:[%s7226_s2 + $0x70] ss:$0 sm:$0xff] }
 0x311   : > { %5858 = vmatprep.subr.bf16.mxu0 %v6227_v5 }
 0x313   : > { %5398 = vmatmul.mubr.msk.f32.vlgmr.msra.gmra.mrb[6].mxu0 %vm371_vm1, %v6373_v15 }
 0x314   : > { %5415 = vmatprep.mubr.msk.f32.mxu0 %vm6228_vm0, %v6229_v12 }
 0x3de   : > { %v771_v20 = vpop.f32.mrb[4].mxu0 }
 0x3df   : > { %v5377_v21 = vpop.f32.mrb[5].mxu0  ;;  %5433 = vmatmul.mubr.msk.f32.vlgmr.msra.gmra.mrb[8].mxu1 %vm609_vm2, %v771_v20 }
 0x3e0   : > { %5454 = vmatprep.mubr.msk.f32.mxu1 %vm371_vm1, %v6368_v14  ;;  %5874 = vmatpush3.bf16.msra.mxu1 %v5871_v45  ;;  %v5895_v45 = vpack.c.bf16 %v4931_v44, %v4930_v43 }
 0x3e1   : > { %5876 = vmatprep.subr.bf16.mxu1 %v5875_v47 }
 0x3e4   : > { %5878 = vmatpush3.bf16.msra.mxu1 %v5875_v47  ;;  %v4933_v47 = vld [vmem:[%s7226_s2 + $0x90] sm:$0xff] }
 0x3e5   : > { %5887 = vmatprep.subr.bf16.mxu1 %v6227_v5 }
 0x3e6   : > { %v5399_v23 = vpop.f32.mrb[6].mxu0 }
 0x3e7   : > { %v944_v25 = vadd.f32 %v5399_v23, %v4888_v22  ;;  %v938_v26 = vpop.f32.mrb[7].mxu0  ;;  %5455 = vmatmul.mubr.msk.f32.vlgmr.msra.gmra.mrb[10].mxu1 %vm371_vm1, %v6373_v15 }
 0x3e8   : > { %v939_v27 = vadd.f32 %v4888_v22, %v938_v26  ;;  %5472 = vmatprep.mubr.msk.f32.mxu1 %vm6228_vm0, %v6229_v12 }
 0x3ea   : > { %v5859_v28 = vpack.c.bf16 %v944_v25, %v939_v27 }
 0x3ec   : > { %5861 = vmatpush3.bf16.xpose.msk.msra.mxu0 %vm6391_vm3, %v5859_v28 }
 0x3ed   : > { %5862 = vmatprep.subr.bf16.mxu0 %v6227_v5 }
 0x3f3   : > { %5416 = vmatmul.mubr.msk.f32.vlgmr.msra.gmra.mrb[8].mxu0 %vm609_vm2, %v865_v30 }
 0x3f4   : > { %5864 = vmatpush3.bf16.msra.mxu0 %v5863_v19  ;;  %5422 = vmatprep.mubr.msk.f32.mxu0 %vm6228_vm0, %v6229_v12  ;;  %v5883_v19 = vpack.c.bf16 %v4914_v18, %v4913_v13 }
 0x3f5   : > { %5425 = vmatprep.subr.mxu0 %v6229_v12 }
 0x4b2   : > { %v1334_v31 = vpop.f32.mrb[8].mxu1 }
 0x4b3   : > { %v5434_v32 = vpop.f32.mrb[9].mxu1 }
 0x4ba   : > { %v5456_v53 = vpop.f32.mrb[10].mxu1 }
 0x4bb   : > { %v1506_v54 = vadd.f32 %v5456_v53, %v4918_v52  ;;  %v1500_v55 = vpop.f32.mrb[11].mxu1 }
 0x4bc   : > { %v1501_v56 = vadd.f32 %v4918_v52, %v1500_v55 }
 0x4be   : > { %v5888_v57 = vpack.c.bf16 %v1506_v54, %v1501_v56 }
 0x4c0   : > { %5890 = vmatpush3.bf16.xpose.msk.msra.mxu1 %vm6391_vm3, %v5888_v57 }
 0x4c1   : > { %5482 = vmatprep.subr.mxu1 %v6229_v12 }
 0x4c6   : > { %v1101_v33 = vpop.f32.mrb[8].mxu0 }
 0x4c7   : > { %v1105_v34 = vmul.f32 0.35355338, %v1101_v33  ;;  %v5417_v35 = vpop.f32.mrb[9].mxu0 }
 0x4c9   : > { %v1106_v36 = vsel %vm690_vm4, %v1105_v34, -inf }
 0x4ca   : > { %1107 = vmax.xlane.f32.xlu1 %v1106_v36  ;;  %v4928_v36 = vld [vmem:[%s7229_s5 + $0x10] sm:$0xff] }
 0x557   : > { %v1108_v37 = vpop.xlane.xlu1 %1107 }
 0x558   : > { %v1109_v38 = vsub.f32 %v1105_v34, %v1108_v37 }
 0x55a   : > { %v1110_v39 = vmul.f32 1.442695, %v1109_v38 }
 0x55c   : > { %6121 = vpow2.f32 %v1110_v39 }
 0x566   : > { %v6122_v40 = vpop.eup %6121 }
 0x567   : > { %v1112_v41 = vsel %vm690_vm4, %v6122_v40, 0.0 }
 0x568   : > { %1113 = vadd.xlane.f32.xlu1 %v1112_v41  ;;  %v4936_v41 = vld [vmem:[%s7227_s3 + $0x80] sm:$0xff] }
 0x5f5   : > { %v1114_v48 = vpop.xlane.xlu1 %1113 }
 0x5f6   : > { %6123 = vrcp.f32 %v1114_v48  ;;  %v5898_v48 = vpack.c.bf16 %v4933_v47, %v4932_v46 }
 0x600   : > { %v6124_v49 = vpop.eup %6123 }
 0x601   : > { %v1116_v50 = vmul.f32 %v6124_v49, %v6122_v40  ;;  %v4935_v40 = vld [vmem:[%s7227_s3 + $0x78] sm:$0xff]  ;;  %v4937_v49 = vld [vmem:[%s7227_s3 + $0x88] sm:$0xff] }
 0x602   : > { %v5900_v42 = vpack.c.bf16 %v4936_v41, %v4935_v40 }
 0x603   : > { %5423 = vmatmul.mubr.msk.f32.vlgmr.msra.gmra.mrb[10].mxu0 %vm690_vm4, %v1116_v50  ;;  %v4938_v50 = vld [vmem:[%s7227_s3 + $0x90] sm:$0xff] }
 0x604   : > { %5426 = vmatpush3.msra.mxu0 %v4898_v51  ;;  %5427 = vmatprep.mubr.msk.f32.mxu0 %vm6228_vm0, %v6229_v12  ;;  %v5904_v51 = vpack.c.bf16 %v4938_v50, %v4937_v49 }
 0x605   : > { %5865 = vmatprep.subr.bf16.mxu0 %v6227_v5 }
 0x6d6   : > { %v1186_v63 = vpop.f32.mrb[10].mxu0 }
 0x6d7   : > { %v5424_v0 = vpop.f32.mrb[11].mxu0  ;;  %5428 = vmatmul.mubr.msk.f32.vlgmr.msra.gmra.mrb[12].mxu0 %vm609_vm2, %v1186_v63 }
 0x6d8   : > { %5867 = vmatpush3.bf16.msra.mxu0 %v5866_v60  ;;  %5443 = vmatprep.mubr.msk.f32.mxu0 %vm6228_vm0, %v6229_v12 }
 0x6d9   : > { %5868 = vmatprep.subr.bf16.mxu0 %v6227_v5 }
 0x6dc   : > { %5870 = vmatpush3.bf16.msra.mxu0 %v5869_v1  ;;  %v4945_v1 = vld [vmem:[%s7226_s2 + $0x98] ss:$0 sm:$0xff] }
 0x6dd   : > { %5880 = vmatprep.subr.bf16.mxu0 %v5879_v17 }
 0x6df   : > { %5444 = vmatmul.mubr.msk.f32.vlgmr.msra.gmra.mrb[14].mxu0 %vm371_vm1, %v6375_v16 }
 0x6e0   : > { %5465 = vmatprep.mubr.msk.f32.mxu0 %vm371_vm1, %v6368_v14  ;;  %5882 = vmatpush3.bf16.msra.mxu0 %v5879_v17 }
 0x6e1   : > { %5884 = vmatprep.subr.bf16.mxu0 %v5883_v19 }
 0x6e4   : > { %5886 = vmatpush3.bf16.msra.mxu0 %v5883_v19 }
 0x6e5   : > { %5891 = vmatprep.subr.bf16.mxu0 %v6227_v5 }
 0x6e7   : > { %5466 = vmatmul.mubr.msk.f32.vlgmr.msra.gmra.mrb[16].mxu0 %vm371_vm1, %v6373_v15 }
 0x6e8   : > { %5479 = vmatprep.mubr.msk.f32.mxu0 %vm6228_vm0, %v6229_v12 }
 0x7aa   : > { %v1261_v2 = vpop.f32.mrb[12].mxu0 }
 0x7ab   : > { %v6554_v3 = vadd.f32 %v1334_v31, %v1261_v2  ;;  %v5429_v4 = vpop.f32.mrb[13].mxu0  ;;  %v4921_v31 = vld [vmem:[%s7228_s4 + $0x70] ss:$0 sm:$0xff] }
 0x7ac   : > { %v4941_v4 = vld [vmem:[%s7228_s4 + $0x80] sm:$0xff] }
 0x7b2   : > { %v1426_v7 = vpop.f32.mrb[14].mxu0 }
 0x7b3   : > { %v1427_v8 = vadd.f32 %v4916_v6, %v1426_v7  ;;  %v5445_v9 = vpop.f32.mrb[15].mxu0  ;;  %v4942_v6 = vld [vmem:[%s7228_s4 + $0x88] sm:$0xff] }
 0x7b5   : > { %5473 = vmatmul.mubr.msk.f32.vlgmr.msra.gmra.mrb[12].mxu1 %vm609_vm2, %v1427_v8  ;;  %v4943_v8 = vld [vmem:[%s7228_s4 + $0x90] sm:$0xff] }
 0x7b6   : > { %5484 = vmatprep.mubr.msk.f32.mxu1 %vm6228_vm0, %v6229_v12  ;;  %5483 = vmatpush3.msra.mxu1 %v4928_v36  ;;  %v5912_v9 = vpack.c.bf16 %v4943_v8, %v4942_v6  ;;  %v2318_v36 = vlaneseq  ;;  %v2358_v8 = vld [vmem:[%s7231_s7] sm:$0xff] }
 0x7b7   : > { %5901 = vmatprep.subr.bf16.mxu1 %v5900_v42 }
 0x7ba   : > { %v5467_v30 = vpop.f32.mrb[16].mxu0 }
 0x7bb   : > { %v1579_v32 = vpop.f32.mrb[17].mxu0  ;;  %v1585_v33 = vadd.f32 %v5467_v30, %v4921_v31  ;;  %v4957_v30 = vld [vmem:[%s7229_s5 + $0x18] sm:$0xff] }
 0x7bc   : > { %v1580_v34 = vadd.f32 %v4921_v31, %v1579_v32 }
 0x7be   : > { %v5892_v35 = vpack.c.bf16 %v1585_v33, %v1580_v34 }
 0x7c0   : > { %5893 = vmatpush3.bf16.msra.mxu0 %v5892_v35 }
 0x7c1   : > { %5894 = vmatprep.subr.bf16.mxu0 %v6227_v5 }
 0x888   : > { %v1663_v20 = vpop.f32.mrb[12].mxu1 }
 0x889   : > { %v1667_v21 = vmul.f32 0.35355338, %v1663_v20  ;;  %v5474_v22 = vpop.f32.mrb[13].mxu1 }
 0x88b   : > { %v1668_v23 = vsel %vm690_vm4, %v1667_v21, -inf }
 0x88c   : > { %1669 = vmax.xlane.f32.xlu0 %v1668_v23 }
 0x919   : > { %v1670_v25 = vpop.xlane.xlu0 %1669 }
 0x91a   : > { %v1671_v26 = vsub.f32 %v1667_v21, %v1670_v25  ;;  %v4950_v25 = vld [vmem:[%s7228_s4 + $0x98] ss:$0 sm:$0xff] }
 0x91c   : > { %v1672_v27 = vmul.f32 1.442695, %v1671_v26 }
 0x91e   : > { %6125 = vpow2.f32 %v1672_v27 }
 0x928   : > { %v6126_v28 = vpop.eup %6125 }
 0x929   : > { %v1674_v29 = vsel %vm690_vm4, %v6126_v28, 0.0 }
 0x92a   : > { %1675 = vadd.xlane.f32.xlu1 %v1674_v29 }
 0x9b7   : > { %v1676_v37 = vpop.xlane.xlu1 %1675 }
 0x9b8   : > { %6127 = vrcp.f32 %v1676_v37  ;;  %v6676_v37 = vshrl.u32 %v2318_v36, 7 }
 0x9ba   : > { %v2325_v40 = vsub.s32 5, %v6676_v37 }
 0x9c2   : > { %v6128_v38 = vpop.eup %6127 }
 0x9c3   : > { %v1678_v39 = vmul.f32 %v6128_v38, %v6126_v28  ;;  %v2320_v38 = vsub.s32 0, %v6676_v37 }
 0x9c5   : > { %5480 = vmatmul.mubr.msk.f32.vlgmr.msra.gmra.mrb[18].mxu0 %vm690_vm4, %v1678_v39  ;;  %v6682_v39 = vld [vmem:[%s7232_s8] sm:$0x7f] }
 0x9c6   : > { %5495 = vmatprep.mubr.msk.f32.mxu0 %vm6228_vm0, %v6229_v12  ;;  %5896 = vmatpush3.bf16.msra.mxu0 %v5895_v45  ;;  %v2321_v41 = vrot.slane %v6682_v39, %v2320_v38  ;;  %v2326_v45 = vrot.slane %v6682_v39, %v2325_v40 }
 0x9c7   : > { %5897 = vmatprep.subr.bf16.mxu0 %v6227_v5 }
 0x9ca   : > { %5899 = vmatpush3.bf16.msra.mxu0 %v5898_v48 }
 0x9cd   : > { %5496 = vmatmul.mubr.msk.f32.vlgmr.msra.gmra.mrb[20].mxu0 %vm371_vm1, %v6375_v16 }
 0x9ce   : > { %5517 = vmatprep.mubr.msk.f32.mxu0 %vm371_vm1, %v6368_v14 }
 0xa98   : > { %v1748_v52 = vpop.f32.mrb[18].mxu0 }
 0xa99   : > { %v5481_v53 = vpop.f32.mrb[19].mxu0  ;;  %5485 = vmatmul.mubr.msk.f32.vlgmr.msra.gmra.mrb[14].mxu1 %vm609_vm2, %v1748_v52 }
 0xa9a   : > { %5903 = vmatpush3.bf16.msra.mxu1 %v5900_v42  ;;  %5506 = vmatprep.mubr.msk.f32.mxu1 %vm371_vm1, %v6368_v14 }
 0xa9b   : > { %5905 = vmatprep.subr.bf16.mxu1 %v5904_v51 }
 0xa9e   : > { %5907 = vmatpush3.bf16.msra.mxu1 %v5904_v51 }
 0xa9f   : > { %5916 = vmatprep.subr.bf16.mxu1 %v6227_v5 }
 0xaa0   : > { %v1916_v54 = vpop.f32.mrb[20].mxu0 }
 0xaa1   : > { %5507 = vmatmul.mubr.msk.f32.vlgmr.msra.gmra.mrb[16].mxu1 %vm371_vm1, %v6373_v15  ;;  %v5497_v55 = vpop.f32.mrb[21].mxu0  ;;  %v1917_v2 = vadd.f32 %v4945_v1, %v1916_v54 }
 0xaa2   : > { %5524 = vmatprep.mubr.msk.f32.mxu1 %vm6228_vm0, %v6229_v12  ;;  %v2353_v55 = vld [vmem:[%s7230_s6] sm:$0xff] }
 0xb6c   : > { %v1823_v56 = vpop.f32.mrb[14].mxu1 }
 0xb6d   : > { %v6629_v57 = vadd.f32 %v1823_v56, %v6554_v3  ;;  %v5486_v58 = vpop.f32.mrb[15].mxu1  ;;  %v4940_v3 = vld [vmem:[%s7228_s4 + $0x78] sm:$0xff]  ;;  %v2354_v56 = vld [vmem:[%s7230_s6 + $0x8] sm:$0xff] }
 0xb6e   : > { %v5908_v7 = vpack.c.bf16 %v4941_v4, %v4940_v3  ;;  %v2356_v58 = vld [vmem:[%s7230_s6 + $0x18] sm:$0xff] }
 0xb70   : > { %5909 = vmatprep.subr.bf16.mxu0 %v5908_v7 }
 0xb71   : > { %5911 = vmatpush3.bf16.msra.mxu0 %v5908_v7 }
 0xb72   : > { %5913 = vmatprep.subr.bf16.mxu0 %v5912_v9 }
 0xb74   : > { %v5508_v60 = vpop.f32.mrb[16].mxu1 }
 0xb75   : > { %v1996_v61 = vadd.f32 %v5508_v60, %v4947_v59  ;;  %v1990_v62 = vpop.f32.mrb[17].mxu1  ;;  %5915 = vmatpush3.bf16.msra.mxu0 %v5912_v9  ;;  %v2359_v9 = vld [vmem:[%s7231_s7 + $0x8] sm:$0xff] }
 0xb76   : > { %v1991_v63 = vadd.f32 %v4947_v59, %v1990_v62  ;;  %5920 = vmatprep.subr.bf16.mxu0 %v6227_v5 }
 0xb78   : > { %v5917_v0 = vpack.c.bf16 %v1996_v61, %v1991_v63  ;;  %5518 = vmatmul.mubr.msk.f32.vlgmr.msra.gmra.mrb[22].mxu0 %vm371_vm1, %v6373_v15  ;;  %v2345_v63 = vsub.s32 1, %v6676_v37 }
 0xb79   : > { %5531 = vmatprep.mubr.msk.f32.mxu0 %vm6228_vm0, %v6229_v12 }
 0xb7a   : > { %5919 = vmatpush3.bf16.xpose.msk.msra.mxu1 %vm6391_vm3, %v5917_v0  ;;  %v2350_v0 = vsub.s32 2, %v6676_v37  ;;  %v2346_v1 = vrot.slane %v6682_v39, %v2345_v63 }
 0xb7b   : > { %5534 = vmatprep.subr.mxu1 %v6229_v12 }
 0xb7c   : > { %v2351_v4 = vrot.slane %v6682_v39, %v2350_v0 }
 0xb81   : > { %5525 = vmatmul.mubr.msk.f32.vlgmr.msra.gmra.mrb[18].mxu1 %vm609_vm2, %v1917_v2 }
 0xb82   : > { %5536 = vmatprep.mubr.msk.f32.mxu1 %vm6228_vm0, %v6229_v12  ;;  %5535 = vmatpush3.msra.mxu1 %v4957_v30 }
 0xb83   : > { %5929 = vmatprep.subr.bf16.mxu1 %v6227_v5 }
 0xc4b   : > { %v5519_v23 = vpop.f32.mrb[22].mxu0 }
 0xc4c   : > { %v2069_v26 = vpop.f32.mrb[23].mxu0  ;;  %v2075_v27 = vadd.f32 %v5519_v23, %v4950_v25 }
 0xc4d   : > { %v2070_v28 = vadd.f32 %v4950_v25, %v2069_v26  ;;  %v4959_v25 = vld [vmem:[%s7230_s6 + $0x20] ss:$0 sm:$0xff] }
 0xc4f   : > { %v5921_v29 = vpack.c.bf16 %v2075_v27, %v2070_v28 }
 0xc51   : > { %5922 = vmatpush3.bf16.msra.mxu0 %v5921_v29 }
 0xc52   : > { %5923 = vmatprep.subr.bf16.mxu0 %v6227_v5 }
 0xc54   : > { %v2153_v10 = vpop.f32.mrb[18].mxu1 }
 0xc55   : > { %v2157_v11 = vmul.f32 0.35355338, %v2153_v10  ;;  %v5526_v13 = vpop.f32.mrb[19].mxu1  ;;  %v5930_v10 = vpack.c.bf16 %v2359_v9, %v2358_v8 }
 0xc56   : > { %v2361_v13 = vld [vmem:[%s7231_s7 + $0x18] sm:$0xff] }
 0xc57   : > { %v2158_v17 = vsel %vm690_vm4, %v2157_v11, -inf }
 0xc58   : > { %2159 = vmax.xlane.f32.xlu0 %v2158_v17 }
 0xce5   : > { %v2160_v18 = vpop.xlane.xlu0 %2159 }
 0xce6   : > { %v2161_v19 = vsub.f32 %v2157_v11, %v2160_v18  ;;  %v2360_v11 = vld [vmem:[%s7231_s7 + $0x10] sm:$0xff]  ;;  %v2362_v18 = vld [vmem:[%s7231_s7 + $0x20] sm:$0xff] }
 0xce7   : > { %v5933_v17 = vpack.c.bf16 %v2361_v13, %v2360_v11  ;;  %v4971_v13 = vld [vmem:[%s7227_s3 + $0xb0] sm:$0xff] }
 0xce8   : > { %v2162_v20 = vmul.f32 1.442695, %v2161_v19  ;;  %v2363_v19 = vld [vmem:[%s7231_s7 + $0x28] sm:$0xff] }
 0xcea   : > { %6129 = vpow2.f32 %v2162_v20  ;;  %v5936_v20 = vpack.c.bf16 %v2363_v19, %v2362_v18 }
 0xcf4   : > { %v6130_v21 = vpop.eup %6129 }
 0xcf5   : > { %v2164_v22 = vsel %vm690_vm4, %v6130_v21, 0.0 }
 0xcf6   : > { %2165 = vadd.xlane.f32.xlu1 %v2164_v22  ;;  %v2365_v22 = vld [vmem:[%s7231_s7 + $0x38] sm:$0xff] }
 0xd83   : > { %v2166_v31 = vpop.xlane.xlu1 %2165 }
 0xd84   : > { %6131 = vrcp.f32 %v2166_v31 }
 0xd8e   : > { %v6132_v32 = vpop.eup %6131 }
 0xd8f   : > { %v2168_v33 = vmul.f32 %v6132_v32, %v6130_v21  ;;  %v2364_v21 = vld [vmem:[%s7231_s7 + $0x30] sm:$0xff] }
 0xd90   : > { %v5939_v23 = vpack.c.bf16 %v2365_v22, %v2364_v21  ;;  %v4981_v22 = vld [vmem:[%s7227_s3 + $0xc0] ss:$0 sm:$0xff] }
 0xd91   : > { %5532 = vmatmul.mubr.msk.f32.vlgmr.msra.gmra.mrb[24].mxu0 %vm690_vm4, %v2168_v33 }
 0xd92   : > { %5547 = vmatprep.mubr.msk.f32.mxu0 %vm6228_vm0, %v6229_v12 }
 0xe64   : > { %v2238_v34 = vpop.f32.mrb[24].mxu0 }
 0xe65   : > { %v5533_v35 = vpop.f32.mrb[25].mxu0  ;;  %5537 = vmatmul.mubr.msk.f32.vlgmr.msra.gmra.mrb[20].mxu1 %vm609_vm2, %v2238_v34 }
 0xe66   : > { %5566 = vmatprep.mubr.msk.f32.mxu1 %vm6228_vm0, %v6229_v12  ;;  %5931 = vmatpush3.bf16.msra.mxu1 %v5930_v10 }
 0xe67   : > { %5932 = vmatprep.subr.bf16.mxu1 %v6227_v5 }
 0xe6a   : > { %5934 = vmatpush3.bf16.msra.mxu1 %v5933_v17  ;;  %v4972_v17 = vld [vmem:[%s7227_s3 + $0xb8] sm:$0xff] }
 0xe6b   : > { %5935 = vmatprep.subr.bf16.mxu1 %v6227_v5 }
 0xe6e   : > { %5937 = vmatpush3.bf16.msra.mxu1 %v5936_v20  ;;  %v5951_v20 = vpack.c.bf16 %v4972_v17, %v4971_v13  ;;  %v5009_v13 = vld [vmem:[%s7227_s3 + $0xe8] ss:$0 sm:$0xff] }
 0xe6f   : > { %5938 = vmatprep.subr.bf16.mxu1 %v6227_v5 }
 0xe72   : > { %5940 = vmatpush3.bf16.msra.mxu1 %v5939_v23 }
 0xf38   : > { %v2313_v42 = vpop.f32.mrb[20].mxu1 }
 0xf39   : > { %v2317_v43 = vadd.f32 %v2313_v42, %v6629_v57  ;;  %v5538_v44 = vpop.f32.mrb[21].mxu1  ;;  %v5924_v57 = vpack.c.bf16 %v2354_v56, %v2353_v55  ;;  %v2533_v42 = vsub.s32 6, %v6676_v37  ;;  %v4964_v56 = vld [vmem:[%s7226_s2 + $0xa0] sm:$0xff] }
 0xf3b   : > { %v2322_v46 = vadd.f32 %v2321_v41, %v2317_v43  ;;  %5925 = vmatpush3.bf16.msra.mxu0 %v5924_v57  ;;  %v4961_v43 = vld [vmem:[%s7231_s7 + $0x40] ss:$0 sm:$0xff]  ;;  %v2534_v44 = vrot.slane %v6682_v39, %v2533_v42  ;;  %v4965_v57 = vld [vmem:[%s7226_s2 + $0xa8] sm:$0xff] }
 0xf3c   : > { %5926 = vmatprep.subr.bf16.mxu0 %v6227_v5 }
 0xf3d   : > { %v2327_v47 = vmul.f32 %v2326_v45, %v2322_v46 }
 0xf3f   : > { %v2328_v48 = vadd.f32 %v2327_v47, %v6375_v16  ;;  %v2355_v16 = vld [vmem:[%s7230_s6 + $0x10] sm:$0xff] }
 0xf40   : > { %v5927_v59 = vpack.c.bf16 %v2356_v58, %v2355_v16  ;;  %v5942_v16 = vpack.c.bf16 %v4965_v57, %v4964_v56  ;;  %v4966_v58 = vld [vmem:[%s7226_s2 + $0xb0] sm:$0xff] }
 0xf41   : > { %v2329_v49 = vsel %vm371_vm1, %v2328_v48, 0.0 }
 0xf42   : > { %2330 = vadd.xlane.f32.xlu0 %v2329_v49  ;;  %5928 = vmatpush3.bf16.msra.mxu0 %v5927_v59  ;;  %v4967_v59 = vld [vmem:[%s7226_s2 + $0xb8] sm:$0xff] }
 0xf43   : > { %5941 = vmatprep.subr.bf16.mxu0 %v6227_v5 }
 0xfcf   : > { %v2331_v50 = vpop.xlane.xlu0 %2330 }
 0xfd0   : > { %v2333_v51 = vmul.f32 0.03125, %v2331_v50 }
 0xfd2   : > { %v2334_v52 = vsub.f32 %v2328_v48, %v2333_v51 }
 0xfd4   : > { %v2335_v53 = vmul.f32 %v2334_v52, %v2334_v52 }
 0xfd6   : > { %v2336_v54 = vsel %vm371_vm1, %v2335_v53, 0.0 }
 0xfd7   : > { %2337 = vadd.xlane.f32.xlu1 %v2336_v54 }
0x1064   : > { %v2338_v60 = vpop.xlane.xlu1 %2337 }
0x1065   : > { %v2339_v61 = vmul.f32 0.03125, %v2338_v60  ;;  %v5945_v60 = vpack.c.bf16 %v4967_v59, %v4966_v58 }
0x1067   : > { %v2340_v62 = vadd.f32 1e-05, %v2339_v61  ;;  %v4969_v61 = vld [vmem:[%s7227_s3 + $0xa0] sm:$0xff] }
0x1069   : > { %6133 = vrsqrt.f32 %v2340_v62  ;;  %v4970_v62 = vld [vmem:[%s7227_s3 + $0xa8] sm:$0xff] }
0x1073   : > { %v6134_v2 = vpop.eup %6133 }
0x1074   : > { %v2342_v3 = vmul.f32 %v6134_v2, %v2334_v52 }
0x1076   : > { %v2347_v6 = vmul.f32 %v2346_v1, %v2342_v3  ;;  %v5947_v1 = vpack.c.bf16 %v4970_v62, %v4969_v61  ;;  %v4992_v62 = vld [vmem:[%s7226_s2 + $0xc8] sm:$0xff] }
0x1078   : > { %v2352_v7 = vadd.f32 %v2351_v4, %v2347_v6  ;;  %v2552_v6 = vsub.s32 3, %v6676_v37 }
0x107a   : > { %5548 = vmatmul.mubr.msk.f32.vlgmr.msra.gmra.mrb[26].mxu0 %vm371_vm1, %v2352_v7  ;;  %v2553_v8 = vrot.slane %v6682_v39, %v2552_v6 }
0x107b   : > { %5577 = vmatprep.mubr.msk.f32.mxu0 %vm6228_vm0, %v6229_v12  ;;  %5943 = vmatpush3.bf16.msra.mxu0 %v5942_v16 }
0x107c   : > { %5944 = vmatprep.subr.bf16.mxu0 %v6227_v5 }
0x107f   : > { %5946 = vmatpush3.bf16.msra.mxu0 %v5945_v60  ;;  %v6853_v60 = vld [vmem:[%s6361_s14 + $0x8] sm:$0xff] }
0x1080   : > { %5948 = vmatprep.subr.bf16.mxu0 %v5947_v1 }
0x114d   : > { %v2440_v26 = vpop.f32.mrb[26].mxu0 }
0x114e   : > { %v2441_v27 = vadd.f32 %v4959_v25, %v2440_v26  ;;  %v5549_v28 = vpop.f32.mrb[27].mxu0 }
0x1150   : > { %v2445_v29 = vmul.f32 0.044715, %v2441_v27  ;;  %v2444_v35 = vmul.f32 0.5, %v2441_v27 }
0x1152   : > { %v2446_v30 = vmul.f32 %v2445_v29, %v2441_v27  ;;  %v4979_v29 = vld [vmem:[%s7226_s2 + $0xc0] ss:$0 sm:$0xff] }
0x1154   : > { %v2447_v31 = vmul.f32 %v2446_v30, %v2441_v27 }
0x1156   : > { %v2448_v32 = vadd.f32 %v2447_v31, %v2441_v27  ;;  %v4974_v31 = vld [vmem:[%s7228_s4 + $0xa0] sm:$0xff] }
0x1158   : > { %v2449_v33 = vmul.f32 0.7978846, %v2448_v32  ;;  %v4975_v32 = vld [vmem:[%s7228_s4 + $0xa8] sm:$0xff] }
0x115a   : > { %6135 = vtanh.f32 %v2449_v33  ;;  %v4976_v33 = vld [vmem:[%s7228_s4 + $0xb0] sm:$0xff] }
0x1164   : > { %v6136_v34 = vpop.eup %6135 }
0x1165   : > { %v2451_v36 = vadd.f32 1.0, %v6136_v34  ;;  %v5955_v34 = vpack.c.bf16 %v4975_v32, %v4974_v31  ;;  %v5004_v31 = vld [vmem:[%s7228_s4 + $0xd8] sm:$0xff] }
0x1167   : > { %v2452_v41 = vmul.f32 %v2451_v36, %v2444_v35  ;;  %v4977_v35 = vld [vmem:[%s7228_s4 + $0xb8] sm:$0xff]  ;;  %5956 = vmatprep.subr.bf16.mxu1 %v5955_v34 }
0x1168   : > { %v5959_v36 = vpack.c.bf16 %v4977_v35, %v4976_v33  ;;  %v5005_v33 = vld [vmem:[%s7228_s4 + $0xe0] sm:$0xff] }
0x1169   : > { %5567 = vmatmul.mubr.msk.f32.vlgmr.msra.gmra.mrb[22].mxu1 %vm2457_vm5, %v2452_v41 }
0x116a   : > { %5599 = vmatprep.mubr.msk.f32.mxu1 %vm371_vm1, %v6368_v14  ;;  %5958 = vmatpush3.bf16.msra.mxu1 %v5955_v34  ;;  %v5988_v34 = vpack.c.bf16 %v5005_v33, %v5004_v31 }
0x116b   : > { %5960 = vmatprep.subr.bf16.mxu1 %v5959_v36 }
0x116e   : > { %5962 = vmatpush3.bf16.msra.mxu1 %v5959_v36 }
0x116f   : > { %5967 = vmatprep.subr.bf16.mxu1 %v6227_v5 }
0x1171   : > { %5600 = vmatmul.mubr.msk.f32.vlgmr.msra.gmra.mrb[24].mxu1 %vm371_vm1, %v6373_v15 }
0x1172   : > { %5613 = vmatprep.mubr.msk.f32.mxu1 %vm6228_vm0, %v6229_v12 }
0x123c   : > { %v2527_v45 = vpop.f32.mrb[22].mxu1 }
0x123d   : > { %v2528_v46 = vadd.f32 %v4961_v43, %v2527_v45  ;;  %v5568_v47 = vpop.f32.mrb[23].mxu1 }
0x123f   : > { %v2535_v48 = vmul.f32 %v2534_v44, %v2528_v46 }
0x1241   : > { %v2536_v49 = vadd.f32 %v2535_v48, %v2352_v7  ;;  %v2557_v7 = vsub.s32 4, %v6676_v37 }
0x1243   : > { %v2537_v50 = vsel %vm371_vm1, %v2536_v49, 0.0  ;;  %v2558_v11 = vrot.slane %v6682_v39, %v2557_v7 }
0x1244   : > { %2538 = vadd.xlane.f32.xlu0 %v2537_v50  ;;  %v4998_v50 = vld [vmem:[%s7227_s3 + $0xd0] sm:$0xff] }
0x12d1   : > { %v2539_v51 = vpop.xlane.xlu0 %2538 }
0x12d2   : > { %v2540_v52 = vmul.f32 0.03125, %v2539_v51 }
0x12d4   : > { %v2541_v53 = vsub.f32 %v2536_v49, %v2540_v52  ;;  %v5601_v52 = vpop.f32.mrb[24].mxu1 }
0x12d5   : > { %v2806_v56 = vpop.f32.mrb[25].mxu1 }
0x12d6   : > { %v2542_v54 = vmul.f32 %v2541_v53, %v2541_v53 }
0x12d8   : > { %v2543_v55 = vsel %vm371_vm1, %v2542_v54, 0.0  ;;  %v5000_v54 = vld [vmem:[%s7227_s3 + $0xe0] sm:$0xff] }
0x12d9   : > { %2544 = vadd.xlane.f32.xlu1 %v2543_v55  ;;  %v4984_v55 = vld [vmem:[%s7228_s4 + $0xc0] ss:$0 sm:$0xff] }
0x12da   : > { %v2812_v16 = vadd.f32 %v5601_v52, %v4984_v55  ;;  %v2807_v58 = vadd.f32 %v4984_v55, %v2806_v56  ;;  %v5027_v55 = vld [vmem:[%s7227_s3 + $0xf0] sm:$0xff]  ;;  %v5028_v56 = vld [vmem:[%s7227_s3 + $0xf8] sm:$0xff] }
0x12dc   : > { %v5968_v59 = vpack.c.bf16 %v2812_v16, %v2807_v58  ;;  %v4991_v58 = vld [vmem:[%s7229_s5 + $0x20] sm:$0xff] }
0x12de   : > { %5969 = vmatpush3.bf16.msra.mxu1 %v5968_v59  ;;  %v6005_v59 = vpack.c.bf16 %v5028_v56, %v5027_v55 }
0x12df   : > { %5970 = vmatprep.subr.bf16.mxu1 %v6227_v5 }
0x1366   : > { %v2545_v2 = vpop.xlane.xlu1 %2544 }
0x1367   : > { %v2546_v3 = vmul.f32 0.03125, %v2545_v2 }
0x1369   : > { %v2547_v4 = vadd.f32 1e-05, %v2546_v3 }
0x136b   : > { %6137 = vrsqrt.f32 %v2547_v4 }
0x1375   : > { %v6138_v9 = vpop.eup %6137 }
0x1376   : > { %v2549_v10 = vmul.f32 %v6138_v9, %v2541_v53  ;;  %v4999_v53 = vld [vmem:[%s7227_s3 + $0xd8] sm:$0xff]  ;;  %v4995_v9 = vld [vmem:[%s7226_s2 + $0xe0] sm:$0xff] }
0x1377   : > { %v5980_v57 = vpack.c.bf16 %v5000_v54, %v4999_v53  ;;  %v5019_v53 = vld [vmem:[%s7229_s5 + $0x28] sm:$0xff] }
0x1378   : > { %v2554_v18 = vmul.f32 %v2553_v8, %v2549_v10  ;;  %v4994_v8 = vld [vmem:[%s7226_s2 + $0xd8] sm:$0xff] }
0x1379   : > { %v5974_v10 = vpack.c.bf16 %v4995_v9, %v4994_v8  ;;  %v5024_v8 = vld [vmem:[%s7226_s2 + $0x100] sm:$0xff]  ;;  %v5025_v9 = vld [vmem:[%s7226_s2 + $0x108] sm:$0xff] }
0x137a   : > { %v6795_v19 = vadd.f32 %v2558_v11, %v2554_v18  ;;  %v6879_v11 = vld [vmem:[%s6361_s14] sm:$0xff]  ;;  %s6167_s14 = sshll.u32 %s6230_s13, 4  ;;  %s6168_s14 = int_to_ptr.vmem [resolvable:$false] %s6167_s14 }
0x137b   : > { %s6169_s25 = scalar_lea.vmem %s6168_s14, 256  ;;  %p6170_p0 = scmp.lt.s32.totalorder %s7183_s16, %s6168_s14 }
0x137c   : > { %5578 = vmatmul.mubr.msk.f32.vlgmr.msra.gmra.mrb[28].mxu0 %vm371_vm1, %v6795_v19  ;;  %p6171_p1 = scmp.lt.s32.totalorder %s6169_s25, %s6163_s24 }
0x137d   : > { %5950 = vmatpush3.bf16.msra.mxu0 %v5947_v1  ;;  %5588 = vmatprep.mubr.msk.f32.mxu0 %vm371_vm1, %v6368_v14  ;;  %v4993_v1 = vld [vmem:[%s7226_s2 + $0xd0] sm:$0xff] }
0x137e   : > { %5952 = vmatprep.subr.bf16.mxu0 %v5951_v20  ;;  %v5971_v3 = vpack.c.bf16 %v4993_v1, %v4992_v62  ;;  %v5030_v62 = vld [vmem:[%s7227_s3 + $0x108] sm:$0xff]  ;;  %p6172_p2 = por %p6171_p1, %p6170_p0 }
0x1380   : > { %p6173_p3 = pnand %p6172_p2, %p6166_p13 }
0x1381   : > { %5954 = vmatpush3.bf16.msra.mxu0 %v5951_v20 }
0x1382   : > { %5963 = vmatprep.subr.bf16.mxu0 %v6227_v5 }
0x1384   : > { %5589 = vmatmul.mubr.msk.f32.vlgmr.msra.gmra.mrb[30].mxu0 %vm371_vm1, %v6373_v15  ;;  %v4997_v15 = vld [vmem:[%s7227_s3 + $0xc8] sm:$0xff] }
0x1385   : > { %5606 = vmatprep.mubr.msk.f32.mxu0 %vm6228_vm0, %v6229_v12  ;;  %v5976_v51 = vpack.c.bf16 %v4998_v50, %v4997_v15 }
0x144f   : > { %v2653_v39 = vpop.f32.mrb[28].mxu0 }
0x1450   : > { %v5579_v21 = vpop.f32.mrb[29].mxu0  ;;  %v2654_v30 = vadd.f32 %v4979_v29, %v2653_v39  ;;  %v5002_v29 = vld [vmem:[%s7228_s4 + $0xc8] sm:$0xff] }
0x1457   : > { %v5590_v23 = vpop.f32.mrb[30].mxu0 }
0x1458   : > { %v2733_v25 = vadd.f32 %v5590_v23, %v4981_v22  ;;  %v2727_v26 = vpop.f32.mrb[31].mxu0 }
0x1459   : > { %v2728_v27 = vadd.f32 %v4981_v22, %v2727_v26 }
0x145b   : > { %v5964_v28 = vpack.c.bf16 %v2733_v25, %v2728_v27  ;;  %v5007_v25 = vld [vmem:[%s7226_s2 + $0xe8] ss:$0 sm:$0xff] }
0x145d   : > { %5966 = vmatpush3.bf16.xpose.msk.msra.mxu0 %vm6391_vm3, %v5964_v28 }
0x145e   : > { %5977 = vmatprep.subr.bf16.mxu0 %v5976_v51 }
0x1464   : > { %5607 = vmatmul.mubr.msk.f32.vlgmr.msra.gmra.mrb[32].mxu0 %vm609_vm2, %v2654_v30  ;;  %v5003_v30 = vld [vmem:[%s7228_s4 + $0xd0] sm:$0xff] }
0x1465   : > { %5635 = vmatprep.mubr.msk.f32.mxu0 %vm371_vm1, %v6368_v14  ;;  %5979 = vmatpush3.bf16.msra.mxu0 %v5976_v51  ;;  %v5984_v32 = vpack.c.bf16 %v5003_v30, %v5002_v29  ;;  %v5037_v30 = vld [vmem:[%s7226_s2 + $0x110] ss:$0 sm:$0xff] }
0x1466   : > { %5981 = vmatprep.subr.bf16.mxu0 %v5980_v57 }
0x1469   : > { %5983 = vmatpush3.bf16.msra.mxu0 %v5980_v57 }
0x146a   : > { %5992 = vmatprep.subr.bf16.mxu0 %v6227_v5 }
0x146c   : > { %5636 = vmatmul.mubr.msk.f32.vlgmr.msra.gmra.mrb[34].mxu0 %vm371_vm1, %v6853_v60 }
0x146d   : > { %5653 = vmatprep.mubr.msk.f32.mxu0 %vm6228_vm0, %v6229_v12 }
0x1537   : > { %v2890_v14 = vpop.f32.mrb[32].mxu0 }
0x1538   : > { %v2894_v41 = vmul.f32 0.35355338, %v2890_v14  ;;  %v5608_v43 = vpop.f32.mrb[33].mxu0 }
0x153a   : > { %v2895_v44 = vsel %vm690_vm4, %v2894_v41, -inf }
0x153b   : > { %2896 = vmax.xlane.f32.xlu0 %v2895_v44 }
0x153f   : > { %v5637_v17 = vpop.f32.mrb[34].mxu0 }
0x1540   : > { %v3149_v18 = vadd.f32 %v5637_v17, %v5009_v13  ;;  %v3143_v20 = vpop.f32.mrb[35].mxu0  ;;  %v6003_v17 = vpack.c.bf16 %v5025_v9, %v5024_v8  ;;  %v5056_v9 = vld [vmem:[%s7227_s3 + $0x118] sm:$0xff] }
0x1541   : > { %v3144_v39 = vadd.f32 %v5009_v13, %v3143_v20 }
0x1543   : > { %v5993_v21 = vpack.c.bf16 %v3149_v18, %v3144_v39  ;;  %v5039_v39 = vld [vmem:[%s7227_s3 + $0x110] ss:$0 sm:$0xff] }
0x1545   : > { %5995 = vmatpush3.bf16.xpose.msk.msra.mxu0 %vm6391_vm3, %v5993_v21 }
0x1546   : > { %5663 = vmatprep.subr.mxu0 %v6229_v12 }
0x15c8   : > { %v2897_v45 = vpop.xlane.xlu0 %2896 }
0x15c9   : > { %v2898_v46 = vsub.f32 %v2894_v41, %v2897_v45 }
0x15cb   : > { %v2899_v47 = vmul.f32 1.442695, %v2898_v46 }
0x15cd   : > { %6139 = vpow2.f32 %v2899_v47 }
0x15d7   : > { %v6140_v48 = vpop.eup %6139 }
0x15d8   : > { %v2901_v49 = vsel %vm690_vm4, %v6140_v48, 0.0 }
0x15d9   : > { %2902 = vadd.xlane.f32.xlu1 %v2901_v49  ;;  %v5012_v49 = vld [vmem:[%s7228_s4 + $0xe8] ss:$0 sm:$0xff] }
0x1666   : > { %v2903_v61 = vpop.xlane.xlu1 %2902 }
0x1667   : > { %6141 = vrcp.f32 %v2903_v61  ;;  %v5029_v61 = vld [vmem:[%s7227_s3 + $0x100] sm:$0xff] }
0x1668   : > { %v6009_v1 = vpack.c.bf16 %v5030_v62, %v5029_v61  ;;  %v5052_v61 = vld [vmem:[%s7226_s2 + $0x120] sm:$0xff] }
0x1671   : > { %v6142_v2 = vpop.eup %6141 }
0x1672   : > { %v2905_v4 = vmul.f32 %v6142_v2, %v6140_v48  ;;  %v5022_v2 = vld [vmem:[%s7226_s2 + $0xf0] sm:$0xff] }
0x1674   : > { %5614 = vmatmul.mubr.msk.f32.vlgmr.msra.gmra.mrb[26].mxu1 %vm690_vm4, %v2905_v4 }
0x1675   : > { %5972 = vmatpush3.bf16.msra.mxu1 %v5971_v3  ;;  %5624 = vmatprep.mubr.msk.f32.mxu1 %vm6228_vm0, %v6229_v12  ;;  %v5023_v3 = vld [vmem:[%s7226_s2 + $0xf8] sm:$0xff] }
0x1676   : > { %5973 = vmatprep.subr.bf16.mxu1 %v6227_v5  ;;  %v6000_v4 = vpack.c.bf16 %v5023_v3, %v5022_v2  ;;  %v5053_v3 = vld [vmem:[%s7226_s2 + $0x128] sm:$0xff] }
0x1679   : > { %5975 = vmatpush3.bf16.msra.mxu1 %v5974_v10 }
0x167a   : > { %5985 = vmatprep.subr.bf16.mxu1 %v5984_v32 }
0x167c   : > { %5625 = vmatmul.mubr.msk.f32.vlgmr.msra.gmra.mrb[28].mxu1 %vm371_vm1, %v6795_v19 }
0x167d   : > { %5646 = vmatprep.mubr.msk.f32.mxu1 %vm371_vm1, %v6879_v11  ;;  %5987 = vmatpush3.bf16.msra.mxu1 %v5984_v32 }
0x167e   : > { %5989 = vmatprep.subr.bf16.mxu1 %v5988_v34 }
0x1681   : > { %5991 = vmatpush3.bf16.msra.mxu1 %v5988_v34  ;;  %v5032_v34 = vld [vmem:[%s7228_s4 + $0xf0] sm:$0xff] }
0x1682   : > { %5996 = vmatprep.subr.bf16.mxu1 %v6227_v5 }
0x1684   : > { %5647 = vmatmul.mubr.msk.f32.vlgmr.msra.gmra.mrb[30].mxu1 %vm371_vm1, %v6853_v60 }
0x1685   : > { %5660 = vmatprep.mubr.msk.f32.mxu1 %vm6228_vm0, %v6229_v12 }
0x1747   : > { %v2975_v22 = vpop.f32.mrb[26].mxu1 }
0x1748   : > { %v5615_v23 = vpop.f32.mrb[27].mxu1 }
0x174f   : > { %v3069_v26 = vpop.f32.mrb[28].mxu1 }
0x1750   : > { %v3070_v27 = vadd.f32 %v5007_v25, %v3069_v26  ;;  %v5626_v28 = vpop.f32.mrb[29].mxu1 }
0x1752   : > { %5654 = vmatmul.mubr.msk.f32.vlgmr.msra.gmra.mrb[36].mxu0 %vm609_vm2, %v3070_v27 }
0x1753   : > { %5665 = vmatprep.mubr.msk.f32.mxu0 %vm6228_vm0, %v6229_v12  ;;  %5664 = vmatpush3.msra.mxu0 %v5019_v53  ;;  %v5042_v53 = vld [vmem:[%s7228_s4 + $0x110] ss:$0 sm:$0xff] }
0x1754   : > { %5999 = vmatprep.subr.bf16.mxu0 %v6227_v5 }
0x1757   : > { %v5648_v48 = vpop.f32.mrb[30].mxu1 }
0x1758   : > { %v3222_v15 = vpop.f32.mrb[31].mxu1  ;;  %v3228_v50 = vadd.f32 %v5648_v48, %v5012_v49 }
0x1759   : > { %v3223_v51 = vadd.f32 %v5012_v49, %v3222_v15 }
0x175b   : > { %v5997_v52 = vpack.c.bf16 %v3228_v50, %v3223_v51 }
0x175d   : > { %5998 = vmatpush3.bf16.msra.mxu1 %v5997_v52 }
0x175e   : > { %5668 = vmatprep.subr.mxu1 %v6229_v12 }
0x1825   : > { %v3306_v35 = vpop.f32.mrb[36].mxu0 }
0x1826   : > { %v3310_v36 = vmul.f32 0.35355338, %v3306_v35  ;;  %v5655_v14 = vpop.f32.mrb[37].mxu0  ;;  %v5033_v35 = vld [vmem:[%s7228_s4 + $0xf8] sm:$0xff] }
0x1827   : > { %v6013_v14 = vpack.c.bf16 %v5033_v35, %v5032_v34  ;;  %v5061_v35 = vld [vmem:[%s7228_s4 + $0x118] sm:$0xff] }
0x1828   : > { %v3311_v41 = vsel %vm690_vm4, %v3310_v36, -inf }
0x1829   : > { %3312 = vmax.xlane.f32.xlu0 %v3311_v41  ;;  %v5035_v41 = vld [vmem:[%s7228_s4 + $0x108] sm:$0xff] }
0x18b6   : > { %v3313_v43 = vpop.xlane.xlu0 %3312 }
0x18b7   : > { %v3314_v44 = vsub.f32 %v3310_v36, %v3313_v43  ;;  %v5034_v36 = vld [vmem:[%s7228_s4 + $0x100] sm:$0xff] }
0x18b8   : > { %v6017_v43 = vpack.c.bf16 %v5035_v41, %v5034_v36  ;;  %v5063_v36 = vld [vmem:[%s7228_s4 + $0x128] sm:$0xff]  ;;  %v5064_v41 = vld [vmem:[%s7228_s4 + $0x130] sm:$0xff] }
0x18b9   : > { %v3315_v45 = vmul.f32 1.442695, %v3314_v44 }
0x18bb   : > { %6143 = vpow2.f32 %v3315_v45 }
0x18c5   : > { %v6144_v46 = vpop.eup %6143 }
0x18c6   : > { %v3317_v47 = vsel %vm690_vm4, %v6144_v46, 0.0 }
0x18c7   : > { %3318 = vadd.xlane.f32.xlu1 %v3317_v47 }
0x1954   : > { %v3319_v54 = vpop.xlane.xlu1 %3318 }
0x1955   : > { %6145 = vrcp.f32 %v3319_v54 }
0x195f   : > { %v6146_v57 = vpop.eup %6145 }
0x1960   : > { %v3321_v16 = vmul.f32 %v6146_v57, %v6144_v46 }
0x1962   : > { %5661 = vmatmul.mubr.msk.f32.vlgmr.msra.gmra.mrb[32].mxu1 %vm690_vm4, %v3321_v16  ;;  %v5049_v16 = vld [vmem:[%s7229_s5 + $0x30] sm:$0xff] }
0x1963   : > { %5669 = vmatpush3.msra.mxu1 %v4991_v58  ;;  %5670 = vmatprep.mubr.msk.f32.mxu1 %vm6228_vm0, %v6229_v12 }
0x1964   : > { %6006 = vmatprep.subr.bf16.mxu1 %v6005_v59 }
0x1966   : > { %5671 = vmatmul.mubr.msk.f32.vlgmr.msra.gmra.mrb[34].mxu1 %vm609_vm2, %v2975_v22 }
0x1967   : > { %6008 = vmatpush3.bf16.msra.mxu1 %v6005_v59  ;;  %5692 = vmatprep.mubr.msk.f32.mxu1 %vm371_vm1, %v6879_v11  ;;  %v5051_v59 = vld [vmem:[%s7226_s2 + $0x118] sm:$0xff] }
0x1968   : > { %6010 = vmatprep.subr.bf16.mxu1 %v6009_v1 }
0x196b   : > { %6012 = vmatpush3.bf16.msra.mxu1 %v6009_v1  ;;  %v6029_v1 = vpack.c.bf16 %v5052_v61, %v5051_v59 }
0x196c   : > { %6021 = vmatprep.subr.bf16.mxu1 %v6227_v5 }
0x196e   : > { %5693 = vmatmul.mubr.msk.f32.vlgmr.msra.gmra.mrb[36].mxu1 %vm371_vm1, %v6853_v60 }
0x196f   : > { %5710 = vmatprep.mubr.msk.f32.mxu1 %vm6228_vm0, %v6229_v12 }
0x1a35   : > { %v3391_v10 = vpop.f32.mrb[32].mxu1 }
0x1a36   : > { %v5662_v13 = vpop.f32.mrb[33].mxu1  ;;  %5666 = vmatmul.mubr.msk.f32.vlgmr.msra.gmra.mrb[38].mxu0 %vm609_vm2, %v3391_v10  ;;  %v5057_v10 = vld [vmem:[%s7227_s3 + $0x120] sm:$0xff] }
0x1a37   : > { %6001 = vmatpush3.bf16.msra.mxu0 %v6000_v4  ;;  %5681 = vmatprep.mubr.msk.f32.mxu0 %vm6228_vm0, %v6229_v12  ;;  %v5054_v4 = vld [vmem:[%s7226_s2 + $0x130] sm:$0xff]  ;;  %v6034_v13 = vpack.c.bf16 %v5057_v10, %v5056_v9 }
0x1a38   : > { %6002 = vmatprep.subr.bf16.mxu0 %v6227_v5  ;;  %v6032_v8 = vpack.c.bf16 %v5054_v4, %v5053_v3 }
0x1a39   : > { %v3539_v18 = vpop.f32.mrb[34].mxu1 }
0x1a3a   : > { %v5672_v20 = vpop.f32.mrb[35].mxu1 }
0x1a3b   : > { %6004 = vmatpush3.bf16.msra.mxu0 %v6003_v17  ;;  %v5058_v17 = vld [vmem:[%s7227_s3 + $0x128] sm:$0xff] }
0x1a3c   : > { %6014 = vmatprep.subr.bf16.mxu0 %v6013_v14 }
0x1a3e   : > { %5682 = vmatmul.mubr.msk.f32.vlgmr.msra.gmra.mrb[40].mxu0 %vm371_vm1, %v6795_v19 }
0x1a3f   : > { %5703 = vmatprep.mubr.msk.f32.mxu0 %vm371_vm1, %v6879_v11  ;;  %6016 = vmatpush3.bf16.msra.mxu0 %v6013_v14  ;;  %v6042_v14 = vpack.c.bf16 %v5062_v24, %v5061_v35  ;;  %v5085_v35 = vld [vmem:[%s7231_s7 + $0x48] sm:$0xff]  ;;  %v5086_v24 = vld [vmem:[%s7231_s7 + $0x50] sm:$0xff] }
0x1a40   : > { %6018 = vmatprep.subr.bf16.mxu0 %v6017_v43 }
0x1a41   : > { %v5694_v21 = vpop.f32.mrb[36].mxu1 }
0x1a42   : > { %v3711_v22 = vadd.f32 %v5694_v21, %v5039_v39  ;;  %v3705_v23 = vpop.f32.mrb[37].mxu1 }
0x1a43   : > { %v3706_v25 = vadd.f32 %v5039_v39, %v3705_v23  ;;  %6020 = vmatpush3.bf16.msra.mxu0 %v6017_v43  ;;  %v6046_v43 = vpack.c.bf16 %v5064_v41, %v5063_v36  ;;  %v6064_v36 = vpack.c.bf16 %v5086_v24, %v5085_v35  ;;  %v5089_v41 = vld [vmem:[%s7231_s7 + $0x68] sm:$0xff] }
0x1a44   : > { %6025 = vmatprep.subr.bf16.mxu0 %v6227_v5 }
0x1a45   : > { %v6022_v26 = vpack.c.bf16 %v3711_v22, %v3706_v25 }
0x1a46   : > { %5704 = vmatmul.mubr.msk.f32.vlgmr.msra.gmra.mrb[42].mxu0 %vm371_vm1, %v6853_v60 }
0x1a47   : > { %6024 = vmatpush3.bf16.xpose.msk.msra.mxu1 %vm6391_vm3, %v6022_v26  ;;  %5717 = vmatprep.mubr.msk.f32.mxu0 %vm6228_vm0, %v6229_v12 }
0x1a48   : > { %5720 = vmatprep.subr.mxu1 %v6229_v12 }
0x1b09   : > { %v3466_v27 = vpop.f32.mrb[38].mxu0 }
0x1b0a   : > { %v6974_v28 = vadd.f32 %v3539_v18, %v3466_v27  ;;  %v5667_v29 = vpop.f32.mrb[39].mxu0  ;;  %v5059_v18 = vld [vmem:[%s7227_s3 + $0x130] sm:$0xff] }
0x1b0b   : > { %v6038_v20 = vpack.c.bf16 %v5059_v18, %v5058_v17 }
0x1b11   : > { %v3631_v31 = vpop.f32.mrb[40].mxu0 }
0x1b12   : > { %v3632_v32 = vadd.f32 %v5037_v30, %v3631_v31  ;;  %v5683_v33 = vpop.f32.mrb[41].mxu0 }
0x1b14   : > { %5711 = vmatmul.mubr.msk.f32.vlgmr.msra.gmra.mrb[38].mxu1 %vm609_vm2, %v3632_v32 }
0x1b15   : > { %5722 = vmatprep.mubr.msk.f32.mxu1 %vm6228_vm0, %v6229_v12  ;;  %5721 = vmatpush3.msra.mxu1 %v5049_v16 }
0x1b16   : > { %6035 = vmatprep.subr.bf16.mxu1 %v6034_v13 }
0x1b19   : > { %v5705_v52 = vpop.f32.mrb[42].mxu0 }
0x1b1a   : > { %v3784_v54 = vpop.f32.mrb[43].mxu0  ;;  %v3790_v55 = vadd.f32 %v5705_v52, %v5042_v53 }
0x1b1b   : > { %v3785_v56 = vadd.f32 %v5042_v53, %v3784_v54 }
0x1b1d   : > { %v6026_v57 = vpack.c.bf16 %v3790_v55, %v3785_v56 }
0x1b1f   : > { %6027 = vmatpush3.bf16.msra.mxu0 %v6026_v57  ;;  %v5078_v57 = vld [vmem:[%s7229_s5 + $0x38] sm:$0xff] }
0x1b20   : > { %6028 = vmatprep.subr.bf16.mxu0 %v6227_v5 }
0x1be7   : > { %v3868_v44 = vpop.f32.mrb[38].mxu1 }
0x1be8   : > { %v3872_v45 = vmul.f32 0.35355338, %v3868_v44  ;;  %v5712_v46 = vpop.f32.mrb[39].mxu1 }
0x1bea   : > { %v3873_v47 = vsel %vm690_vm4, %v3872_v45, -inf }
0x1beb   : > { %3874 = vmax.xlane.f32.xlu0 %v3873_v47 }
0x1c78   : > { %v3875_v48 = vpop.xlane.xlu0 %3874 }
0x1c79   : > { %v3876_v49 = vsub.f32 %v3872_v45, %v3875_v48 }
0x1c7b   : > { %v3877_v15 = vmul.f32 1.442695, %v3876_v49 }
0x1c7d   : > { %6147 = vpow2.f32 %v3877_v15 }
0x1c87   : > { %v6148_v50 = vpop.eup %6147 }
0x1c88   : > { %v3879_v51 = vsel %vm690_vm4, %v6148_v50, 0.0 }
0x1c89   : > { %3880 = vadd.xlane.f32.xlu1 %v3879_v51 }
0x1d16   : > { %v3881_v58 = vpop.xlane.xlu1 %3880 }
0x1d17   : > { %6149 = vrcp.f32 %v3881_v58 }
0x1d21   : > { %v6150_v62 = vpop.eup %6149 }
0x1d22   : > { %v3883_v2 = vmul.f32 %v6150_v62, %v6148_v50 }
0x1d24   : > { %5718 = vmatmul.mubr.msk.f32.vlgmr.msra.gmra.mrb[44].mxu0 %vm690_vm4, %v3883_v2 }
0x1d25   : > { %6030 = vmatpush3.bf16.msra.mxu0 %v6029_v1  ;;  %5733 = vmatprep.mubr.msk.f32.mxu0 %vm6228_vm0, %v6229_v12  ;;  %v7099_v1 = vld [vmem:[%s7232_s8 + $0x8] sm:$0x7f] }
0x1d26   : > { %6031 = vmatprep.subr.bf16.mxu0 %v6227_v5  ;;  %v4526_v2 = vrot.slane %v7099_v1, %v2320_v38  ;;  %v4531_v9 = vrot.slane %v7099_v1, %v2325_v40  ;;  %v5081_v40 = vld [vmem:[%s7230_s6 + $0x30] sm:$0xff] }
0x1d29   : > { %6033 = vmatpush3.bf16.msra.mxu0 %v6032_v8 }
0x1d2a   : > { %6043 = vmatprep.subr.bf16.mxu0 %v6042_v14 }
0x1d2c   : > { %5734 = vmatmul.mubr.msk.f32.vlgmr.msra.gmra.mrb[46].mxu0 %vm371_vm1, %v6795_v19 }
0x1d2d   : > { %5755 = vmatprep.mubr.msk.f32.mxu0 %vm371_vm1, %v6879_v11  ;;  %6045 = vmatpush3.bf16.msra.mxu0 %v6042_v14 }
0x1d2e   : > { %6047 = vmatprep.subr.bf16.mxu0 %v6046_v43 }
0x1d31   : > { %6049 = vmatpush3.bf16.msra.mxu0 %v6046_v43  ;;  %v5090_v43 = vld [vmem:[%s7231_s7 + $0x70] sm:$0xff] }
0x1d32   : > { %6054 = vmatprep.subr.bf16.mxu0 %v6227_v5 }
0x1d34   : > { %5756 = vmatmul.mubr.msk.f32.vlgmr.msra.gmra.mrb[48].mxu0 %vm371_vm1, %v6853_v60 }
0x1d35   : > { %5769 = vmatprep.mubr.msk.f32.mxu0 %vm6228_vm0, %v6229_v12 }
0x1df7   : > { %v3953_v39 = vpop.f32.mrb[44].mxu0 }
0x1df8   : > { %v5719_v21 = vpop.f32.mrb[45].mxu0  ;;  %5723 = vmatmul.mubr.msk.f32.vlgmr.msra.gmra.mrb[40].mxu1 %vm609_vm2, %v3953_v39 }
0x1df9   : > { %6037 = vmatpush3.bf16.msra.mxu1 %v6034_v13  ;;  %5744 = vmatprep.mubr.msk.f32.mxu1 %vm371_vm1, %v6879_v11  ;;  %v5068_v11 = vld [vmem:[%s7227_s3 + $0x138] ss:$0 sm:$0xff] }
0x1dfa   : > { %6039 = vmatprep.subr.bf16.mxu1 %v6038_v20 }
0x1dfd   : > { %6041 = vmatpush3.bf16.msra.mxu1 %v6038_v20 }
0x1dfe   : > { %6050 = vmatprep.subr.bf16.mxu1 %v6227_v5 }
0x1dff   : > { %v4121_v22 = vpop.f32.mrb[46].mxu0 }
0x1e00   : > { %v5735_v23 = vpop.f32.mrb[47].mxu0  ;;  %5745 = vmatmul.mubr.msk.f32.vlgmr.msra.gmra.mrb[42].mxu1 %vm371_vm1, %v6853_v60  ;;  %v5071_v60 = vld [vmem:[%s7228_s4 + $0x138] ss:$0 sm:$0xff] }
0x1e01   : > { %5762 = vmatprep.mubr.msk.f32.mxu1 %vm6228_vm0, %v6229_v12 }
0x1e07   : > { %v5757_v52 = vpop.f32.mrb[48].mxu0 }
0x1e08   : > { %v4274_v53 = vpop.f32.mrb[49].mxu0  ;;  %v4280_v54 = vadd.f32 %v5757_v52, %v5071_v60 }
0x1e09   : > { %v4275_v55 = vadd.f32 %v5071_v60, %v4274_v53 }
0x1e0b   : > { %v6055_v56 = vpack.c.bf16 %v4280_v54, %v4275_v55 }
0x1e0d   : > { %6056 = vmatpush3.bf16.msra.mxu0 %v6055_v56 }
0x1e0e   : > { %6057 = vmatprep.subr.bf16.mxu0 %v6227_v5 }
0x1ecb   : > { %v4028_v25 = vpop.f32.mrb[40].mxu1 }
0x1ecc   : > { %v7049_v26 = vadd.f32 %v4028_v25, %v6974_v28  ;;  %v5724_v27 = vpop.f32.mrb[41].mxu1  ;;  %v5066_v28 = vld [vmem:[%s7226_s2 + $0x138] ss:$0 sm:$0xff]  ;;  %v5083_v25 = vld [vmem:[%s7230_s6 + $0x40] sm:$0xff] }
0x1ecd   : > { %v4122_v34 = vadd.f32 %v5066_v28, %v4121_v22  ;;  %v5080_v22 = vld [vmem:[%s7230_s6 + $0x28] sm:$0xff] }
0x1ece   : > { %v6058_v23 = vpack.c.bf16 %v5081_v40, %v5080_v22 }
0x1ed3   : > { %v5746_v29 = vpop.f32.mrb[42].mxu1 }
0x1ed4   : > { %v4201_v30 = vadd.f32 %v5746_v29, %v5068_v11  ;;  %v4195_v31 = vpop.f32.mrb[43].mxu1 }
0x1ed5   : > { %v4196_v32 = vadd.f32 %v5068_v11, %v4195_v31 }
0x1ed7   : > { %v6051_v33 = vpack.c.bf16 %v4201_v30, %v4196_v32  ;;  %v4550_v30 = vrot.slane %v7099_v1, %v2345_v63  ;;  %v5087_v63 = vld [vmem:[%s7231_s7 + $0x58] sm:$0xff] }
0x1ed9   : > { %6053 = vmatpush3.bf16.xpose.msk.msra.mxu1 %vm6391_vm3, %v6051_v33  ;;  %v4555_v33 = vrot.slane %v7099_v1, %v2350_v0  ;;  %v5088_v0 = vld [vmem:[%s7231_s7 + $0x60] sm:$0xff] }
0x1eda   : > { %5772 = vmatprep.subr.mxu1 %v6229_v12  ;;  %v6067_v14 = vpack.c.bf16 %v5088_v0, %v5087_v63 }
0x1ee0   : > { %5763 = vmatmul.mubr.msk.f32.vlgmr.msra.gmra.mrb[44].mxu1 %vm609_vm2, %v4122_v34 }
0x1ee1   : > { %5774 = vmatprep.mubr.msk.f32.mxu1 %vm6228_vm0, %v6229_v12  ;;  %5773 = vmatpush3.msra.mxu1 %v5078_v57 }
0x1ee2   : > { %6063 = vmatprep.subr.bf16.mxu1 %v6227_v5 }
0x1fb3   : > { %v4358_v44 = vpop.f32.mrb[44].mxu1 }
0x1fb4   : > { %v4362_v45 = vmul.f32 0.35355338, %v4358_v44  ;;  %v5764_v46 = vpop.f32.mrb[45].mxu1  ;;  %v6070_v44 = vpack.c.bf16 %v5090_v43, %v5089_v41 }
0x1fb5   : > { %v5092_v46 = vld [vmem:[%s7231_s7 + $0x80] sm:$0xff] }
0x1fb6   : > { %v4363_v47 = vsel %vm690_vm4, %v4362_v45, -inf }
0x1fb7   : > { %4364 = vmax.xlane.f32.xlu0 %v4363_v47 }
0x2044   : > { %v4365_v48 = vpop.xlane.xlu0 %4364 }
0x2045   : > { %v4366_v49 = vsub.f32 %v4362_v45, %v4365_v48  ;;  %v5091_v45 = vld [vmem:[%s7231_s7 + $0x78] sm:$0xff]  ;;  %v5094_v48 = vld [vmem:[%s7230_s6 + $0x48] ss:$0 sm:$0xff] }
0x2046   : > { %v6073_v47 = vpack.c.bf16 %v5092_v46, %v5091_v45 }
0x2047   : > { %v4367_v15 = vmul.f32 1.442695, %v4366_v49 }
0x2049   : > { %6151 = vpow2.f32 %v4367_v15 }
0x2053   : > { %v6152_v50 = vpop.eup %6151 }
0x2054   : > { %v4369_v51 = vsel %vm690_vm4, %v6152_v50, 0.0 }
0x2055   : > { %4370 = vadd.xlane.f32.xlu1 %v4369_v51 }
0x20e2   : > { %v4371_v16 = vpop.xlane.xlu1 %4370 }
0x20e3   : > { %6153 = vrcp.f32 %v4371_v16 }
0x20ed   : > { %v6154_v58 = vpop.eup %6153 }
0x20ee   : > { %v4373_v59 = vmul.f32 %v6154_v58, %v6152_v50  ;;  %v4739_v58 = vrot.slane %v7099_v1, %v2533_v42 }
0x20f0   : > { %5770 = vmatmul.mubr.msk.f32.vlgmr.msra.gmra.mrb[50].mxu0 %vm690_vm4, %v4373_v59 }
0x20f1   : > { %5785 = vmatprep.mubr.msk.f32.mxu0 %vm6228_vm0, %v6229_v12  ;;  %6059 = vmatpush3.bf16.msra.mxu0 %v6058_v23 }
0x20f2   : > { %6060 = vmatprep.subr.bf16.mxu0 %v6227_v5 }
0x21c3   : > { %v4443_v61 = vpop.f32.mrb[50].mxu0 }
0x21c4   : > { %v5771_v62 = vpop.f32.mrb[51].mxu0  ;;  %5775 = vmatmul.mubr.msk.f32.vlgmr.msra.gmra.mrb[46].mxu1 %vm609_vm2, %v4443_v61 }
0x21c5   : > { %5804 = vmatprep.mubr.msk.f32.mxu1 %vm6228_vm0, %v6229_v12  ;;  %6065 = vmatpush3.bf16.msra.mxu1 %v6064_v36 }
0x21c6   : > { %6066 = vmatprep.subr.bf16.mxu1 %v6227_v5 }
0x21c9   : > { %6068 = vmatpush3.bf16.msra.mxu1 %v6067_v14 }
0x21ca   : > { %6069 = vmatprep.subr.bf16.mxu1 %v6227_v5 }
0x21cd   : > { %6071 = vmatpush3.bf16.msra.mxu1 %v6070_v44 }
0x21ce   : > { %6072 = vmatprep.subr.bf16.mxu1 %v6227_v5  ;;  %v5096_v5 = vld [vmem:[%s7231_s7 + $0x88] ss:$0 sm:$0xff] }
0x21d1   : > { %6074 = vmatpush3.bf16.msra.mxu1 %v6073_v47 }
0x2297   : > { %v4518_v3 = vpop.f32.mrb[46].mxu1 }
0x2298   : > { %v4522_v4 = vadd.f32 %v4518_v3, %v7049_v26  ;;  %v5776_v8 = vpop.f32.mrb[47].mxu1 }
0x229a   : > { %v4527_v10 = vadd.f32 %v4526_v2, %v4522_v4 }
0x229c   : > { %v4532_v13 = vmul.f32 %v4531_v9, %v4527_v10 }
0x229e   : > { %v4533_v12 = vadd.f32 %v4532_v13, %v6795_v19  ;;  %v5082_v19 = vld [vmem:[%s7230_s6 + $0x38] sm:$0xff] }
0x229f   : > { %v6061_v26 = vpack.c.bf16 %v5083_v25, %v5082_v19 }
0x22a0   : > { %v4534_v17 = vsel %vm371_vm1, %v4533_v12, 0.0 }
0x22a1   : > { %4535 = vadd.xlane.f32.xlu0 %v4534_v17  ;;  %6062 = vmatpush3.bf16.msra.mxu0 %v6061_v26 }
0x232e   : > { %v4536_v18 = vpop.xlane.xlu0 %4535 }
0x232f   : > { %v4537_v20 = vmul.f32 0.03125, %v4536_v18 }
0x2331   : > { %v4538_v39 = vsub.f32 %v4533_v12, %v4537_v20  ;;  %v4758_v20 = vrot.slane %v7099_v1, %v2552_v6 }
0x2333   : > { %v4539_v21 = vmul.f32 %v4538_v39, %v4538_v39 }
0x2335   : > { %v4540_v38 = vsel %vm371_vm1, %v4539_v21, 0.0 }
0x2336   : > { %4541 = vadd.xlane.f32.xlu1 %v4540_v38  ;;  %v4763_v38 = vrot.slane %v7099_v1, %v2557_v7 }
0x23c3   : > { %v4542_v27 = vpop.xlane.xlu1 %4541 }
0x23c4   : > { %v4543_v11 = vmul.f32 0.03125, %v4542_v27 }
0x23c6   : > { %v4544_v29 = vadd.f32 1e-05, %v4543_v11 }
0x23c8   : > { %6155 = vrsqrt.f32 %v4544_v29 }
0x23d2   : > { %v6156_v31 = vpop.eup %6155 }
0x23d3   : > { %v4546_v32 = vmul.f32 %v6156_v31, %v4538_v39 }
0x23d5   : > { %v4551_v28 = vmul.f32 %v4550_v30, %v4546_v32 }
0x23d7   : > { %v4556_v34 = vadd.f32 %v4555_v33, %v4551_v28 }
0x23d9   : > { %5786 = vmatmul.mubr.msk.f32.vlgmr.msra.gmra.mrb[52].mxu0 %vm371_vm1, %v4556_v34 }
0x24ac   : > { %v4646_v49 = vpop.f32.mrb[52].mxu0 }
0x24ad   : > { %v4647_v15 = vadd.f32 %v5094_v48, %v4646_v49  ;;  %v5787_v50 = vpop.f32.mrb[53].mxu0 }
0x24af   : > { %v4651_v51 = vmul.f32 0.044715, %v4647_v15  ;;  %v4650_v56 = vmul.f32 0.5, %v4647_v15 }
0x24b1   : > { %v4652_v52 = vmul.f32 %v4651_v51, %v4647_v15 }
0x24b3   : > { %v4653_v60 = vmul.f32 %v4652_v52, %v4647_v15 }
0x24b5   : > { %v4654_v53 = vadd.f32 %v4653_v60, %v4647_v15 }
0x24b7   : > { %v4655_v54 = vmul.f32 0.7978846, %v4654_v53 }
0x24b9   : > { %6157 = vtanh.f32 %v4655_v54 }
0x24c3   : > { %v6158_v55 = vpop.eup %6157 }
0x24c4   : > { %v4657_v57 = vadd.f32 1.0, %v6158_v55 }
0x24c6   : > { %v4658_v16 = vmul.f32 %v4657_v57, %v4650_v56 }
0x24c8   : > { %5805 = vmatmul.mubr.msk.f32.vlgmr.msra.gmra.mrb[48].mxu1 %vm2457_vm5, %v4658_v16 }
0x259b   : > { %v4732_v59 = vpop.f32.mrb[48].mxu1 }
0x259c   : > { %v4733_v61 = vadd.f32 %v5096_v5, %v4732_v59  ;;  %v5806_v62 = vpop.f32.mrb[49].mxu1 }
0x259e   : > { %v4740_v2 = vmul.f32 %v4739_v58, %v4733_v61 }
0x25a0   : > { %v4741_v3 = vadd.f32 %v4740_v2, %v4556_v34 }
0x25a2   : > { %v4742_v4 = vsel %vm371_vm1, %v4741_v3, 0.0 }
0x25a3   : > { %4743 = vadd.xlane.f32.xlu0 %v4742_v4 }
0x2630   : > { %v4744_v8 = vpop.xlane.xlu0 %4743 }
0x2631   : > { %v4745_v9 = vmul.f32 0.03125, %v4744_v8 }
0x2633   : > { %v4746_v10 = vsub.f32 %v4741_v3, %v4745_v9 }
0x2635   : > { %v4747_v13 = vmul.f32 %v4746_v10, %v4746_v10 }
0x2637   : > { %v4748_v12 = vsel %vm371_vm1, %v4747_v13, 0.0 }
0x2638   : > { %4749 = vadd.xlane.f32.xlu1 %v4748_v12 }
0x26c5   : > { %v4750_v17 = vpop.xlane.xlu1 %4749 }
0x26c6   : > { %v4751_v18 = vmul.f32 0.03125, %v4750_v17 }
0x26c8   : > { %v4752_v42 = vadd.f32 1e-05, %v4751_v18 }
0x26ca   : > { %6159 = vrsqrt.f32 %v4752_v42 }
0x26d4   : > { %v6160_v39 = vpop.eup %6159 }
0x26d5   : > { %v4754_v21 = vmul.f32 %v6160_v39, %v4746_v10 }
0x26d7   : > { %v4759_v22 = vmul.f32 %v4758_v20, %v4754_v21 }
0x26d9   : > { %v4764_v40 = vadd.f32 %v4763_v38, %v4759_v22 }
0x26db   : > { %4765 = vst.msk [vmem:[%s338_s29] sm:$0xff] %vm371_vm1, %v4764_v40 }
0x26dc   : > { %6176 = shalt.err (!%p6173_p3)
}
0x26dd   : > { %s6177_s26 = scalar_lea.hbm %s7181_s21, 128  ;;  %s6181_s29 = scalar_lea.hbm %s7233_s9, 256 }
0x26de   : > { %p6178_p4 = scmp.ne.s32.totalorder %s7181_s21, %s6177_s26  ;;  %p6182_p9 = scmp.lt.u32.totalorder %s7181_s21, %s7233_s9 }
0x26df   : > { %p6183_p10 = scmp.lt.u32.totalorder %s6181_s29, %s6177_s26  ;;  %p6185_p12 = scmp.lt.u32.totalorder %s6177_s26, %s7181_s21 }
0x26e0   : > { %p6179_p7 = pnand %p6178_p4, %p6319_p5 }
0x26e1   : > { %p6184_p11 = por %p6183_p10, %p6182_p9 }
0x26e2   : > { %p6180_p8 = pneg %p6179_p7 }
0x26e3   : > { %p6186_p13 = por %p6185_p12, %p6184_p11 }
0x26e5   : > { %p6187_p0 = pnand %p6186_p13, %p6180_p8 }
0x26e7   : > { %6190 = shalt.err (!%p6187_p0)
}
0x26e8   : > { %6075 = dma.vmem_to_hbm [thread:$0]  (%p6319_p5), %s7183_s16, 128, %s7181_s21, %s4767_s23  }
0x26e9 PF: > { %p6081_p1 = scmp.ge.s32.totalorder %s6225_s12, 2  ;;  %s4792_s24 = sand.u32 1, %s6213_s30  }
0x26ea   : > { %s4793_s13 = scalar_lea.sflag [#allocation3], %s4792_s24 }
0x26eb   : > { %p6078_p2 = pnand %p6081_p1, %p6323_p6 }
0x26ed   : > { %6208 = dma.done.wait (!%p6078_p2), %s4793_s13, 128  }
0x26ee   : > { %6210 = vsyncadd (!%p6078_p2), %s4793_s13, 4294967168  ;;  %p19_p3 = scmp.ge.s32.totalorder %s6306_s15, 4   ;;  %s7238_s30 = smov %s6217_s10 }
0x26ef   : > { %s7239_s10 = smov %s6221_s11  ;;  %s7240_s11 = smov %s6317_s18 }
0x26f0   : > { %s7241_s12 = smov %s6306_s15  ;;  %21 = sbr.rel (!%p19_p3) target bundleno = 3 (0x3), region = 125 }
0x26f7   :  { %4798 = vsyncpa [#allocation3], 1 }
0x26f8   :  { %4800 = vsyncpa [#allocation3 + $0x1], 1 }

</bundles_post_ra>
